<compile_context>
chip_gen: v6e
topology: v6e:2x2x1
jax: 0.10.0
libtpu: 0.0.40
codegen_flags: <defaults>
</compile_context>

<pallas_src>
import jax
import jax.numpy as jnp
from jax.experimental import pallas as pl
from jax.experimental.pallas import tpu as pltpu


NEG_SLOPE = 0.2  # nn.LeakyReLU(negative_slope=0.2) per F_ACT['leakyrelu']


def ensemble_agg_kernel(x_ref, w_ref, b_ref, q_ref, y_ref):
    # x_ref: (E, tn, dim_in)   tile of nodes, all ensemble branches
    # w_ref: (dim_in, dim_out) shared linear weight (bf16 by default)
    # b_ref: (1, dim_out)      shared linear bias (f32)
    # q_ref: (dim_out, 1)      attention vector, column layout (f32)
    # y_ref: (tn, dim_in)      output tile
    E, tn, din = x_ref.shape
    dout = w_ref.shape[1]

    b = b_ref[...].astype(jnp.float32)        # (1, dout)
    q_col = q_ref[...].astype(jnp.float32)    # (dout, 1)

    # 1. One flat MXU matmul over all branches: (E*tn, din) @ (din, dout).
    #    Runs in W's dtype (bf16 fast path) with f32 accumulation; no f32 copy
    #    of the input tile is materialized.
    x_flat = x_ref[...].reshape(E * tn, din)
    h = jnp.dot(x_flat.astype(w_ref.dtype), w_ref[...],
                preferred_element_type=jnp.float32) + b        # (E*tn, dout)
    a = jnp.where(h >= 0, h, NEG_SLOPE * h)                    # LeakyReLU(0.2)

    # 2. q-projection on the MXU -> attention logits, then a stable softmax
    #    over the ensemble (branch) axis in (E, tn, 1) layout.
    omega = jnp.dot(a, q_col, preferred_element_type=jnp.float32)  # (E*tn, 1)
    omega = omega.reshape(E, tn, 1)
    m = jnp.max(omega, axis=0, keepdims=True)
    e = jnp.exp(omega - m)
    inv = pl.reciprocal(jnp.sum(e, axis=0, keepdims=True), approx=True)
    wgt = e * inv                                               # (E, tn, 1)

    # 3. Weighted sum of branch inputs, unrolled over E with a (tn, din) acc
    #    (avoids materializing the full (E, tn, din) broadcast product).
    y = wgt[0] * x_ref[0].astype(jnp.float32)
    for i in range(1, E):
        y = y + wgt[i] * x_ref[i].astype(jnp.float32)
    y_ref[...] = y.astype(y_ref.dtype)


def _vmem_budget_and_limit():
    """(tile-sizing budget, scoped-VMEM limit) per TPU generation.

    v5e/v6e have 128 MiB physical VMEM per core -> generous budget; v7x has
    only 64 MiB -> conservative so double-buffered DMA windows still fit.
    """
    try:
        cap = pltpu.get_tpu_info().vmem_capacity_bytes
    except Exception:
        cap = 64 << 20  # be conservative if the query is unavailable
    if cap >= (100 << 20):          # v5e / v6e
        return 64 << 20, 96 << 20
    return 32 << 20, 48 << 20       # v7x (64 MiB physical)


def _pick_tile_n(E, dim_in, dim_out, x_itemsize, vmem_budget_bytes):
    """Largest node tile whose double-buffered DMA tiles + intermediates fit."""
    for t in (2048, 1024, 512, 256, 128, 64, 32, 16, 8):
        x_bytes = 2 * E * t * dim_in * x_itemsize          # input, 2 pipeline bufs
        y_bytes = 2 * t * dim_in * x_itemsize              # output, 2 pipeline bufs
        p_bytes = 2 * (dim_in * dim_out * 2 + 2 * dim_out * 4)  # W(bf16)/b/q (tiny)
        i_bytes = (E * t * dim_in * 2                      # bf16 matmul operand
                   + E * t * dim_out * 4                   # h / LeakyReLU acts (f32)
                   + 3 * E * t * 4                         # logits / exp / weights
                   + t * dim_in * 4)                       # f32 accumulator
        if x_bytes + y_bytes + p_bytes + i_bytes <= vmem_budget_bytes:
            return t
    return 8


def ensemble_aggregator(X, W, b, q, *, tile_n=None, logits_in_bf16=True):
    """X: (E, N, dim_in); W: (dim_in, dim_out); b: (dim_out,); q: (dim_out,)."""
    E, N, dim_in = X.shape
    dim_out = W.shape[1]

    vmem_budget, vmem_limit = _vmem_budget_and_limit()
    if tile_n is None:
        tile_n = _pick_tile_n(E, dim_in, dim_out, jnp.dtype(X.dtype).itemsize,
                              vmem_budget)
        # Keep >= 4 grid steps when possible: v7x shards the "parallel" axis
        # across 2 TensorCores and each core needs >= 2 steps to overlap
        # DMA with compute.
        while tile_n > 128 and pl.cdiv(N, tile_n) < 4:
            tile_n //= 2

    # bf16 logit matmul (softmax weights tolerate it); keep W in f32 if disabled.
    Wk = W.astype(jnp.bfloat16) if logits_in_bf16 else W
    b2 = b.reshape(1, dim_out)
    q2 = q.reshape(dim_out, 1)

    # Ragged N handled by Pallas partial blocks: no host-side pad / slice.
    grid = (pl.cdiv(N, tile_n),)
    return pl.pallas_call(
        ensemble_agg_kernel,
        out_shape=jax.ShapeDtypeStruct((N, dim_in), X.dtype),
        grid_spec=pltpu.PrefetchScalarGridSpec(
            num_scalar_prefetch=0,
            grid=grid,
            in_specs=[
                pl.BlockSpec((E, tile_n, dim_in), lambda i: (0, i, 0)),
                pl.BlockSpec((dim_in, dim_out), lambda i: (0, 0)),
                pl.BlockSpec((1, dim_out), lambda i: (0, 0)),
                pl.BlockSpec((dim_out, 1), lambda i: (0, 0)),
            ],
            out_specs=pl.BlockSpec((tile_n, dim_in), lambda i: (i, 0)),
        ),
        compiler_params=pltpu.CompilerParams(
            dimension_semantics=("parallel",),
            vmem_limit_bytes=vmem_limit,
        ),
    )(X, Wk, b2, q2)


def ensemble_aggregator_ref(X, W, b, q, logit_dtype=jnp.float32):
    """Pure-JAX reference mirroring the PyTorch forward.

    logit_dtype=bfloat16 mirrors the kernel's bf16 logit matmul exactly;
    float32 is the original full-precision forward.
    """
    h = jnp.einsum('end,do->eno', X.astype(logit_dtype), W.astype(logit_dtype),
                   preferred_element_type=jnp.float32) + b[None, None, :]
    a = jnp.where(h >= 0, h, NEG_SLOPE * h)
    omega = jnp.sum(a * q[None, None, :], axis=-1)           # (E, N)
    wgt = jax.nn.softmax(omega, axis=0)                      # softmax over branches
    return jnp.sum(wgt[:, :, None] * X, axis=0)


if __name__ == "__main__":
    # Small, deterministic problem consistent with the module:
    #   E = num_ensemble branches, each X_i of shape [N, dim_in]
    # N is deliberately not a tile multiple to exercise the ragged (partial
    # last block) path.
    E, N, dim_in, dim_out = 4, 1000, 128, 64

    key = jax.random.PRNGKey(0)
    kx, kw, kb = jax.random.split(key, 3)

    X = jax.random.normal(kx, (E, N, dim_in), dtype=jnp.float32)

    # Deterministic parameter init (shapes from nn.Linear(dim_in, dim_out), q=ones(dim_out)).
    bound = 1.0 / (dim_in ** 0.5)
    W = jax.random.uniform(kw, (dim_in, dim_out), jnp.float32, -bound, bound)
    b = jax.random.uniform(kb, (dim_out,), jnp.float32, -bound, bound)
    q = jnp.ones((dim_out,), dtype=jnp.float32)  # nn.Parameter(torch.ones(dim_out))

    Y = jax.block_until_ready(ensemble_aggregator(X, W, b, q))
    assert Y.shape == (N, dim_in)

    # Tight check vs a reference that mirrors the kernel's bf16 logit matmul
    # (residual error = approx EUP reciprocal + accumulation order).
    Y_ref_bf16 = ensemble_aggregator_ref(X, W, b, q, logit_dtype=jnp.bfloat16)
    assert jnp.allclose(Y, Y_ref_bf16, atol=5e-3, rtol=5e-3), "mismatch vs bf16-logit reference"

    # Loose sanity check vs the full-f32 reference: only guards gross semantic
    # errors (wrong softmax axis, bad weighting); bf16 logits shift softmax
    # weights slightly so a tight tolerance is not expected here.
    Y_ref_f32 = ensemble_aggregator_ref(X, W, b, q, logit_dtype=jnp.float32)
    assert jnp.allclose(Y, Y_ref_f32, atol=1e-1, rtol=1e-1), "mismatch vs f32 reference"

    print("KERNEL_OK")
</pallas_src>

<mosaic_0001>
module attributes {stable_mosaic.version = 11 : i64} {
  func.func @ensemble_agg_kernel(%arg0: i32, %arg1: memref<4x256x128xf32, #tpu.memory_space<vmem>>, %arg2: memref<128x64xbf16, #tpu.memory_space<vmem>>, %arg3: memref<1x64xf32, #tpu.memory_space<vmem>>, %arg4: memref<64x1xf32, #tpu.memory_space<vmem>>, %arg5: memref<256x128xf32, #tpu.memory_space<vmem>>) attributes {dimension_semantics = [#tpu.dimension_semantics<parallel>], iteration_bounds = array<i64: 4>, scalar_prefetch = 0 : i64, scratch_operands = 0 : i64, tpu.core_type = #tpu.core_type<tc>, window_params = [{transform_indices = @transform_0, window_bounds = array<i64: 4, 256, 128>}, {pipeline_mode = #tpu.pipeline_mode<synchronous>, transform_indices = @transform_1, window_bounds = array<i64: 128, 64>}, {pipeline_mode = #tpu.pipeline_mode<synchronous>, transform_indices = @transform_2, window_bounds = array<i64: 1, 64>}, {pipeline_mode = #tpu.pipeline_mode<synchronous>, transform_indices = @transform_3, window_bounds = array<i64: 64, 1>}, {transform_indices = @transform_4, window_bounds = array<i64: 256, 128>}]} {
    %c0 = arith.constant 0 : index
    %c0_0 = arith.constant 0 : index
    %0 = vector.load %arg3[%c0, %c0_0] : memref<1x64xf32, #tpu.memory_space<vmem>>, vector<1x64xf32>
    %c0_1 = arith.constant 0 : index
    %c0_2 = arith.constant 0 : index
    %1 = vector.load %arg4[%c0_1, %c0_2] : memref<64x1xf32, #tpu.memory_space<vmem>>, vector<64x1xf32>
    %c0_3 = arith.constant 0 : index
    %c0_4 = arith.constant 0 : index
    %c0_5 = arith.constant 0 : index
    %2 = vector.load %arg1[%c0_3, %c0_4, %c0_5] : memref<4x256x128xf32, #tpu.memory_space<vmem>>, vector<4x256x128xf32>
    %3 = vector.shape_cast %2 : vector<4x256x128xf32> to vector<1024x128xf32>
    %4 = arith.truncf %3 : vector<1024x128xf32> to vector<1024x128xbf16>
    %c0_6 = arith.constant 0 : index
    %c0_7 = arith.constant 0 : index
    %5 = vector.load %arg2[%c0_6, %c0_7] : memref<128x64xbf16, #tpu.memory_space<vmem>>, vector<128x64xbf16>
    %cst = arith.constant dense<0.000000e+00> : vector<1024x64xf32>
    %6 = tpu.matmul %4, %5, %cst {dimension_numbers = #tpu.dot_dimension_numbers<[1], [0], [0], [1], [0, 0, 1, 1], [], []>} : vector<1024x128xbf16>, vector<128x64xbf16>, vector<1024x64xf32> -> vector<1024x64xf32>
    %7 = vector.broadcast %0 : vector<1x64xf32> to vector<1024x64xf32>
    %8 = arith.addf %6, %7 : vector<1024x64xf32>
    %cst_8 = arith.constant 0.000000e+00 : f32
    %9 = vector.broadcast %cst_8 : f32 to vector<1024x64xf32>
    %10 = arith.cmpf oge, %8, %9 : vector<1024x64xf32>
    %cst_9 = arith.constant 2.000000e-01 : f32
    %11 = vector.broadcast %cst_9 : f32 to vector<1024x64xf32>
    %12 = arith.mulf %11, %8 : vector<1024x64xf32>
    %13 = arith.select %10, %8, %12 : vector<1024x64xi1>, vector<1024x64xf32>
    %cst_10 = arith.constant dense<0.000000e+00> : vector<1024x1xf32>
    %14 = tpu.matmul %13, %1, %cst_10 {dimension_numbers = #tpu.dot_dimension_numbers<[1], [0], [0], [1], [0, 0, 1, 1], [], []>} : vector<1024x64xf32>, vector<64x1xf32>, vector<1024x1xf32> -> vector<1024x1xf32>
    %15 = vector.shape_cast %14 : vector<1024x1xf32> to vector<4x256x1xf32>
    %cst_11 = arith.constant dense<0xFF800000> : vector<256x1xf32>
    %16 = vector.multi_reduction <maximumf>, %15, %cst_11 [0] : vector<4x256x1xf32> to vector<256x1xf32>
    %17 = vector.shape_cast %16 : vector<256x1xf32> to vector<1x256x1xf32>
    %18 = vector.broadcast %17 : vector<1x256x1xf32> to vector<4x256x1xf32>
    %19 = arith.subf %15, %18 : vector<4x256x1xf32>
    %20 = math.exp %19 : vector<4x256x1xf32>
    %cst_12 = arith.constant dense<0.000000e+00> : vector<256x1xf32>
    %21 = vector.multi_reduction <add>, %20, %cst_12 [0] : vector<4x256x1xf32> to vector<256x1xf32>
    %22 = vector.shape_cast %21 : vector<256x1xf32> to vector<1x256x1xf32>
    %23 = tpu.reciprocal %22 {approx = true} : vector<1x256x1xf32> -> vector<1x256x1xf32>
    %24 = vector.broadcast %23 : vector<1x256x1xf32> to vector<4x256x1xf32>
    %25 = arith.mulf %20, %24 : vector<4x256x1xf32>
    %26 = vector.extract_strided_slice %25 {offsets = [0, 0, 0], sizes = [1, 256, 1], strides = [1, 1, 1]} : vector<4x256x1xf32> to vector<1x256x1xf32>
    %27 = vector.shape_cast %26 : vector<1x256x1xf32> to vector<256x1xf32>
    %c0_13 = arith.constant 0 : index
    %c0_14 = arith.constant 0 : index
    %c0_15 = arith.constant 0 : index
    %28 = vector.load %arg1[%c0_13, %c0_14, %c0_15] : memref<4x256x128xf32, #tpu.memory_space<vmem>>, vector<1x256x128xf32>
    %29 = vector.shape_cast %28 : vector<1x256x128xf32> to vector<256x128xf32>
    %30 = vector.broadcast %27 : vector<256x1xf32> to vector<256x128xf32>
    %31 = arith.mulf %30, %29 : vector<256x128xf32>
    %32 = vector.extract_strided_slice %25 {offsets = [1, 0, 0], sizes = [1, 256, 1], strides = [1, 1, 1]} : vector<4x256x1xf32> to vector<1x256x1xf32>
    %33 = vector.shape_cast %32 : vector<1x256x1xf32> to vector<256x1xf32>
    %c1 = arith.constant 1 : index
    %c0_16 = arith.constant 0 : index
    %c0_17 = arith.constant 0 : index
    %34 = vector.load %arg1[%c1, %c0_16, %c0_17] : memref<4x256x128xf32, #tpu.memory_space<vmem>>, vector<1x256x128xf32>
    %35 = vector.shape_cast %34 : vector<1x256x128xf32> to vector<256x128xf32>
    %36 = vector.broadcast %33 : vector<256x1xf32> to vector<256x128xf32>
    %37 = arith.mulf %36, %35 : vector<256x128xf32>
    %38 = arith.addf %31, %37 : vector<256x128xf32>
    %39 = vector.extract_strided_slice %25 {offsets = [2, 0, 0], sizes = [1, 256, 1], strides = [1, 1, 1]} : vector<4x256x1xf32> to vector<1x256x1xf32>
    %40 = vector.shape_cast %39 : vector<1x256x1xf32> to vector<256x1xf32>
    %c2 = arith.constant 2 : index
    %c0_18 = arith.constant 0 : index
    %c0_19 = arith.constant 0 : index
    %41 = vector.load %arg1[%c2, %c0_18, %c0_19] : memref<4x256x128xf32, #tpu.memory_space<vmem>>, vector<1x256x128xf32>
    %42 = vector.shape_cast %41 : vector<1x256x128xf32> to vector<256x128xf32>
    %43 = vector.broadcast %40 : vector<256x1xf32> to vector<256x128xf32>
    %44 = arith.mulf %43, %42 : vector<256x128xf32>
    %45 = arith.addf %38, %44 : vector<256x128xf32>
    %46 = vector.extract_strided_slice %25 {offsets = [3, 0, 0], sizes = [1, 256, 1], strides = [1, 1, 1]} : vector<4x256x1xf32> to vector<1x256x1xf32>
    %47 = vector.shape_cast %46 : vector<1x256x1xf32> to vector<256x1xf32>
    %c3 = arith.constant 3 : index
    %c0_20 = arith.constant 0 : index
    %c0_21 = arith.constant 0 : index
    %48 = vector.load %arg1[%c3, %c0_20, %c0_21] : memref<4x256x128xf32, #tpu.memory_space<vmem>>, vector<1x256x128xf32>
    %49 = vector.shape_cast %48 : vector<1x256x128xf32> to vector<256x128xf32>
    %50 = vector.broadcast %47 : vector<256x1xf32> to vector<256x128xf32>
    %51 = arith.mulf %50, %49 : vector<256x128xf32>
    %52 = arith.addf %45, %51 : vector<256x128xf32>
    %c0_22 = arith.constant 0 : index
    %c0_23 = arith.constant 0 : index
    %53 = vector.load %arg5[%c0_22, %c0_23] : memref<256x128xf32, #tpu.memory_space<vmem>>, vector<256x128xf32>
    tpu.vector_store %arg5[%c0_22, %c0_23], %52 {strides = array<i32>} : memref<256x128xf32, #tpu.memory_space<vmem>>, vector<256x128xf32>,
    return
  }
  func.func @transform_0(%arg0: i32) -> (i32, i32, i32) {
    %c0_i32 = arith.constant 0 : i32
    %c0_i32_0 = arith.constant 0 : i32
    %c0_i32_1 = arith.constant 0 : i32
    return %c0_i32, %arg0, %c0_i32_0 : i32, i32, i32
  }
  func.func @transform_1(%arg0: i32) -> (i32, i32) {
    %c0_i32 = arith.constant 0 : i32
    %c0_i32_0 = arith.constant 0 : i32
    %c0_i32_1 = arith.constant 0 : i32
    return %c0_i32, %c0_i32_0 : i32, i32
  }
  func.func @transform_2(%arg0: i32) -> (i32, i32) {
    %c0_i32 = arith.constant 0 : i32
    %c0_i32_0 = arith.constant 0 : i32
    %c0_i32_1 = arith.constant 0 : i32
    return %c0_i32, %c0_i32_0 : i32, i32
  }
  func.func @transform_3(%arg0: i32) -> (i32, i32) {
    %c0_i32 = arith.constant 0 : i32
    %c0_i32_0 = arith.constant 0 : i32
    %c0_i32_1 = arith.constant 0 : i32
    return %c0_i32, %c0_i32_0 : i32, i32
  }
  func.func @transform_4(%arg0: i32) -> (i32, i32) {
    %c0_i32 = arith.constant 0 : i32
    %c0_i32_0 = arith.constant 0 : i32
    return %arg0, %c0_i32 : i32, i32
  }
}

</mosaic_0001>

<bundles_post_ra>
// kernel: tpu_custom_call.1
= control target key start
LH: loop header
LB: loop body
LE: loop exit
PB: predicated region body
PF: predicated region fallthrough
CT: control target
= control target key end

     0   :  { %s8594_s0 = inlined_call_operand.hbm [shape: f32[4,1000,128], index: 0, kind: input, shape index: {}]   ;;  %s8595_s1 = inlined_call_operand.vmem [shape: bf16[128,64], index: 1, kind: input, shape index: {}]   ;;  %s8596_s2 = inlined_call_operand.hbm [shape: f32[1,64], index: 2, kind: input, shape index: {}]   ;;  %s8597_s3 = inlined_call_operand.vmem [shape: f32[64,1], index: 3, kind: input, shape index: {}]   ;;  %s8598_s4 = inlined_call_operand.hbm [shape: f32[1000,128], index: 4, kind: output, shape index: {}]  }
   0x1   :  { %8688 = sst [smem:[#allocation88_spill]] %s8596_s2 }
   0x2   :  { %9 = vsyncpa [#allocation3], 0 }
   0x3   :  { %11 = vsyncpa [#allocation3 + $0x1], 0 }
   0x4   :  { %12 = vsyncpa [#allocation6], 0 }
   0x5   :  { %13 = vsyncpa [#allocation4], 0 }
   0x6   :  { %15 = vsyncpa [#allocation4 + $0x1], 0  ;;  %s6029_s15 = smov 0   ;;  %s6031_s16 = smov 0  }
   0x7   :  { %s6033_s17 = smov 0   ;;  %s6035_s18 = smov 0  }
   0x8 LB: > { %s6050_s19 = sadd.s32 4294967295, %s5992_s18   ;;  %s4685_s20 = sadd.s32 4294967294, %s5992_s18   ;;  %s5992_s18 = sphi %s6035_s18, %s8927_s18   ;;  %s5988_s17 = sphi %s6033_s17, %s8926_s17   ;;  %s5984_s16 = sphi %s6031_s16, %s8925_s16   ;;  %s5980_s15 = sphi %s6029_s15, %s8924_s15  }
   0x9   : > { %s6054_s21 = sadd.s32 1, %s5992_s18   ;;  %s28_s22 = sadd.s32 1, %s5988_s17 }
   0xa   : > { %s25_s23 = ssub.s32 %s5992_s18, %s6054_s21  ;;  %p35_p0 = scmp.ne.s32.totalorder %s5988_s17, %s5984_s16 }
   0xb   : > { %p26_p1 = scmp.eq.s32.totalorder %s25_s23, 0  ;;  %p36_p2 = scmp.eq.s32.totalorder %s5992_s18, 0 }
   0xc   : > { %p41_p3 = scmp.ne.s32.totalorder %s5984_s16, %s5980_s15  ;;  %p42_p4 = scmp.eq.s32.totalorder %s6050_s19, 0 }
   0xd   : > { %s6066_s24 = scalar_select %p26_p1, %s5988_s17, %s28_s22  }
   0xe   : > { %p6068_p5 = por %p36_p2, %p35_p0  ;;  %p6074_p6 = por %p42_p4, %p41_p3 }
   0xf   : > { %8689 = sst [smem:[#allocation13_spill]] %s6066_s24  ;;  %p128_p7 = scmp.eq.s32.totalorder %s6050_s19, 3 }
  0x10   : > { %s8691_s26 = scalar_select %p6074_p6, 1, 0 }
  0x11   : > { %p134_p8 = scmp.eq.s32.totalorder %s4685_s20, 3  ;;  %p4686_p9 = scmp.ge.s32.totalorder %s5992_s18, 1 }
  0x12   : > { %p141_p10 = scmp.lt.s32.totalorder %s5992_s18, 5  ;;  %p6081_p11 = por %p128_p7, %p35_p0 }
  0x13   : > { %p6085_p12 = por %p134_p8, %p41_p3  ;;  %s5994_s30 = smov [#allocation5]  }
  0x14   : > { %s8692_s27 = scalar_select %p6081_p11, 1, 0 }
  0x15   : > { %s8693_s28 = scalar_select %p6085_p12, 1, 0 }
  0x16   : > { %p6089_p13 = pnand %p4686_p9, %p141_p10  ;;  %s157_s5 = sshll.u32 %s5994_s30, 4  ;;  %s158_s5 = int_to_ptr.vmem [resolvable:$true] %s157_s5 }
  0x17   : > { %s5909_s6 = scalar_lea.vmem %s158_s5, 16  ;;  %s5916_s7 = scalar_lea.vmem %s158_s5, 32 }
  0x18   : > { %p5515_p1 = pneg %p6089_p13  ;;  %p5910_p7 = scmp.ne.s32.totalorder %s158_s5, %s5909_s6 }
  0x19   : > { %p5917_p8 = scmp.lt.s32.totalorder %s158_s5, %s158_s5  ;;  %p5918_p12 = scmp.lt.s32.totalorder %s5916_s7, %s5909_s6 }
  0x1a   : > { %p5516_p2 = pnand %p5515_p1, %p42_p4 }
  0x1b   : > { %p5919_p9 = por %p5918_p12, %p5917_p8 }
  0x1c   : > { %p5900_p0 = pneg %p5516_p2 }
  0x1e   : > { %p5912_p11 = pnand %p5910_p7, %p5900_p0 }
  0x20   : > { %p5913_p3 = pneg %p5912_p11 }
  0x22   : > { %p5920_p10 = pnand %p5919_p9, %p5913_p3 }
  0x24   : > { %5923 = shalt.err (!%p5920_p10)
}
  0x25   : > { %s8695_s2 = sld [smem:[#allocation88_spill]]  ;;  %p4688_p6 = scmp.ge.s32.totalorder %s5992_s18, 4 }
  0x27   : > { %167 = sbr.rel (%p4688_p6) target bundleno = 66 (0x42), region = 28 }
  0x2b   : > { %5518 = dma.hbm_to_vmem [thread:$0]  (!%p5516_p2), %s8695_s2, 16, %s158_s5, [#allocation6]  }
  0x2c   : > { %170 = sbr.rel (!%p6068_p5) target bundleno = 66 (0x42), region = 32 }
  0x31   : > { %s171_s10 = sand.u32 1, %s5988_s17   ;;  %s4690_s11 = sshll.u32 %s5992_s18, 5 }
  0x32   : > { %s4689_s12 = sshll.u32 %s171_s10, 10  ;;  %s177_s13 = ssub.s32 125, %s4690_s11 }
  0x33   : > { %p178_p11 = scmp.lt.s32.totalorder %s177_s13, 32  ;;  %s172_s22 = scalar_lea.sflag [#allocation3], %s171_s10 }
  0x34   : > { %s175_s23 = scalar_lea.vmem [#allocation2], %s4689_s12 }
  0x35   : > { %s8929_s13 = smov (!%p178_p11, %s177_s13), 32 }
  0x36   : > { %s4691_s14 = sshll.u32 %s8929_s13, 9 }
  0x37   : > { %s182_s20 = ssub.s32 16384, %s4691_s14 }
  0x38   : > { %183 = vsyncadd %s172_s22, %s182_s20  ;;  %p4692_p12 = scmp.ne.s32.totalorder %s4691_s14, 0  ;;  %s4945_s30 = sshll.u32 %s5992_s18, 12 }
  0x39   : > { %s186_s25 = scalar_lea.hbm %s8594_s0, %s4945_s30  ;;  %s193_s7 = sld [smem:[#allocation0]]  }
  0x3a   : > { %s201_s8 = sshll.u32 %s175_s23, 4  ;;  %s5995_s9 = smov 16000   ;;  %s202_s8 = int_to_ptr.vmem [resolvable:$true] %s201_s8 }
  0x3b   : > { %208 = sst [smem:[#allocation9]] %s5995_s9  ;;  %s5996_s11 = smov 4096  }
  0x3c   : > { %212 = sst [smem:[#allocation9 + $0x2]] %s8929_s13  ;;  %s5997_s2 = smov 128  }
  0x3d   : > { %210 = sst [smem:[#allocation9 + $0x1]] %s5996_s11  ;;  %s5998_s20 = smov 8  }
  0x3e   : > { %214 = sst [smem:[#allocation9 + $0x3]] %s5997_s2  ;;  %s5999_s24 = smov 131072  }
  0x3f   : > { %s4696_s10 = sshll.u32 %s193_s7, 26  ;;  %216 = sst [smem:[#allocation9 + $0x4]] %s5997_s2 }
  0x40   : > { %s4697_s12 = sadd.s32 134217728, %s4696_s10  ;;  %218 = sst [smem:[#allocation9 + $0x5]] %s5998_s20 }
  0x41   : > { %220 = dma.general (%p4692_p12), %s186_s25, %s4691_s14, %s202_s8, %s172_s22, %s5999_s24, [#allocation9], %s4697_s12, 0  }
  0x42 PF: > { %226 = sbr.rel (%p6089_p13) target bundleno = 1180 (0x49c), region = 36 }
  0x47   : > { %s6113_s13 = sand.u32 1, %s5984_s16   ;;  %p8696_p5 = scmp.ne.s32.totalorder %s8691_s26, 0 }
  0x48   : > { %s4700_s23 = sshll.u32 %s6113_s13, 10  ;;  %s229_s30 = scalar_lea.sflag [#allocation3], %s6113_s13 }
  0x49   : > { %s6117_s2 = scalar_lea.vmem [#allocation2], %s4700_s23 }
  0x4a   : > { %5967 = dma.done.wait (%p8696_p5), %s229_s30, 16384  }
  0x4b   : > { %5969 = vsyncadd (%p8696_p5), %s229_s30, 4294950912 }
  0x4c   : > { %5971 = dma.done.wait (%p42_p4), [#allocation6], 16  }
  0x4d   : > { %5973 = vsyncadd (%p42_p4), [#allocation6], 4294967280  ;;  %v5569_v0 = vld [vmem:[%s8595_s1 + $0x38] sm:$0xff]   ;;  %v5570_v1 = vld [vmem:[%s8595_s1 + $0x30] sm:$0xff]   ;;  %vm1472_vm1 = vcmask 523264   ;;  %s4702_s23 = sshll.u32 %s6113_s13, 8 }
  0x4e   : > { %5157 = vmatprep.subr.bf16.mxu0 %v5569_v0  ;;  %v5571_v2 = vld [vmem:[%s8595_s1 + $0x28] sm:$0xff]   ;;  %v5572_v3 = vld [vmem:[%s8595_s1 + $0x20] sm:$0xff]   ;;  %v5573_v7 = vld [vmem:[%s8595_s1 + $0x18] sm:$0xff]   ;;  %s7819_s30 = scalar_lea.vmem [#allocation7], %s4702_s23  ;;  %s4583_s24 = scalar_lea.sflag [#allocation4], %s6113_s13 }
  0x4f   : > { %5158 = vmatpush3.bf16.msra.mxu0 %v5569_v0  ;;  %v281_v4 = vld [vmem:[%s6117_s2] sm:$0xff]  ;;  %v282_v5 = vld [vmem:[%s6117_s2 + $0x8] sm:$0xff]  ;;  %v5574_v8 = vld [vmem:[%s8595_s1 + $0x10] sm:$0xff]   ;;  %p8921_p4 = scmp.ne.s32.totalorder %s8692_s27, 0 }
  0x50   : > { %5159 = vmatprep.subr.bf16.mxu0 %v5570_v1  ;;  %v409_v6 = vpack.c.bf16 %v282_v5, %v281_v4  ;;  %v5575_v9 = vld [vmem:[%s8595_s1 + $0x8] sm:$0xff]   ;;  %v5576_v10 = vld [vmem:[%s8595_s1] sm:$0xff]   ;;  %v283_v11 = vld [vmem:[%s6117_s2 + $0x10] sm:$0xff]  ;;  %s4937_s29 = sshll.u32 (%p8921_p4), %s6050_s19, 5 }
  0x51   : > { %v284_v12 = vld [vmem:[%s6117_s2 + $0x18] sm:$0xff]  ;;  %v285_v13 = vld [vmem:[%s6117_s2 + $0x20] sm:$0xff]  ;;  %v286_v14 = vld [vmem:[%s6117_s2 + $0x28] sm:$0xff]  ;;  %s4591_s14 = ssub.s32 (%p8921_p4), 125, %s4937_s29 }
  0x52   : > { %5173 = vmatprep.mubr.bf16.mxu0 %v409_v6  ;;  %v410_v15 = vpack.c.bf16 %v284_v12, %v283_v11  ;;  %v411_v16 = vpack.c.bf16 %v286_v14, %v285_v13  ;;  %v287_v17 = vld [vmem:[%s6117_s2 + $0x30] sm:$0xff]  ;;  %v288_v18 = vld [vmem:[%s6117_s2 + $0x38] sm:$0xff]  ;;  %v289_v19 = vld [vmem:[%s6117_s2 + $0x40] sm:$0xff]  ;;  %p4592_p6 = scmp.lt.s32.totalorder (%p8921_p4), %s4591_s14, 32 }
  0x53   : > { %5160 = vmatpush3.bf16.msra.mxu0 %v5570_v1  ;;  %v290_v20 = vld [vmem:[%s6117_s2 + $0x48] sm:$0xff]  ;;  %v412_v21 = vpack.c.bf16 %v288_v18, %v287_v17  ;;  %v291_v23 = vld [vmem:[%s6117_s2 + $0x50] sm:$0xff]  ;;  %v292_v24 = vld [vmem:[%s6117_s2 + $0x58] sm:$0xff] }
  0x54   : > { %5161 = vmatprep.subr.bf16.mxu0 %v5571_v2  ;;  %v413_v22 = vpack.c.bf16 %v290_v20, %v289_v19  ;;  %v293_v25 = vld [vmem:[%s6117_s2 + $0x60] sm:$0xff]  ;;  %v294_v26 = vld [vmem:[%s6117_s2 + $0x68] sm:$0xff]  ;;  %v414_v27 = vpack.c.bf16 %v292_v24, %v291_v23  ;;  %v295_v29 = vld [vmem:[%s6117_s2 + $0x70] sm:$0xff] }
  0x55   : > { %v415_v28 = vpack.c.bf16 %v294_v26, %v293_v25  ;;  %v296_v30 = vld [vmem:[%s6117_s2 + $0x78] sm:$0xff]  ;;  %v297_v31 = vld [vmem:[%s6117_s2 + $0x80] sm:$0xff]  ;;  %v298_v32 = vld [vmem:[%s6117_s2 + $0x88] sm:$0xff] }
  0x56   : > { %v416_v33 = vpack.c.bf16 %v296_v30, %v295_v29  ;;  %v417_v34 = vpack.c.bf16 %v298_v32, %v297_v31  ;;  %v299_v35 = vld [vmem:[%s6117_s2 + $0x90] sm:$0xff]  ;;  %v300_v36 = vld [vmem:[%s6117_s2 + $0x98] sm:$0xff]  ;;  %v301_v37 = vld [vmem:[%s6117_s2 + $0xa0] sm:$0xff] }
  0x57   : > { %5162 = vmatpush3.bf16.msra.mxu0 %v5571_v2  ;;  %v302_v38 = vld [vmem:[%s6117_s2 + $0xa8] sm:$0xff]  ;;  %v418_v39 = vpack.c.bf16 %v300_v36, %v299_v35  ;;  %v303_v41 = vld [vmem:[%s6117_s2 + $0xb0] sm:$0xff]  ;;  %v304_v42 = vld [vmem:[%s6117_s2 + $0xb8] sm:$0xff] }
  0x58   : > { %5163 = vmatprep.subr.bf16.mxu0 %v5572_v3  ;;  %v419_v40 = vpack.c.bf16 %v302_v38, %v301_v37  ;;  %v305_v43 = vld [vmem:[%s6117_s2 + $0xc0] sm:$0xff]  ;;  %v306_v44 = vld [vmem:[%s6117_s2 + $0xc8] sm:$0xff]  ;;  %v420_v45 = vpack.c.bf16 %v304_v42, %v303_v41  ;;  %v307_v47 = vld [vmem:[%s6117_s2 + $0xd0] sm:$0xff] }
  0x59   : > { %v421_v46 = vpack.c.bf16 %v306_v44, %v305_v43  ;;  %v308_v48 = vld [vmem:[%s6117_s2 + $0xd8] sm:$0xff]  ;;  %v309_v49 = vld [vmem:[%s6117_s2 + $0xe0] sm:$0xff]  ;;  %v310_v50 = vld [vmem:[%s6117_s2 + $0xe8] sm:$0xff] }
  0x5a   : > { %v422_v51 = vpack.c.bf16 %v308_v48, %v307_v47  ;;  %v423_v52 = vpack.c.bf16 %v310_v50, %v309_v49  ;;  %v311_v53 = vld [vmem:[%s6117_s2 + $0xf0] sm:$0xff]  ;;  %v312_v54 = vld [vmem:[%s6117_s2 + $0xf8] sm:$0xff]  ;;  %v313_v55 = vld [vmem:[%s6117_s2 + $0x100] sm:$0xff] }
  0x5b   : > { %5164 = vmatpush3.bf16.msra.mxu0 %v5572_v3  ;;  %v314_v56 = vld [vmem:[%s6117_s2 + $0x108] sm:$0xff]  ;;  %v424_v57 = vpack.c.bf16 %v312_v54, %v311_v53  ;;  %v280_v59 = vld [vmem:[%s8597_s3 + $0x38] sm:$0xff]  ;;  %v279_v60 = vld [vmem:[%s8597_s3 + $0x30] sm:$0xff] }
  0x5c   : > { %5165 = vmatprep.subr.bf16.mxu0 %v5573_v7  ;;  %v425_v58 = vpack.c.bf16 %v314_v56, %v313_v55  ;;  %v315_v61 = vld [vmem:[%s6117_s2 + $0x110] sm:$0xff]  ;;  %v316_v62 = vld [vmem:[%s6117_s2 + $0x118] sm:$0xff]  ;;  %5301 = vmatprep.subr.mxu1 %v280_v59  ;;  %v317_v63 = vld [vmem:[%s6117_s2 + $0x120] sm:$0xff] }
  0x5d   : > { %v318_v0 = vld [vmem:[%s6117_s2 + $0x128] sm:$0xff]  ;;  %5302 = vmatpush3.msra.mxu1 %v280_v59  ;;  %v426_v1 = vpack.c.bf16 %v316_v62, %v315_v61  ;;  %v319_v4 = vld [vmem:[%s6117_s2 + $0x130] sm:$0xff]  ;;  %v320_v5 = vld [vmem:[%s6117_s2 + $0x138] sm:$0xff] }
  0x5e   : > { %5303 = vmatprep.subr.mxu1 %v279_v60  ;;  %v427_v2 = vpack.c.bf16 %v318_v0, %v317_v63  ;;  %v278_v3 = vld [vmem:[%s8597_s3 + $0x28] sm:$0xff]  ;;  %v277_v6 = vld [vmem:[%s8597_s3 + $0x20] sm:$0xff]  ;;  %v275_v12 = vld [vmem:[%s8597_s3 + $0x10] sm:$0xff] }
  0x5f   : > { %5166 = vmatpush3.bf16.msra.mxu0 %v5573_v7  ;;  %5304 = vmatpush3.msra.mxu1 %v279_v60  ;;  %v321_v7 = vld [vmem:[%s6117_s2 + $0x140] sm:$0xff]  ;;  %v274_v13 = vld [vmem:[%s8597_s3 + $0x8] sm:$0xff]  ;;  %v323_v14 = vld [vmem:[%s6117_s2 + $0x150] sm:$0xff] }
  0x60   : > { %5167 = vmatprep.subr.bf16.mxu0 %v5574_v8  ;;  %5305 = vmatprep.subr.mxu1 %v278_v3  ;;  %v325_v17 = vld [vmem:[%s6117_s2 + $0x160] sm:$0xff]  ;;  %v326_v18 = vld [vmem:[%s6117_s2 + $0x168] sm:$0xff]  ;;  %v355_v63 = vld [vmem:[%s6117_s2 + $0x250] sm:$0xff] }
  0x61   : > { %5306 = vmatpush3.msra.mxu1 %v278_v3  ;;  %v431_v20 = vpack.c.bf16 %v326_v18, %v325_v17  ;;  %v329_v23 = vld [vmem:[%s6117_s2 + $0x180] sm:$0xff]  ;;  %v330_v24 = vld [vmem:[%s6117_s2 + $0x188] sm:$0xff]  ;;  %v356_v0 = vld [vmem:[%s6117_s2 + $0x258] sm:$0xff] }
  0x62   : > { %5307 = vmatprep.subr.mxu1 %v277_v6  ;;  %v433_v26 = vpack.c.bf16 %v330_v24, %v329_v23  ;;  %v333_v29 = vld [vmem:[%s6117_s2 + $0x1a0] sm:$0xff]  ;;  %v334_v30 = vld [vmem:[%s6117_s2 + $0x1a8] sm:$0xff]  ;;  %v446_v3 = vpack.c.bf16 %v356_v0, %v355_v63  ;;  %v367_v17 = vld [vmem:[%s6117_s2 + $0x2b0] sm:$0xff] }
  0x63   : > { %5168 = vmatpush3.bf16.msra.mxu0 %v5574_v8  ;;  %v322_v8 = vld [vmem:[%s6117_s2 + $0x148] sm:$0xff]  ;;  %5308 = vmatpush3.msra.mxu1 %v277_v6  ;;  %v435_v32 = vpack.c.bf16 %v334_v30, %v333_v29  ;;  %v337_v35 = vld [vmem:[%s6117_s2 + $0x1c0] sm:$0xff]  ;;  %v360_v6 = vld [vmem:[%s6117_s2 + $0x278] sm:$0xff] }
  0x64   : > { %5169 = vmatprep.subr.bf16.mxu0 %v5575_v9  ;;  %v429_v11 = vpack.c.bf16 %v322_v8, %v321_v7  ;;  %v338_v36 = vld [vmem:[%s6117_s2 + $0x1c8] sm:$0xff]  ;;  %v341_v41 = vld [vmem:[%s6117_s2 + $0x1e0] sm:$0xff]  ;;  %v368_v18 = vld [vmem:[%s6117_s2 + $0x2b8] sm:$0xff] }
  0x65   : > { %v437_v38 = vpack.c.bf16 %v338_v36, %v337_v35  ;;  %v342_v42 = vld [vmem:[%s6117_s2 + $0x1e8] sm:$0xff]  ;;  %v345_v47 = vld [vmem:[%s6117_s2 + $0x200] sm:$0xff]  ;;  %v371_v23 = vld [vmem:[%s6117_s2 + $0x2d0] sm:$0xff] }
  0x66   : > { %v439_v44 = vpack.c.bf16 %v342_v42, %v341_v41  ;;  %v346_v48 = vld [vmem:[%s6117_s2 + $0x208] sm:$0xff]  ;;  %v349_v53 = vld [vmem:[%s6117_s2 + $0x220] sm:$0xff]  ;;  %v372_v24 = vld [vmem:[%s6117_s2 + $0x2d8] sm:$0xff] }
  0x67   : > { %5170 = vmatpush3.bf16.msra.mxu0 %v5575_v9  ;;  %v276_v9 = vld [vmem:[%s8597_s3 + $0x18] sm:$0xff]  ;;  %v441_v50 = vpack.c.bf16 %v346_v48, %v345_v47  ;;  %v350_v54 = vld [vmem:[%s6117_s2 + $0x228] sm:$0xff]  ;;  %v353_v59 = vld [vmem:[%s6117_s2 + $0x240] sm:$0xff] }
  0x68   : > { %5171 = vmatprep.subr.bf16.mxu0 %v5576_v10  ;;  %5309 = vmatprep.subr.mxu1 %v276_v9  ;;  %v443_v56 = vpack.c.bf16 %v350_v54, %v349_v53  ;;  %v354_v60 = vld [vmem:[%s6117_s2 + $0x248] sm:$0xff]  ;;  %v361_v7 = vld [vmem:[%s6117_s2 + $0x280] sm:$0xff]  ;;  %v375_v29 = vld [vmem:[%s6117_s2 + $0x2f0] sm:$0xff] }
  0x69   : > { %5310 = vmatpush3.msra.mxu1 %v276_v9  ;;  %v445_v62 = vpack.c.bf16 %v354_v60, %v353_v59  ;;  %v362_v8 = vld [vmem:[%s6117_s2 + $0x288] sm:$0xff]  ;;  %v376_v30 = vld [vmem:[%s6117_s2 + $0x2f8] sm:$0xff]  ;;  %v379_v35 = vld [vmem:[%s6117_s2 + $0x310] sm:$0xff] }
  0x6a   : > { %5311 = vmatprep.subr.mxu1 %v275_v12  ;;  %v380_v36 = vld [vmem:[%s6117_s2 + $0x318] sm:$0xff]  ;;  %v6277_v42 = vld [vmem:[#allocation5] ss:$0 sm:$0xff]  ;;  %v386_v47 = vld [vmem:[%s6117_s2 + $0x348] sm:$0xff] }
  0x6b   : > { %5172 = vmatpush3.bf16.msra.mxu0 %v5576_v10  ;;  %v428_v10 = vpack.c.bf16 %v320_v5, %v319_v4  ;;  %5312 = vmatpush3.msra.mxu1 %v275_v12  ;;  %v359_v5 = vld [vmem:[%s6117_s2 + $0x270] sm:$0xff]  ;;  %v364_v12 = vld [vmem:[%s6117_s2 + $0x298] sm:$0xff]  ;;  %v389_v0 = vld [vmem:[%s6117_s2 + $0x360] sm:$0xff] }
  0x6c   : > { %5313 = vmatprep.subr.mxu1 %v274_v13  ;;  %v448_v9 = vpack.c.bf16 %v360_v6, %v359_v5 }
  0x6d   : > { %5314 = vmatpush3.msra.mxu1 %v274_v13  ;;  %v365_v13 = vld [vmem:[%s6117_s2 + $0x2a0] sm:$0xff] }
  0x6e   : > { %5174 = vmatmul.mubr.bf16.vlgmr.msra.gmra.mxu0 %v410_v15  ;;  %v324_v15 = vld [vmem:[%s6117_s2 + $0x158] sm:$0xff] }
  0x6f   : > { %5177 = vmatprep.mubr.bf16.mxu0 %v411_v16  ;;  %v273_v16 = vld [vmem:[%s8597_s3] sm:$0xff]  ;;  %v430_v19 = vpack.c.bf16 %v324_v15, %v323_v14  ;;  %v366_v14 = vld [vmem:[%s6117_s2 + $0x2a8] sm:$0xff] }
  0x70   : > { %5315 = vmatprep.subr.mxu1 %v273_v16 }
  0x71   : > { %5316 = vmatpush3.msra.mxu1 %v273_v16  ;;  %v451_v16 = vpack.c.bf16 %v366_v14, %v365_v13 }
  0x76   : > { %5178 = vmatmul.mubr.bf16.gmra.mxu0 %v412_v21  ;;  %v327_v21 = vld [vmem:[%s6117_s2 + $0x170] sm:$0xff] }
  0x77   : > { %5181 = vmatprep.mubr.bf16.mxu0 %v413_v22  ;;  %v328_v22 = vld [vmem:[%s6117_s2 + $0x178] sm:$0xff] }
  0x78   : > { %v432_v25 = vpack.c.bf16 %v328_v22, %v327_v21  ;;  %v452_v21 = vpack.c.bf16 %v368_v18, %v367_v17 }
  0x7e   : > { %5182 = vmatmul.mubr.bf16.gmra.mxu0 %v414_v27  ;;  %v331_v27 = vld [vmem:[%s6117_s2 + $0x190] sm:$0xff] }
  0x7f   : > { %5185 = vmatprep.mubr.bf16.mxu0 %v415_v28  ;;  %v332_v28 = vld [vmem:[%s6117_s2 + $0x198] sm:$0xff] }
  0x80   : > { %v434_v31 = vpack.c.bf16 %v332_v28, %v331_v27  ;;  %v454_v27 = vpack.c.bf16 %v372_v24, %v371_v23  ;;  %v394_v23 = vld [vmem:[%s6117_s2 + $0x388] sm:$0xff] }
  0x86   : > { %5186 = vmatmul.mubr.bf16.gmra.mxu0 %v416_v33  ;;  %v335_v33 = vld [vmem:[%s6117_s2 + $0x1b0] sm:$0xff] }
  0x87   : > { %5189 = vmatprep.mubr.bf16.mxu0 %v417_v34  ;;  %v336_v34 = vld [vmem:[%s6117_s2 + $0x1b8] sm:$0xff] }
  0x88   : > { %v436_v37 = vpack.c.bf16 %v336_v34, %v335_v33  ;;  %v456_v33 = vpack.c.bf16 %v376_v30, %v375_v29 }
  0x8e   : > { %5190 = vmatmul.mubr.bf16.gmra.mxu0 %v418_v39  ;;  %v339_v39 = vld [vmem:[%s6117_s2 + $0x1d0] sm:$0xff] }
  0x8f   : > { %5193 = vmatprep.mubr.bf16.mxu0 %v419_v40  ;;  %v340_v40 = vld [vmem:[%s6117_s2 + $0x1d8] sm:$0xff] }
  0x90   : > { %v438_v43 = vpack.c.bf16 %v340_v40, %v339_v39  ;;  %v458_v39 = vpack.c.bf16 %v380_v36, %v379_v35 }
  0x96   : > { %5194 = vmatmul.mubr.bf16.gmra.mxu0 %v420_v45  ;;  %v343_v45 = vld [vmem:[%s6117_s2 + $0x1f0] sm:$0xff] }
  0x97   : > { %5197 = vmatprep.mubr.bf16.mxu0 %v421_v46  ;;  %v344_v46 = vld [vmem:[%s6117_s2 + $0x1f8] sm:$0xff] }
  0x98   : > { %v440_v49 = vpack.c.bf16 %v344_v46, %v343_v45  ;;  %v385_v46 = vld [vmem:[%s6117_s2 + $0x340] sm:$0xff] }
  0x99   : > { %v461_v53 = vpack.c.bf16 %v386_v47, %v385_v46  ;;  %v398_v46 = vld [vmem:[%s6117_s2 + $0x3a8] sm:$0xff] }
  0x9e   : > { %5198 = vmatmul.mubr.bf16.gmra.mxu0 %v422_v51  ;;  %v347_v51 = vld [vmem:[%s6117_s2 + $0x210] sm:$0xff] }
  0x9f   : > { %5201 = vmatprep.mubr.bf16.mxu0 %v423_v52  ;;  %v348_v52 = vld [vmem:[%s6117_s2 + $0x218] sm:$0xff] }
  0xa0   : > { %v442_v55 = vpack.c.bf16 %v348_v52, %v347_v51 }
  0xa6   : > { %5202 = vmatmul.mubr.bf16.gmra.mxu0 %v424_v57  ;;  %v351_v57 = vld [vmem:[%s6117_s2 + $0x230] sm:$0xff] }
  0xa7   : > { %5205 = vmatprep.mubr.bf16.mxu0 %v425_v58  ;;  %v352_v58 = vld [vmem:[%s6117_s2 + $0x238] sm:$0xff] }
  0xa8   : > { %v444_v61 = vpack.c.bf16 %v352_v58, %v351_v57 }
  0xae   : > { %5206 = vmatmul.mubr.bf16.gmra.mxu0 %v426_v1  ;;  %v357_v1 = vld [vmem:[%s6117_s2 + $0x260] sm:$0xff] }
  0xaf   : > { %5209 = vmatprep.mubr.bf16.mxu0 %v427_v2  ;;  %v358_v2 = vld [vmem:[%s6117_s2 + $0x268] sm:$0xff] }
  0xb0   : > { %v447_v4 = vpack.c.bf16 %v358_v2, %v357_v1  ;;  %v390_v1 = vld [vmem:[%s6117_s2 + $0x368] sm:$0xff] }
  0xb6   : > { %5210 = vmatmul.mubr.bf16.gmra.mxu0 %v428_v10  ;;  %v449_v10 = vpack.c.bf16 %v362_v8, %v361_v7 }
  0xb7   : > { %5213 = vmatprep.mubr.bf16.mxu0 %v429_v11  ;;  %v363_v11 = vld [vmem:[%s6117_s2 + $0x290] sm:$0xff] }
  0xb8   : > { %v450_v15 = vpack.c.bf16 %v364_v12, %v363_v11 }
  0xbe   : > { %5214 = vmatmul.mubr.bf16.gmra.mxu0 %v430_v19  ;;  %v369_v19 = vld [vmem:[%s6117_s2 + $0x2c0] sm:$0xff] }
  0xbf   : > { %5217 = vmatprep.mubr.bf16.mxu0 %v431_v20  ;;  %v370_v20 = vld [vmem:[%s6117_s2 + $0x2c8] sm:$0xff] }
  0xc0   : > { %v453_v22 = vpack.c.bf16 %v370_v20, %v369_v19  ;;  %v391_v19 = vld [vmem:[%s6117_s2 + $0x370] sm:$0xff]  ;;  %v392_v20 = vld [vmem:[%s6117_s2 + $0x378] sm:$0xff] }
  0xc1   : > { %v464_v30 = vpack.c.bf16 %v392_v20, %v391_v19 }
  0xc6   : > { %5218 = vmatmul.mubr.bf16.gmra.mxu0 %v432_v25  ;;  %v373_v25 = vld [vmem:[%s6117_s2 + $0x2e0] sm:$0xff] }
  0xc7   : > { %5221 = vmatprep.mubr.bf16.mxu0 %v433_v26  ;;  %v374_v26 = vld [vmem:[%s6117_s2 + $0x2e8] sm:$0xff] }
  0xc8   : > { %v455_v28 = vpack.c.bf16 %v374_v26, %v373_v25 }
  0xce   : > { %5222 = vmatmul.mubr.bf16.gmra.mxu0 %v434_v31  ;;  %v377_v31 = vld [vmem:[%s6117_s2 + $0x300] sm:$0xff] }
  0xcf   : > { %5225 = vmatprep.mubr.bf16.mxu0 %v435_v32  ;;  %v378_v32 = vld [vmem:[%s6117_s2 + $0x308] sm:$0xff] }
  0xd0   : > { %v457_v34 = vpack.c.bf16 %v378_v32, %v377_v31 }
  0xd6   : > { %5226 = vmatmul.mubr.bf16.gmra.mxu0 %v436_v37  ;;  %v381_v37 = vld [vmem:[%s6117_s2 + $0x320] sm:$0xff] }
  0xd7   : > { %5229 = vmatprep.mubr.bf16.mxu0 %v437_v38  ;;  %v382_v38 = vld [vmem:[%s6117_s2 + $0x328] sm:$0xff] }
  0xd8   : > { %v459_v40 = vpack.c.bf16 %v382_v38, %v381_v37 }
  0xde   : > { %5230 = vmatmul.mubr.bf16.gmra.mxu0 %v438_v43  ;;  %v383_v43 = vld [vmem:[%s6117_s2 + $0x330] sm:$0xff] }
  0xdf   : > { %5233 = vmatprep.mubr.bf16.mxu0 %v439_v44  ;;  %v384_v44 = vld [vmem:[%s6117_s2 + $0x338] sm:$0xff] }
  0xe0   : > { %v460_v51 = vpack.c.bf16 %v384_v44, %v383_v43  ;;  %v396_v43 = vld [vmem:[%s6117_s2 + $0x398] sm:$0xff] }
  0xe6   : > { %5234 = vmatmul.mubr.bf16.gmra.mxu0 %v440_v49 }
  0xe7   : > { %5237 = vmatprep.mubr.bf16.mxu0 %v441_v50 }
  0xee   : > { %5238 = vmatmul.mubr.bf16.gmra.mxu0 %v442_v55 }
  0xef   : > { %5241 = vmatprep.mubr.bf16.mxu0 %v443_v56 }
  0xf6   : > { %5242 = vmatmul.mubr.bf16.gmra.mxu0 %v444_v61  ;;  %v387_v61 = vld [vmem:[%s6117_s2 + $0x350] sm:$0xff] }
  0xf7   : > { %5245 = vmatprep.mubr.bf16.mxu0 %v445_v62  ;;  %v388_v62 = vld [vmem:[%s6117_s2 + $0x358] sm:$0xff] }
  0xf8   : > { %v462_v8 = vpack.c.bf16 %v388_v62, %v387_v61 }
  0xfe   : > { %5246 = vmatmul.mubr.bf16.gmra.mxu0 %v446_v3 }
  0xff   : > { %5249 = vmatprep.mubr.bf16.mxu0 %v447_v4 }
 0x106   : > { %5250 = vmatmul.mubr.bf16.gmra.mxu0 %v448_v9 }
 0x107   : > { %5253 = vmatprep.mubr.bf16.mxu0 %v449_v10  ;;  %v463_v10 = vpack.c.bf16 %v390_v1, %v389_v0  ;;  %v399_v0 = vld [vmem:[%s6117_s2 + $0x3b0] sm:$0xff]  ;;  %v400_v1 = vld [vmem:[%s6117_s2 + $0x3b8] sm:$0xff] }
 0x10e   : > { %5254 = vmatmul.mubr.bf16.gmra.mxu0 %v450_v15 }
 0x10f   : > { %5257 = vmatprep.mubr.bf16.mxu0 %v451_v16 }
 0x116   : > { %5258 = vmatmul.mubr.bf16.gmra.mxu0 %v452_v21 }
 0x117   : > { %5261 = vmatprep.mubr.bf16.mxu0 %v453_v22  ;;  %v393_v22 = vld [vmem:[%s6117_s2 + $0x380] sm:$0xff] }
 0x118   : > { %v465_v32 = vpack.c.bf16 %v394_v23, %v393_v22  ;;  %v403_v22 = vld [vmem:[%s6117_s2 + $0x3d0] sm:$0xff]  ;;  %v404_v23 = vld [vmem:[%s6117_s2 + $0x3d8] sm:$0xff] }
 0x11e   : > { %5262 = vmatmul.mubr.bf16.gmra.mxu0 %v454_v27 }
 0x11f   : > { %5265 = vmatprep.mubr.bf16.mxu0 %v455_v28 }
 0x126   : > { %5266 = vmatmul.mubr.bf16.gmra.mxu0 %v456_v33 }
 0x127   : > { %5269 = vmatprep.mubr.bf16.mxu0 %v457_v34 }
 0x12e   : > { %v5175_v41 = vpop.f32.mrf.mxu0  ;;  %5270 = vmatmul.mubr.bf16.gmra.mxu0 %v458_v39 }
 0x12f   : > { %5273 = vmatprep.mubr.bf16.mxu0 %v459_v40  ;;  %v586_v49 = vadd.f32 %v5175_v41, %v6277_v42  ;;  %v395_v41 = vld [vmem:[%s6117_s2 + $0x390] sm:$0xff] }
 0x130   : > { %v577_v45 = vpop.f32.mrf.mxu0 }
 0x131   : > { %v578_v48 = vadd.f32 %v6277_v42, %v577_v45  ;;  %v1218_v58 = vmul.f32 0.2, %v586_v49  ;;  %vm1090_vm2 = vcmp.ge.f32.partialorder %v586_v49, 0.0  ;;  %v397_v45 = vld [vmem:[%s6117_s2 + $0x3a0] sm:$0xff] }
 0x132   : > { %v5176_v50 = vpop.f32.mrf.mxu0 }
 0x133   : > { %vm1088_vm0 = vcmp.ge.f32.partialorder %v578_v48, 0.0  ;;  %v1216_v52 = vmul.f32 0.2, %v578_v48  ;;  %v589_v55 = vadd.f32 %v5176_v50, %v6277_v42  ;;  %v1346_v7 = vsel %vm1090_vm2, %v586_v49, %v1218_v58 }
 0x134   : > { %v580_v54 = vpop.f32.mrf.mxu0 }
 0x135   : > { %v581_v56 = vadd.f32 %v6277_v42, %v580_v54  ;;  %v1344_v57 = vsel %vm1088_vm0, %v578_v48, %v1216_v52  ;;  %v1219_v2 = vmul.f32 0.2, %v589_v55  ;;  %vm1091_vm4 = vcmp.ge.f32.partialorder %v589_v55, 0.0 }
 0x136   : > { %v5179_v59 = vpop.f32.mrf.mxu0  ;;  %5274 = vmatmul.mubr.bf16.gmra.mxu0 %v460_v51  ;;  %5317 = vmatprep.mubr.msk.f32.mxu1 %vm1472_vm1, %v1344_v57 }
 0x137   : > { %v1217_v60 = vmul.f32 0.2, %v581_v56  ;;  %vm1089_vm3 = vcmp.ge.f32.partialorder %v581_v56, 0.0  ;;  %5277 = vmatprep.mubr.bf16.mxu0 %v461_v53  ;;  %v602_v5 = vadd.f32 %v5179_v59, %v6277_v42  ;;  %v1347_v14 = vsel %vm1091_vm4, %v589_v55, %v1219_v2 }
 0x138   : > { %v593_v63 = vpop.f32.mrf.mxu0  ;;  %v466_v53 = vpack.c.bf16 %v396_v43, %v395_v41  ;;  %v467_v55 = vpack.c.bf16 %v398_v46, %v397_v45  ;;  %v407_v45 = vld [vmem:[%s6117_s2 + $0x3f0] sm:$0xff]  ;;  %v408_v46 = vld [vmem:[%s6117_s2 + $0x3f8] sm:$0xff] }
 0x139   : > { %v594_v3 = vadd.f32 %v6277_v42, %v593_v63  ;;  %v1345_v4 = vsel %vm1089_vm3, %v581_v56, %v1217_v60  ;;  %v1222_v16 = vmul.f32 0.2, %v602_v5  ;;  %vm1094_vm6 = vcmp.ge.f32.partialorder %v602_v5, 0.0 }
 0x13a   : > { %v5180_v6 = vpop.f32.mrf.mxu0  ;;  %5318 = vmatmul.mubr.msk.f32.vlgmr.msra.gmra.mxu1 %vm1472_vm1, %v1345_v4  ;;  %v402_v4 = vld [vmem:[%s6117_s2 + $0x3c8] sm:$0xff] }
 0x13b   : > { %vm1092_vm5 = vcmp.ge.f32.partialorder %v594_v3, 0.0  ;;  %v1220_v9 = vmul.f32 0.2, %v594_v3  ;;  %5320 = vmatprep.mubr.msk.f32.mxu1 %vm1472_vm1, %v1346_v7  ;;  %v605_v12 = vadd.f32 %v5180_v6, %v6277_v42  ;;  %v1350_v29 = vsel %vm1094_vm6, %v602_v5, %v1222_v16 }
 0x13c   : > { %v596_v11 = vpop.f32.mrf.mxu0 }
 0x13d   : > { %v597_v13 = vadd.f32 %v6277_v42, %v596_v11  ;;  %v1348_v15 = vsel %vm1092_vm5, %v594_v3, %v1220_v9  ;;  %v1223_v24 = vmul.f32 0.2, %v605_v12  ;;  %vm1095_vm8 = vcmp.ge.f32.partialorder %v605_v12, 0.0  ;;  %v401_v3 = vld [vmem:[%s6117_s2 + $0x3c0] sm:$0xff] }
 0x13e   : > { %v5183_v17 = vpop.f32.mrf.mxu0  ;;  %5278 = vmatmul.mubr.bf16.gmra.mxu0 %v462_v8  ;;  %5321 = vmatmul.mubr.msk.f32.gmra.mxu1 %vm1472_vm1, %v1347_v14  ;;  %v468_v11 = vpack.c.bf16 %v400_v1, %v399_v0 }
 0x13f   : > { %v1221_v18 = vmul.f32 0.2, %v597_v13  ;;  %5323 = vmatprep.mubr.msk.f32.mxu1 %vm1472_vm1, %v1348_v15  ;;  %vm1093_vm7 = vcmp.ge.f32.partialorder %v597_v13, 0.0  ;;  %5281 = vmatprep.mubr.bf16.mxu0 %v463_v10  ;;  %v618_v27 = vadd.f32 %v5183_v17, %v6277_v42  ;;  %v1351_v36 = vsel %vm1095_vm8, %v605_v12, %v1223_v24 }
 0x140   : > { %v609_v21 = vpop.f32.mrf.mxu0 }
 0x141   : > { %v610_v25 = vadd.f32 %v6277_v42, %v609_v21  ;;  %v1349_v26 = vsel %vm1093_vm7, %v597_v13, %v1221_v18  ;;  %v1226_v38 = vmul.f32 0.2, %v618_v27  ;;  %vm1098_vm10 = vcmp.ge.f32.partialorder %v618_v27, 0.0 }
 0x142   : > { %v5184_v28 = vpop.f32.mrf.mxu0  ;;  %5324 = vmatmul.mubr.msk.f32.gmra.mxu1 %vm1472_vm1, %v1349_v26  ;;  %v469_v13 = vpack.c.bf16 %v402_v4, %v401_v3  ;;  %v406_v26 = vld [vmem:[%s6117_s2 + $0x3e8] sm:$0xff] }
 0x143   : > { %vm1096_vm9 = vcmp.ge.f32.partialorder %v610_v25, 0.0  ;;  %v1224_v31 = vmul.f32 0.2, %v610_v25  ;;  %5326 = vmatprep.mubr.msk.f32.mxu1 %vm1472_vm1, %v1350_v29  ;;  %v621_v34 = vadd.f32 %v5184_v28, %v6277_v42  ;;  %v1354_v52 = vsel %vm1098_vm10, %v618_v27, %v1226_v38 }
 0x144   : > { %v612_v33 = vpop.f32.mrf.mxu0 }
 0x145   : > { %v613_v35 = vadd.f32 %v6277_v42, %v612_v33  ;;  %v1352_v37 = vsel %vm1096_vm9, %v610_v25, %v1224_v31  ;;  %v1227_v47 = vmul.f32 0.2, %v621_v34  ;;  %vm1099_vm12 = vcmp.ge.f32.partialorder %v621_v34, 0.0  ;;  %v405_v25 = vld [vmem:[%s6117_s2 + $0x3e0] sm:$0xff] }
 0x146   : > { %v5187_v39 = vpop.f32.mrf.mxu0  ;;  %5282 = vmatmul.mubr.bf16.gmra.mxu0 %v464_v30  ;;  %5327 = vmatmul.mubr.msk.f32.gmra.mxu1 %vm1472_vm1, %v1351_v36  ;;  %v470_v33 = vpack.c.bf16 %v404_v23, %v403_v22 }
 0x147   : > { %v1225_v40 = vmul.f32 0.2, %v613_v35  ;;  %5329 = vmatprep.mubr.msk.f32.mxu1 %vm1472_vm1, %v1352_v37  ;;  %vm1097_vm11 = vcmp.ge.f32.partialorder %v613_v35, 0.0  ;;  %5285 = vmatprep.mubr.bf16.mxu0 %v465_v32  ;;  %v634_v50 = vadd.f32 %v5187_v39, %v6277_v42  ;;  %v1355_v59 = vsel %vm1099_vm12, %v621_v34, %v1227_v47 }
 0x148   : > { %v625_v44 = vpop.f32.mrf.mxu0 }
 0x149   : > { %v626_v48 = vadd.f32 %v6277_v42, %v625_v44  ;;  %v1353_v49 = vsel %vm1097_vm11, %v613_v35, %v1225_v40  ;;  %v1230_v61 = vmul.f32 0.2, %v634_v50  ;;  %vm1102_vm14 = vcmp.ge.f32.partialorder %v634_v50, 0.0 }
 0x14a   : > { %v5188_v51 = vpop.f32.mrf.mxu0  ;;  %5330 = vmatmul.mubr.msk.f32.gmra.mxu1 %vm1472_vm1, %v1353_v49  ;;  %v471_v35 = vpack.c.bf16 %v406_v26, %v405_v25 }
 0x14b   : > { %vm1100_vm13 = vcmp.ge.f32.partialorder %v626_v48, 0.0  ;;  %v1228_v54 = vmul.f32 0.2, %v626_v48  ;;  %5332 = vmatprep.mubr.msk.f32.mxu1 %vm1472_vm1, %v1354_v52  ;;  %v637_v57 = vadd.f32 %v5188_v51, %v6277_v42  ;;  %v1358_v10 = vsel %vm1102_vm14, %v634_v50, %v1230_v61 }
 0x14c   : > { %v628_v56 = vpop.f32.mrf.mxu0 }
 0x14d   : > { %v629_v58 = vadd.f32 %v6277_v42, %v628_v56  ;;  %v1356_v60 = vsel %vm1100_vm13, %v626_v48, %v1228_v54  ;;  %v1231_v5 = vmul.f32 0.2, %v637_v57  ;;  %vm1103_vm0 = vcmp.ge.f32.partialorder %v637_v57, 0.0 }
 0x14e   : > { %v5191_v62 = vpop.f32.mrf.mxu0  ;;  %5286 = vmatmul.mubr.bf16.gmra.mxu0 %v466_v53  ;;  %5333 = vmatmul.mubr.msk.f32.gmra.mxu1 %vm1472_vm1, %v1355_v59  ;;  %v472_v54 = vpack.c.bf16 %v408_v46, %v407_v45 }
 0x14f   : > { %v1229_v63 = vmul.f32 0.2, %v629_v58  ;;  %5335 = vmatprep.mubr.msk.f32.mxu1 %vm1472_vm1, %v1356_v60  ;;  %vm1101_vm15 = vcmp.ge.f32.partialorder %v629_v58, 0.0  ;;  %5289 = vmatprep.mubr.bf16.mxu0 %v467_v55  ;;  %v650_v8 = vadd.f32 %v5191_v62, %v6277_v42  ;;  %v1359_v17 = vsel %vm1103_vm0, %v637_v57, %v1231_v5 }
 0x150   : > { %v641_v2 = vpop.f32.mrf.mxu0 }
 0x151   : > { %v642_v6 = vadd.f32 %v6277_v42, %v641_v2  ;;  %v1357_v7 = vsel %vm1101_vm15, %v629_v58, %v1229_v63  ;;  %v1234_v19 = vmul.f32 0.2, %v650_v8  ;;  %vm1106_vm3 = vcmp.ge.f32.partialorder %v650_v8, 0.0 }
 0x152   : > { %v5192_v9 = vpop.f32.mrf.mxu0  ;;  %5336 = vmatmul.mubr.msk.f32.gmra.mxu1 %vm1472_vm1, %v1357_v7 }
 0x153   : > { %vm1104_vm2 = vcmp.ge.f32.partialorder %v642_v6, 0.0  ;;  %v1232_v12 = vmul.f32 0.2, %v642_v6  ;;  %5338 = vmatprep.mubr.msk.f32.mxu1 %vm1472_vm1, %v1358_v10  ;;  %v653_v15 = vadd.f32 %v5192_v9, %v6277_v42  ;;  %v1362_v32 = vsel %vm1106_vm3, %v650_v8, %v1234_v19 }
 0x154   : > { %v644_v14 = vpop.f32.mrf.mxu0 }
 0x155   : > { %v645_v16 = vadd.f32 %v6277_v42, %v644_v14  ;;  %v1360_v18 = vsel %vm1104_vm2, %v642_v6, %v1232_v12  ;;  %v1235_v27 = vmul.f32 0.2, %v653_v15  ;;  %vm1107_vm5 = vcmp.ge.f32.partialorder %v653_v15, 0.0 }
 0x156   : > { %v5195_v20 = vpop.f32.mrf.mxu0  ;;  %5290 = vmatmul.mubr.bf16.gmra.mxu0 %v468_v11  ;;  %5339 = vmatmul.mubr.msk.f32.gmra.mxu1 %vm1472_vm1, %v1359_v17 }
 0x157   : > { %vm1105_vm4 = vcmp.ge.f32.partialorder %v645_v16, 0.0  ;;  %v1233_v21 = vmul.f32 0.2, %v645_v16  ;;  %5341 = vmatprep.mubr.msk.f32.mxu1 %vm1472_vm1, %v1360_v18  ;;  %5293 = vmatprep.mubr.bf16.mxu0 %v469_v13  ;;  %v666_v30 = vadd.f32 %v5195_v20, %v6277_v42  ;;  %v1363_v39 = vsel %vm1107_vm5, %v653_v15, %v1235_v27 }
 0x158   : > { %v657_v24 = vpop.f32.mrf.mxu0 }
 0x159   : > { %v658_v28 = vadd.f32 %v6277_v42, %v657_v24  ;;  %v1361_v29 = vsel %vm1105_vm4, %v645_v16, %v1233_v21  ;;  %v1238_v41 = vmul.f32 0.2, %v666_v30  ;;  %vm1110_vm7 = vcmp.ge.f32.partialorder %v666_v30, 0.0 }
 0x15a   : > { %v5196_v31 = vpop.f32.mrf.mxu0  ;;  %5342 = vmatmul.mubr.msk.f32.gmra.mxu1 %vm1472_vm1, %v1361_v29 }
 0x15b   : > { %vm1108_vm6 = vcmp.ge.f32.partialorder %v658_v28, 0.0  ;;  %v1236_v34 = vmul.f32 0.2, %v658_v28  ;;  %5344 = vmatprep.mubr.msk.f32.mxu1 %vm1472_vm1, %v1362_v32  ;;  %v669_v37 = vadd.f32 %v5196_v31, %v6277_v42  ;;  %v1366_v53 = vsel %vm1110_vm7, %v666_v30, %v1238_v41 }
 0x15c   : > { %v660_v36 = vpop.f32.mrf.mxu0 }
 0x15d   : > { %v661_v38 = vadd.f32 %v6277_v42, %v660_v36  ;;  %v1364_v40 = vsel %vm1108_vm6, %v658_v28, %v1236_v34  ;;  %v1239_v48 = vmul.f32 0.2, %v669_v37  ;;  %vm1111_vm9 = vcmp.ge.f32.partialorder %v669_v37, 0.0 }
 0x15e   : > { %v5199_v43 = vpop.f32.mrf.mxu0  ;;  %5294 = vmatmul.mubr.bf16.gmra.mxu0 %v470_v33  ;;  %5345 = vmatmul.mubr.msk.f32.gmra.mxu1 %vm1472_vm1, %v1363_v39 }
 0x15f   : > { %vm1109_vm8 = vcmp.ge.f32.partialorder %v661_v38, 0.0  ;;  %v1237_v44 = vmul.f32 0.2, %v661_v38  ;;  %5347 = vmatprep.mubr.msk.f32.mxu1 %vm1472_vm1, %v1364_v40  ;;  %5297 = vmatprep.mubr.bf16.mxu0 %v471_v35  ;;  %v682_v51 = vadd.f32 %v5199_v43, %v6277_v42  ;;  %v1367_v59 = vsel %vm1111_vm9, %v669_v37, %v1239_v48 }
 0x160   : > { %v673_v47 = vpop.f32.mrf.mxu0 }
 0x161   : > { %v674_v49 = vadd.f32 %v6277_v42, %v673_v47  ;;  %v1365_v50 = vsel %vm1109_vm8, %v661_v38, %v1237_v44  ;;  %v1242_v61 = vmul.f32 0.2, %v682_v51  ;;  %vm1114_vm11 = vcmp.ge.f32.partialorder %v682_v51, 0.0 }
 0x162   : > { %v5200_v52 = vpop.f32.mrf.mxu0  ;;  %5348 = vmatmul.mubr.msk.f32.gmra.mxu1 %vm1472_vm1, %v1365_v50 }
 0x163   : > { %vm1112_vm10 = vcmp.ge.f32.partialorder %v674_v49, 0.0  ;;  %v1240_v55 = vmul.f32 0.2, %v674_v49  ;;  %5350 = vmatprep.mubr.msk.f32.mxu1 %vm1472_vm1, %v1366_v53  ;;  %v685_v57 = vadd.f32 %v5200_v52, %v6277_v42  ;;  %v1370_v6 = vsel %vm1114_vm11, %v682_v51, %v1242_v61 }
 0x164   : > { %v676_v56 = vpop.f32.mrf.mxu0 }
 0x165   : > { %v677_v58 = vadd.f32 %v6277_v42, %v676_v56  ;;  %v1368_v60 = vsel %vm1112_vm10, %v674_v49, %v1240_v55  ;;  %v1243_v1 = vmul.f32 0.2, %v685_v57  ;;  %vm1115_vm13 = vcmp.ge.f32.partialorder %v685_v57, 0.0 }
 0x166   : > { %v5203_v62 = vpop.f32.mrf.mxu0  ;;  %5298 = vmatmul.mubr.bf16.gmra.mxu0 %v472_v54  ;;  %5351 = vmatmul.mubr.msk.f32.gmra.mxu1 %vm1472_vm1, %v1367_v59 }
 0x167   : > { %vm1113_vm12 = vcmp.ge.f32.partialorder %v677_v58, 0.0  ;;  %v1241_v63 = vmul.f32 0.2, %v677_v58  ;;  %5353 = vmatprep.mubr.msk.f32.mxu1 %vm1472_vm1, %v1368_v60  ;;  %v698_v4 = vadd.f32 %v5203_v62, %v6277_v42  ;;  %v1371_v11 = vsel %vm1115_vm13, %v685_v57, %v1243_v1 }
 0x168   : > { %v689_v0 = vpop.f32.mrf.mxu0 }
 0x169   : > { %v690_v2 = vadd.f32 %v6277_v42, %v689_v0  ;;  %v1369_v3 = vsel %vm1113_vm12, %v677_v58, %v1241_v63  ;;  %v1246_v13 = vmul.f32 0.2, %v698_v4  ;;  %vm1118_vm15 = vcmp.ge.f32.partialorder %v698_v4, 0.0 }
 0x16a   : > { %v5204_v5 = vpop.f32.mrf.mxu0  ;;  %5354 = vmatmul.mubr.msk.f32.gmra.mxu1 %vm1472_vm1, %v1369_v3 }
 0x16b   : > { %vm1116_vm14 = vcmp.ge.f32.partialorder %v690_v2, 0.0  ;;  %v1244_v7 = vmul.f32 0.2, %v690_v2  ;;  %5356 = vmatprep.mubr.msk.f32.mxu1 %vm1472_vm1, %v1370_v6  ;;  %v701_v9 = vadd.f32 %v5204_v5, %v6277_v42  ;;  %v1374_v22 = vsel %vm1118_vm15, %v698_v4, %v1246_v13 }
 0x16c   : > { %v692_v8 = vpop.f32.mrf.mxu0 }
 0x16d   : > { %v693_v10 = vadd.f32 %v6277_v42, %v692_v8  ;;  %v1372_v12 = vsel %vm1116_vm14, %v690_v2, %v1244_v7  ;;  %v1247_v17 = vmul.f32 0.2, %v701_v9  ;;  %vm1119_vm2 = vcmp.ge.f32.partialorder %v701_v9, 0.0 }
 0x16e   : > { %v5207_v14 = vpop.f32.mrf.mxu0  ;;  %5357 = vmatmul.mubr.msk.f32.gmra.mxu1 %vm1472_vm1, %v1371_v11 }
 0x16f   : > { %vm1117_vm0 = vcmp.ge.f32.partialorder %v693_v10, 0.0  ;;  %v1245_v15 = vmul.f32 0.2, %v693_v10  ;;  %5359 = vmatprep.mubr.msk.f32.mxu1 %vm1472_vm1, %v1372_v12  ;;  %v714_v20 = vadd.f32 %v5207_v14, %v6277_v42  ;;  %v1375_v27 = vsel %vm1119_vm2, %v701_v9, %v1247_v17 }
 0x170   : > { %v705_v16 = vpop.f32.mrf.mxu0 }
 0x171   : > { %v706_v18 = vadd.f32 %v6277_v42, %v705_v16  ;;  %v1373_v19 = vsel %vm1117_vm0, %v693_v10, %v1245_v15  ;;  %v1250_v29 = vmul.f32 0.2, %v714_v20  ;;  %vm1122_vm4 = vcmp.ge.f32.partialorder %v714_v20, 0.0 }
 0x172   : > { %v5208_v21 = vpop.f32.mrf.mxu0  ;;  %5360 = vmatmul.mubr.msk.f32.gmra.mxu1 %vm1472_vm1, %v1373_v19 }
 0x173   : > { %vm1120_vm3 = vcmp.ge.f32.partialorder %v706_v18, 0.0  ;;  %v1248_v23 = vmul.f32 0.2, %v706_v18  ;;  %5362 = vmatprep.mubr.msk.f32.mxu1 %vm1472_vm1, %v1374_v22  ;;  %v717_v25 = vadd.f32 %v5208_v21, %v6277_v42  ;;  %v1378_v38 = vsel %vm1122_vm4, %v714_v20, %v1250_v29 }
 0x174   : > { %v708_v24 = vpop.f32.mrf.mxu0 }
 0x175   : > { %v709_v26 = vadd.f32 %v6277_v42, %v708_v24  ;;  %v1376_v28 = vsel %vm1120_vm3, %v706_v18, %v1248_v23  ;;  %v1251_v33 = vmul.f32 0.2, %v717_v25  ;;  %vm1123_vm6 = vcmp.ge.f32.partialorder %v717_v25, 0.0 }
 0x176   : > { %v5211_v30 = vpop.f32.mrf.mxu0  ;;  %5363 = vmatmul.mubr.msk.f32.gmra.mxu1 %vm1472_vm1, %v1375_v27 }
 0x177   : > { %vm1121_vm5 = vcmp.ge.f32.partialorder %v709_v26, 0.0  ;;  %v1249_v31 = vmul.f32 0.2, %v709_v26  ;;  %5365 = vmatprep.mubr.msk.f32.mxu1 %vm1472_vm1, %v1376_v28  ;;  %v730_v36 = vadd.f32 %v5211_v30, %v6277_v42  ;;  %v1379_v44 = vsel %vm1123_vm6, %v717_v25, %v1251_v33 }
 0x178   : > { %v721_v32 = vpop.f32.mrf.mxu0 }
 0x179   : > { %v722_v34 = vadd.f32 %v6277_v42, %v721_v32  ;;  %v1377_v35 = vsel %vm1121_vm5, %v709_v26, %v1249_v31  ;;  %v1254_v46 = vmul.f32 0.2, %v730_v36  ;;  %vm1126_vm8 = vcmp.ge.f32.partialorder %v730_v36, 0.0 }
 0x17a   : > { %v5212_v37 = vpop.f32.mrf.mxu0  ;;  %5366 = vmatmul.mubr.msk.f32.gmra.mxu1 %vm1472_vm1, %v1377_v35 }
 0x17b   : > { %vm1124_vm7 = vcmp.ge.f32.partialorder %v722_v34, 0.0  ;;  %v1252_v39 = vmul.f32 0.2, %v722_v34  ;;  %5368 = vmatprep.mubr.msk.f32.mxu1 %vm1472_vm1, %v1378_v38  ;;  %v733_v41 = vadd.f32 %v5212_v37, %v6277_v42  ;;  %v1382_v55 = vsel %vm1126_vm8, %v730_v36, %v1254_v46 }
 0x17c   : > { %v724_v40 = vpop.f32.mrf.mxu0 }
 0x17d   : > { %v725_v43 = vadd.f32 %v6277_v42, %v724_v40  ;;  %v1380_v45 = vsel %vm1124_vm7, %v722_v34, %v1252_v39  ;;  %v1255_v50 = vmul.f32 0.2, %v733_v41  ;;  %vm1127_vm10 = vcmp.ge.f32.partialorder %v733_v41, 0.0 }
 0x17e   : > { %v5215_v47 = vpop.f32.mrf.mxu0  ;;  %5369 = vmatmul.mubr.msk.f32.gmra.mxu1 %vm1472_vm1, %v1379_v44 }
 0x17f   : > { %vm1125_vm9 = vcmp.ge.f32.partialorder %v725_v43, 0.0  ;;  %v1253_v48 = vmul.f32 0.2, %v725_v43  ;;  %5371 = vmatprep.mubr.msk.f32.mxu1 %vm1472_vm1, %v1380_v45  ;;  %v746_v53 = vadd.f32 %v5215_v47, %v6277_v42  ;;  %v1383_v60 = vsel %vm1127_vm10, %v733_v41, %v1255_v50 }
 0x180   : > { %v737_v49 = vpop.f32.mrf.mxu0 }
 0x181   : > { %v738_v51 = vadd.f32 %v6277_v42, %v737_v49  ;;  %v1381_v52 = vsel %vm1125_vm9, %v725_v43, %v1253_v48  ;;  %v1258_v62 = vmul.f32 0.2, %v746_v53  ;;  %vm1130_vm12 = vcmp.ge.f32.partialorder %v746_v53, 0.0 }
 0x182   : > { %v5216_v54 = vpop.f32.mrf.mxu0  ;;  %5372 = vmatmul.mubr.msk.f32.gmra.mxu1 %vm1472_vm1, %v1381_v52 }
 0x183   : > { %vm1128_vm11 = vcmp.ge.f32.partialorder %v738_v51, 0.0  ;;  %v1256_v56 = vmul.f32 0.2, %v738_v51  ;;  %5374 = vmatprep.mubr.msk.f32.mxu1 %vm1472_vm1, %v1382_v55  ;;  %v749_v58 = vadd.f32 %v5216_v54, %v6277_v42  ;;  %v1386_v7 = vsel %vm1130_vm12, %v746_v53, %v1258_v62 }
 0x184   : > { %v740_v57 = vpop.f32.mrf.mxu0 }
 0x185   : > { %v741_v59 = vadd.f32 %v6277_v42, %v740_v57  ;;  %v1384_v61 = vsel %vm1128_vm11, %v738_v51, %v1256_v56  ;;  %v1259_v2 = vmul.f32 0.2, %v749_v58  ;;  %vm1131_vm14 = vcmp.ge.f32.partialorder %v749_v58, 0.0 }
 0x186   : > { %v5219_v63 = vpop.f32.mrf.mxu0  ;;  %5375 = vmatmul.mubr.msk.f32.gmra.mxu1 %vm1472_vm1, %v1383_v60 }
 0x187   : > { %vm1129_vm13 = vcmp.ge.f32.partialorder %v741_v59, 0.0  ;;  %v1257_v0 = vmul.f32 0.2, %v741_v59  ;;  %5377 = vmatprep.mubr.msk.f32.mxu1 %vm1472_vm1, %v1384_v61  ;;  %v762_v5 = vadd.f32 %v5219_v63, %v6277_v42  ;;  %v1387_v12 = vsel %vm1131_vm14, %v749_v58, %v1259_v2 }
 0x188   : > { %v753_v1 = vpop.f32.mrf.mxu0 }
 0x189   : > { %v754_v3 = vadd.f32 %v6277_v42, %v753_v1  ;;  %v1385_v4 = vsel %vm1129_vm13, %v741_v59, %v1257_v0  ;;  %v1262_v14 = vmul.f32 0.2, %v762_v5  ;;  %vm1134_vm0 = vcmp.ge.f32.partialorder %v762_v5, 0.0 }
 0x18a   : > { %v5220_v6 = vpop.f32.mrf.mxu0  ;;  %5378 = vmatmul.mubr.msk.f32.gmra.mxu1 %vm1472_vm1, %v1385_v4 }
 0x18b   : > { %vm1132_vm15 = vcmp.ge.f32.partialorder %v754_v3, 0.0  ;;  %v1260_v8 = vmul.f32 0.2, %v754_v3  ;;  %5380 = vmatprep.mubr.msk.f32.mxu1 %vm1472_vm1, %v1386_v7  ;;  %v765_v10 = vadd.f32 %v5220_v6, %v6277_v42  ;;  %v1390_v23 = vsel %vm1134_vm0, %v762_v5, %v1262_v14 }
 0x18c   : > { %v756_v9 = vpop.f32.mrf.mxu0 }
 0x18d   : > { %v757_v11 = vadd.f32 %v6277_v42, %v756_v9  ;;  %v1388_v13 = vsel %vm1132_vm15, %v754_v3, %v1260_v8  ;;  %v1263_v18 = vmul.f32 0.2, %v765_v10  ;;  %vm1135_vm3 = vcmp.ge.f32.partialorder %v765_v10, 0.0 }
 0x18e   : > { %v5223_v15 = vpop.f32.mrf.mxu0  ;;  %5381 = vmatmul.mubr.msk.f32.gmra.mxu1 %vm1472_vm1, %v1387_v12 }
 0x18f   : > { %vm1133_vm2 = vcmp.ge.f32.partialorder %v757_v11, 0.0  ;;  %v1261_v16 = vmul.f32 0.2, %v757_v11  ;;  %5383 = vmatprep.mubr.msk.f32.mxu1 %vm1472_vm1, %v1388_v13  ;;  %v778_v21 = vadd.f32 %v5223_v15, %v6277_v42  ;;  %v1391_v28 = vsel %vm1135_vm3, %v765_v10, %v1263_v18 }
 0x190   : > { %v769_v17 = vpop.f32.mrf.mxu0 }
 0x191   : > { %v770_v19 = vadd.f32 %v6277_v42, %v769_v17  ;;  %v1389_v20 = vsel %vm1133_vm2, %v757_v11, %v1261_v16  ;;  %v1266_v30 = vmul.f32 0.2, %v778_v21  ;;  %vm1138_vm5 = vcmp.ge.f32.partialorder %v778_v21, 0.0 }
 0x192   : > { %v5224_v22 = vpop.f32.mrf.mxu0  ;;  %5384 = vmatmul.mubr.msk.f32.gmra.mxu1 %vm1472_vm1, %v1389_v20 }
 0x193   : > { %vm1136_vm4 = vcmp.ge.f32.partialorder %v770_v19, 0.0  ;;  %v1264_v24 = vmul.f32 0.2, %v770_v19  ;;  %5386 = vmatprep.mubr.msk.f32.mxu1 %vm1472_vm1, %v1390_v23  ;;  %v781_v26 = vadd.f32 %v5224_v22, %v6277_v42  ;;  %v1394_v39 = vsel %vm1138_vm5, %v778_v21, %v1266_v30 }
 0x194   : > { %v772_v25 = vpop.f32.mrf.mxu0 }
 0x195   : > { %v773_v27 = vadd.f32 %v6277_v42, %v772_v25  ;;  %v1392_v29 = vsel %vm1136_vm4, %v770_v19, %v1264_v24  ;;  %v1267_v34 = vmul.f32 0.2, %v781_v26  ;;  %vm1139_vm7 = vcmp.ge.f32.partialorder %v781_v26, 0.0 }
 0x196   : > { %v5227_v31 = vpop.f32.mrf.mxu0  ;;  %5387 = vmatmul.mubr.msk.f32.gmra.mxu1 %vm1472_vm1, %v1391_v28 }
 0x197   : > { %vm1137_vm6 = vcmp.ge.f32.partialorder %v773_v27, 0.0  ;;  %v1265_v32 = vmul.f32 0.2, %v773_v27  ;;  %5389 = vmatprep.mubr.msk.f32.mxu1 %vm1472_vm1, %v1392_v29  ;;  %v794_v37 = vadd.f32 %v5227_v31, %v6277_v42  ;;  %v1395_v45 = vsel %vm1139_vm7, %v781_v26, %v1267_v34 }
 0x198   : > { %v785_v33 = vpop.f32.mrf.mxu0 }
 0x199   : > { %v786_v35 = vadd.f32 %v6277_v42, %v785_v33  ;;  %v1393_v36 = vsel %vm1137_vm6, %v773_v27, %v1265_v32  ;;  %v1270_v47 = vmul.f32 0.2, %v794_v37  ;;  %vm1142_vm9 = vcmp.ge.f32.partialorder %v794_v37, 0.0 }
 0x19a   : > { %v5228_v38 = vpop.f32.mrf.mxu0  ;;  %5390 = vmatmul.mubr.msk.f32.gmra.mxu1 %vm1472_vm1, %v1393_v36 }
 0x19b   : > { %vm1140_vm8 = vcmp.ge.f32.partialorder %v786_v35, 0.0  ;;  %v1268_v40 = vmul.f32 0.2, %v786_v35  ;;  %5392 = vmatprep.mubr.msk.f32.mxu1 %vm1472_vm1, %v1394_v39  ;;  %v797_v43 = vadd.f32 %v5228_v38, %v6277_v42  ;;  %v1398_v56 = vsel %vm1142_vm9, %v794_v37, %v1270_v47 }
 0x19c   : > { %v788_v41 = vpop.f32.mrf.mxu0 }
 0x19d   : > { %v789_v44 = vadd.f32 %v6277_v42, %v788_v41  ;;  %v1396_v46 = vsel %vm1140_vm8, %v786_v35, %v1268_v40  ;;  %v1271_v51 = vmul.f32 0.2, %v797_v43  ;;  %vm1143_vm11 = vcmp.ge.f32.partialorder %v797_v43, 0.0 }
 0x19e   : > { %v5231_v48 = vpop.f32.mrf.mxu0  ;;  %5393 = vmatmul.mubr.msk.f32.gmra.mxu1 %vm1472_vm1, %v1395_v45 }
 0x19f   : > { %vm1141_vm10 = vcmp.ge.f32.partialorder %v789_v44, 0.0  ;;  %v1269_v49 = vmul.f32 0.2, %v789_v44  ;;  %5395 = vmatprep.mubr.msk.f32.mxu1 %vm1472_vm1, %v1396_v46  ;;  %v810_v54 = vadd.f32 %v5231_v48, %v6277_v42  ;;  %v1399_v61 = vsel %vm1143_vm11, %v797_v43, %v1271_v51 }
 0x1a0   : > { %v801_v50 = vpop.f32.mrf.mxu0 }
 0x1a1   : > { %v802_v52 = vadd.f32 %v6277_v42, %v801_v50  ;;  %v1397_v53 = vsel %vm1141_vm10, %v789_v44, %v1269_v49  ;;  %v1274_v63 = vmul.f32 0.2, %v810_v54  ;;  %vm1146_vm13 = vcmp.ge.f32.partialorder %v810_v54, 0.0 }
 0x1a2   : > { %v5232_v55 = vpop.f32.mrf.mxu0  ;;  %5396 = vmatmul.mubr.msk.f32.gmra.mxu1 %vm1472_vm1, %v1397_v53 }
 0x1a3   : > { %vm1144_vm12 = vcmp.ge.f32.partialorder %v802_v52, 0.0  ;;  %v1272_v57 = vmul.f32 0.2, %v802_v52  ;;  %5398 = vmatprep.mubr.msk.f32.mxu1 %vm1472_vm1, %v1398_v56  ;;  %v813_v59 = vadd.f32 %v5232_v55, %v6277_v42  ;;  %v1402_v8 = vsel %vm1146_vm13, %v810_v54, %v1274_v63 }
 0x1a4   : > { %v804_v58 = vpop.f32.mrf.mxu0 }
 0x1a5   : > { %v805_v60 = vadd.f32 %v6277_v42, %v804_v58  ;;  %v1400_v62 = vsel %vm1144_vm12, %v802_v52, %v1272_v57  ;;  %v1275_v3 = vmul.f32 0.2, %v813_v59  ;;  %vm1147_vm15 = vcmp.ge.f32.partialorder %v813_v59, 0.0 }
 0x1a6   : > { %v5235_v0 = vpop.f32.mrf.mxu0  ;;  %5399 = vmatmul.mubr.msk.f32.gmra.mxu1 %vm1472_vm1, %v1399_v61 }
 0x1a7   : > { %vm1145_vm14 = vcmp.ge.f32.partialorder %v805_v60, 0.0  ;;  %v1273_v1 = vmul.f32 0.2, %v805_v60  ;;  %5401 = vmatprep.mubr.msk.f32.mxu1 %vm1472_vm1, %v1400_v62  ;;  %v826_v6 = vadd.f32 %v5235_v0, %v6277_v42  ;;  %v1403_v13 = vsel %vm1147_vm15, %v813_v59, %v1275_v3 }
 0x1a8   : > { %v817_v2 = vpop.f32.mrf.mxu0 }
 0x1a9   : > { %v818_v4 = vadd.f32 %v6277_v42, %v817_v2  ;;  %v1401_v5 = vsel %vm1145_vm14, %v805_v60, %v1273_v1  ;;  %v1278_v15 = vmul.f32 0.2, %v826_v6  ;;  %vm1150_vm2 = vcmp.ge.f32.partialorder %v826_v6, 0.0 }
 0x1aa   : > { %v5236_v7 = vpop.f32.mrf.mxu0  ;;  %5402 = vmatmul.mubr.msk.f32.gmra.mxu1 %vm1472_vm1, %v1401_v5 }
 0x1ab   : > { %vm1148_vm0 = vcmp.ge.f32.partialorder %v818_v4, 0.0  ;;  %v1276_v9 = vmul.f32 0.2, %v818_v4  ;;  %5404 = vmatprep.mubr.msk.f32.mxu1 %vm1472_vm1, %v1402_v8  ;;  %v829_v11 = vadd.f32 %v5236_v7, %v6277_v42  ;;  %v1406_v24 = vsel %vm1150_vm2, %v826_v6, %v1278_v15 }
 0x1ac   : > { %v820_v10 = vpop.f32.mrf.mxu0 }
 0x1ad   : > { %v821_v12 = vadd.f32 %v6277_v42, %v820_v10  ;;  %v1404_v14 = vsel %vm1148_vm0, %v818_v4, %v1276_v9  ;;  %v1279_v19 = vmul.f32 0.2, %v829_v11  ;;  %vm1151_vm4 = vcmp.ge.f32.partialorder %v829_v11, 0.0 }
 0x1ae   : > { %v5239_v16 = vpop.f32.mrf.mxu0  ;;  %5405 = vmatmul.mubr.msk.f32.gmra.mxu1 %vm1472_vm1, %v1403_v13 }
 0x1af   : > { %vm1149_vm3 = vcmp.ge.f32.partialorder %v821_v12, 0.0  ;;  %v1277_v17 = vmul.f32 0.2, %v821_v12  ;;  %5407 = vmatprep.mubr.msk.f32.mxu1 %vm1472_vm1, %v1404_v14  ;;  %v842_v22 = vadd.f32 %v5239_v16, %v6277_v42  ;;  %v1407_v29 = vsel %vm1151_vm4, %v829_v11, %v1279_v19 }
 0x1b0   : > { %v833_v18 = vpop.f32.mrf.mxu0 }
 0x1b1   : > { %v834_v20 = vadd.f32 %v6277_v42, %v833_v18  ;;  %v1405_v21 = vsel %vm1149_vm3, %v821_v12, %v1277_v17  ;;  %v1282_v31 = vmul.f32 0.2, %v842_v22  ;;  %vm1154_vm6 = vcmp.ge.f32.partialorder %v842_v22, 0.0  ;;  %v6463_v12 = vld [vmem:[#allocation5] ss:$0 sm:$0xff] }
 0x1b2   : > { %v5240_v23 = vpop.f32.mrf.mxu0  ;;  %5408 = vmatmul.mubr.msk.f32.gmra.mxu1 %vm1472_vm1, %v1405_v21 }
 0x1b3   : > { %vm1152_vm5 = vcmp.ge.f32.partialorder %v834_v20, 0.0  ;;  %v1280_v25 = vmul.f32 0.2, %v834_v20  ;;  %5410 = vmatprep.mubr.msk.f32.mxu1 %vm1472_vm1, %v1406_v24  ;;  %v845_v27 = vadd.f32 %v5240_v23, %v6277_v42  ;;  %v1410_v40 = vsel %vm1154_vm6, %v842_v22, %v1282_v31 }
 0x1b4   : > { %v836_v26 = vpop.f32.mrf.mxu0 }
 0x1b5   : > { %v837_v28 = vadd.f32 %v6277_v42, %v836_v26  ;;  %v1408_v30 = vsel %vm1152_vm5, %v834_v20, %v1280_v25  ;;  %v1283_v35 = vmul.f32 0.2, %v845_v27  ;;  %vm1155_vm8 = vcmp.ge.f32.partialorder %v845_v27, 0.0 }
 0x1b6   : > { %v5243_v32 = vpop.f32.mrf.mxu0  ;;  %5411 = vmatmul.mubr.msk.f32.gmra.mxu1 %vm1472_vm1, %v1407_v29 }
 0x1b7   : > { %vm1153_vm7 = vcmp.ge.f32.partialorder %v837_v28, 0.0  ;;  %v1281_v33 = vmul.f32 0.2, %v837_v28  ;;  %5413 = vmatprep.mubr.msk.f32.mxu1 %vm1472_vm1, %v1408_v30  ;;  %v858_v38 = vadd.f32 %v5243_v32, %v6277_v42  ;;  %v1411_v46 = vsel %vm1155_vm8, %v845_v27, %v1283_v35 }
 0x1b8   : > { %v849_v34 = vpop.f32.mrf.mxu0 }
 0x1b9   : > { %v850_v36 = vadd.f32 %v6277_v42, %v849_v34  ;;  %v1409_v37 = vsel %vm1153_vm7, %v837_v28, %v1281_v33  ;;  %v1286_v48 = vmul.f32 0.2, %v858_v38  ;;  %vm1158_vm10 = vcmp.ge.f32.partialorder %v858_v38, 0.0 }
 0x1ba   : > { %v5244_v39 = vpop.f32.mrf.mxu0  ;;  %5414 = vmatmul.mubr.msk.f32.gmra.mxu1 %vm1472_vm1, %v1409_v37 }
 0x1bb   : > { %vm1156_vm9 = vcmp.ge.f32.partialorder %v850_v36, 0.0  ;;  %v1284_v41 = vmul.f32 0.2, %v850_v36  ;;  %5416 = vmatprep.mubr.msk.f32.mxu1 %vm1472_vm1, %v1410_v40  ;;  %v861_v44 = vadd.f32 %v5244_v39, %v6277_v42  ;;  %v1414_v57 = vsel %vm1158_vm10, %v858_v38, %v1286_v48 }
 0x1bc   : > { %v852_v43 = vpop.f32.mrf.mxu0 }
 0x1bd   : > { %v853_v45 = vadd.f32 %v6277_v42, %v852_v43  ;;  %v1412_v47 = vsel %vm1156_vm9, %v850_v36, %v1284_v41  ;;  %v1287_v52 = vmul.f32 0.2, %v861_v44  ;;  %vm1159_vm12 = vcmp.ge.f32.partialorder %v861_v44, 0.0 }
 0x1be   : > { %v5247_v49 = vpop.f32.mrf.mxu0  ;;  %5417 = vmatmul.mubr.msk.f32.gmra.mxu1 %vm1472_vm1, %v1411_v46 }
 0x1bf   : > { %vm1157_vm11 = vcmp.ge.f32.partialorder %v853_v45, 0.0  ;;  %v1285_v50 = vmul.f32 0.2, %v853_v45  ;;  %5419 = vmatprep.mubr.msk.f32.mxu1 %vm1472_vm1, %v1412_v47  ;;  %v874_v55 = vadd.f32 %v5247_v49, %v6277_v42  ;;  %v1415_v62 = vsel %vm1159_vm12, %v861_v44, %v1287_v52 }
 0x1c0   : > { %v865_v51 = vpop.f32.mrf.mxu0 }
 0x1c1   : > { %v866_v53 = vadd.f32 %v6277_v42, %v865_v51  ;;  %v1413_v54 = vsel %vm1157_vm11, %v853_v45, %v1285_v50  ;;  %v1290_v0 = vmul.f32 0.2, %v874_v55  ;;  %vm1162_vm14 = vcmp.ge.f32.partialorder %v874_v55, 0.0 }
 0x1c2   : > { %v5248_v56 = vpop.f32.mrf.mxu0  ;;  %5420 = vmatmul.mubr.msk.f32.gmra.mxu1 %vm1472_vm1, %v1413_v54 }
 0x1c3   : > { %vm1160_vm13 = vcmp.ge.f32.partialorder %v866_v53, 0.0  ;;  %v1288_v58 = vmul.f32 0.2, %v866_v53  ;;  %5422 = vmatprep.mubr.msk.f32.mxu1 %vm1472_vm1, %v1414_v57  ;;  %v877_v60 = vadd.f32 %v5248_v56, %v6277_v42  ;;  %v1418_v9 = vsel %vm1162_vm14, %v874_v55, %v1290_v0 }
 0x1c4   : > { %v868_v59 = vpop.f32.mrf.mxu0 }
 0x1c5   : > { %v869_v61 = vadd.f32 %v6277_v42, %v868_v59  ;;  %v1416_v63 = vsel %vm1160_vm13, %v866_v53, %v1288_v58  ;;  %v1291_v4 = vmul.f32 0.2, %v877_v60  ;;  %vm1163_vm0 = vcmp.ge.f32.partialorder %v877_v60, 0.0 }
 0x1c6   : > { %v5251_v1 = vpop.f32.mrf.mxu0  ;;  %5423 = vmatmul.mubr.msk.f32.gmra.mxu1 %vm1472_vm1, %v1415_v62 }
 0x1c7   : > { %vm1161_vm15 = vcmp.ge.f32.partialorder %v869_v61, 0.0  ;;  %v1289_v2 = vmul.f32 0.2, %v869_v61  ;;  %5425 = vmatprep.mubr.msk.f32.mxu1 %vm1472_vm1, %v1416_v63  ;;  %v890_v7 = vadd.f32 %v5251_v1, %v6277_v42  ;;  %v1419_v15 = vsel %vm1163_vm0, %v877_v60, %v1291_v4 }
 0x1c8   : > { %v881_v3 = vpop.f32.mrf.mxu0 }
 0x1c9   : > { %v882_v5 = vadd.f32 %v6277_v42, %v881_v3  ;;  %v1417_v6 = vsel %vm1161_vm15, %v869_v61, %v1289_v2  ;;  %v1294_v17 = vmul.f32 0.2, %v890_v7  ;;  %vm1166_vm3 = vcmp.ge.f32.partialorder %v890_v7, 0.0 }
 0x1ca   : > { %v5252_v8 = vpop.f32.mrf.mxu0  ;;  %5426 = vmatmul.mubr.msk.f32.gmra.mxu1 %vm1472_vm1, %v1417_v6 }
 0x1cb   : > { %vm1164_vm2 = vcmp.ge.f32.partialorder %v882_v5, 0.0  ;;  %v1292_v10 = vmul.f32 0.2, %v882_v5  ;;  %5428 = vmatprep.mubr.msk.f32.mxu1 %vm1472_vm1, %v1418_v9  ;;  %v893_v13 = vadd.f32 %v6463_v12, %v5252_v8  ;;  %v1422_v25 = vsel %vm1166_vm3, %v890_v7, %v1294_v17 }
 0x1cc   : > { %v884_v11 = vpop.f32.mrf.mxu0 }
 0x1cd   : > { %v885_v14 = vadd.f32 %v6463_v12, %v884_v11  ;;  %v1420_v16 = vsel %vm1164_vm2, %v882_v5, %v1292_v10  ;;  %v1295_v20 = vmul.f32 0.2, %v893_v13  ;;  %vm1167_vm5 = vcmp.ge.f32.partialorder %v893_v13, 0.0 }
 0x1ce   : > { %v5255_v18 = vpop.f32.mrf.mxu0  ;;  %5429 = vmatmul.mubr.msk.f32.gmra.mxu1 %vm1472_vm1, %v1419_v15 }
 0x1cf   : > { %vm1165_vm4 = vcmp.ge.f32.partialorder %v885_v14, 0.0  ;;  %v1293_v42 = vmul.f32 0.2, %v885_v14  ;;  %5431 = vmatprep.mubr.msk.f32.mxu1 %vm1472_vm1, %v1420_v16  ;;  %v906_v23 = vadd.f32 %v6463_v12, %v5255_v18  ;;  %v1423_v30 = vsel %vm1167_vm5, %v893_v13, %v1295_v20 }
 0x1d0   : > { %v897_v19 = vpop.f32.mrf.mxu0 }
 0x1d1   : > { %v898_v21 = vadd.f32 %v6463_v12, %v897_v19  ;;  %v1421_v22 = vsel %vm1165_vm4, %v885_v14, %v1293_v42  ;;  %v1298_v32 = vmul.f32 0.2, %v906_v23  ;;  %vm1170_vm7 = vcmp.ge.f32.partialorder %v906_v23, 0.0 }
 0x1d2   : > { %v5256_v24 = vpop.f32.mrf.mxu0  ;;  %5432 = vmatmul.mubr.msk.f32.gmra.mxu1 %vm1472_vm1, %v1421_v22 }
 0x1d3   : > { %vm1168_vm6 = vcmp.ge.f32.partialorder %v898_v21, 0.0  ;;  %v1296_v26 = vmul.f32 0.2, %v898_v21  ;;  %5434 = vmatprep.mubr.msk.f32.mxu1 %vm1472_vm1, %v1422_v25  ;;  %v909_v28 = vadd.f32 %v6463_v12, %v5256_v24  ;;  %v1426_v41 = vsel %vm1170_vm7, %v906_v23, %v1298_v32 }
 0x1d4   : > { %v900_v27 = vpop.f32.mrf.mxu0 }
 0x1d5   : > { %v901_v29 = vadd.f32 %v6463_v12, %v900_v27  ;;  %v1424_v31 = vsel %vm1168_vm6, %v898_v21, %v1296_v26  ;;  %v1299_v36 = vmul.f32 0.2, %v909_v28  ;;  %vm1171_vm9 = vcmp.ge.f32.partialorder %v909_v28, 0.0 }
 0x1d6   : > { %v5259_v33 = vpop.f32.mrf.mxu0  ;;  %5435 = vmatmul.mubr.msk.f32.gmra.mxu1 %vm1472_vm1, %v1423_v30 }
 0x1d7   : > { %vm1169_vm8 = vcmp.ge.f32.partialorder %v901_v29, 0.0  ;;  %v1297_v34 = vmul.f32 0.2, %v901_v29  ;;  %5437 = vmatprep.mubr.msk.f32.mxu1 %vm1472_vm1, %v1424_v31  ;;  %v922_v39 = vadd.f32 %v6463_v12, %v5259_v33  ;;  %v1427_v47 = vsel %vm1171_vm9, %v909_v28, %v1299_v36 }
 0x1d8   : > { %v913_v35 = vpop.f32.mrf.mxu0 }
 0x1d9   : > { %v914_v37 = vadd.f32 %v6463_v12, %v913_v35  ;;  %v1425_v38 = vsel %vm1169_vm8, %v901_v29, %v1297_v34  ;;  %v1302_v49 = vmul.f32 0.2, %v922_v39  ;;  %vm1174_vm11 = vcmp.ge.f32.partialorder %v922_v39, 0.0 }
 0x1da   : > { %v5260_v40 = vpop.f32.mrf.mxu0  ;;  %5438 = vmatmul.mubr.msk.f32.gmra.mxu1 %vm1472_vm1, %v1425_v38 }
 0x1db   : > { %vm1172_vm10 = vcmp.ge.f32.partialorder %v914_v37, 0.0  ;;  %v1300_v43 = vmul.f32 0.2, %v914_v37  ;;  %5440 = vmatprep.mubr.msk.f32.mxu1 %vm1472_vm1, %v1426_v41  ;;  %v925_v45 = vadd.f32 %v6463_v12, %v5260_v40  ;;  %v1430_v58 = vsel %vm1174_vm11, %v922_v39, %v1302_v49 }
 0x1dc   : > { %v916_v44 = vpop.f32.mrf.mxu0 }
 0x1dd   : > { %v917_v46 = vadd.f32 %v6463_v12, %v916_v44  ;;  %v1428_v48 = vsel %vm1172_vm10, %v914_v37, %v1300_v43  ;;  %v1303_v53 = vmul.f32 0.2, %v925_v45  ;;  %vm1175_vm13 = vcmp.ge.f32.partialorder %v925_v45, 0.0 }
 0x1de   : > { %v5263_v50 = vpop.f32.mrf.mxu0  ;;  %5441 = vmatmul.mubr.msk.f32.gmra.mxu1 %vm1472_vm1, %v1427_v47 }
 0x1df   : > { %vm1173_vm12 = vcmp.ge.f32.partialorder %v917_v46, 0.0  ;;  %v1301_v51 = vmul.f32 0.2, %v917_v46  ;;  %5443 = vmatprep.mubr.msk.f32.mxu1 %vm1472_vm1, %v1428_v48  ;;  %v938_v56 = vadd.f32 %v6463_v12, %v5263_v50  ;;  %v1431_v63 = vsel %vm1175_vm13, %v925_v45, %v1303_v53 }
 0x1e0   : > { %v929_v52 = vpop.f32.mrf.mxu0 }
 0x1e1   : > { %v930_v54 = vadd.f32 %v6463_v12, %v929_v52  ;;  %v1429_v55 = vsel %vm1173_vm12, %v917_v46, %v1301_v51  ;;  %v1306_v1 = vmul.f32 0.2, %v938_v56  ;;  %vm1178_vm15 = vcmp.ge.f32.partialorder %v938_v56, 0.0 }
 0x1e2   : > { %v5264_v57 = vpop.f32.mrf.mxu0  ;;  %5444 = vmatmul.mubr.msk.f32.gmra.mxu1 %vm1472_vm1, %v1429_v55 }
 0x1e3   : > { %vm1176_vm14 = vcmp.ge.f32.partialorder %v930_v54, 0.0  ;;  %v1304_v59 = vmul.f32 0.2, %v930_v54  ;;  %5446 = vmatprep.mubr.msk.f32.mxu1 %vm1472_vm1, %v1430_v58  ;;  %v941_v61 = vadd.f32 %v6463_v12, %v5264_v57  ;;  %v1434_v10 = vsel %vm1178_vm15, %v938_v56, %v1306_v1 }
 0x1e4   : > { %v932_v60 = vpop.f32.mrf.mxu0 }
 0x1e5   : > { %v933_v62 = vadd.f32 %v6463_v12, %v932_v60  ;;  %v1432_v0 = vsel %vm1176_vm14, %v930_v54, %v1304_v59  ;;  %v1307_v5 = vmul.f32 0.2, %v941_v61  ;;  %vm1179_vm2 = vcmp.ge.f32.partialorder %v941_v61, 0.0 }
 0x1e6   : > { %v5267_v2 = vpop.f32.mrf.mxu0  ;;  %5447 = vmatmul.mubr.msk.f32.gmra.mxu1 %vm1472_vm1, %v1431_v63 }
 0x1e7   : > { %vm1177_vm0 = vcmp.ge.f32.partialorder %v933_v62, 0.0  ;;  %v1305_v3 = vmul.f32 0.2, %v933_v62  ;;  %5449 = vmatprep.mubr.msk.f32.mxu1 %vm1472_vm1, %v1432_v0  ;;  %v954_v8 = vadd.f32 %v6463_v12, %v5267_v2  ;;  %v1435_v16 = vsel %vm1179_vm2, %v941_v61, %v1307_v5 }
 0x1e8   : > { %v945_v4 = vpop.f32.mrf.mxu0 }
 0x1e9   : > { %v946_v6 = vadd.f32 %v6463_v12, %v945_v4  ;;  %v1433_v7 = vsel %vm1177_vm0, %v933_v62, %v1305_v3  ;;  %v1310_v18 = vmul.f32 0.2, %v954_v8  ;;  %vm1182_vm4 = vcmp.ge.f32.partialorder %v954_v8, 0.0 }
 0x1ea   : > { %v5268_v9 = vpop.f32.mrf.mxu0  ;;  %5450 = vmatmul.mubr.msk.f32.gmra.mxu1 %vm1472_vm1, %v1433_v7 }
 0x1eb   : > { %vm1180_vm3 = vcmp.ge.f32.partialorder %v946_v6, 0.0  ;;  %v1308_v11 = vmul.f32 0.2, %v946_v6  ;;  %5452 = vmatprep.mubr.msk.f32.mxu1 %vm1472_vm1, %v1434_v10  ;;  %v957_v14 = vadd.f32 %v6463_v12, %v5268_v9  ;;  %v1438_v26 = vsel %vm1182_vm4, %v954_v8, %v1310_v18 }
 0x1ec   : > { %v948_v13 = vpop.f32.mrf.mxu0 }
 0x1ed   : > { %v949_v15 = vadd.f32 %v6463_v12, %v948_v13  ;;  %v1436_v17 = vsel %vm1180_vm3, %v946_v6, %v1308_v11  ;;  %v1311_v21 = vmul.f32 0.2, %v957_v14  ;;  %vm1183_vm6 = vcmp.ge.f32.partialorder %v957_v14, 0.0 }
 0x1ee   : > { %v5271_v42 = vpop.f32.mrf.mxu0  ;;  %5453 = vmatmul.mubr.msk.f32.gmra.mxu1 %vm1472_vm1, %v1435_v16 }
 0x1ef   : > { %vm1181_vm5 = vcmp.ge.f32.partialorder %v949_v15, 0.0  ;;  %v1309_v19 = vmul.f32 0.2, %v949_v15  ;;  %5455 = vmatprep.mubr.msk.f32.mxu1 %vm1472_vm1, %v1436_v17  ;;  %v970_v24 = vadd.f32 %v6463_v12, %v5271_v42  ;;  %v1439_v31 = vsel %vm1183_vm6, %v957_v14, %v1311_v21 }
 0x1f0   : > { %v961_v20 = vpop.f32.mrf.mxu0 }
 0x1f1   : > { %v962_v22 = vadd.f32 %v6463_v12, %v961_v20  ;;  %v1437_v23 = vsel %vm1181_vm5, %v949_v15, %v1309_v19  ;;  %v1314_v33 = vmul.f32 0.2, %v970_v24  ;;  %vm1186_vm8 = vcmp.ge.f32.partialorder %v970_v24, 0.0 }
 0x1f2   : > { %v5272_v25 = vpop.f32.mrf.mxu0  ;;  %5456 = vmatmul.mubr.msk.f32.gmra.mxu1 %vm1472_vm1, %v1437_v23 }
 0x1f3   : > { %vm1184_vm7 = vcmp.ge.f32.partialorder %v962_v22, 0.0  ;;  %v1312_v27 = vmul.f32 0.2, %v962_v22  ;;  %5458 = vmatprep.mubr.msk.f32.mxu1 %vm1472_vm1, %v1438_v26  ;;  %v973_v29 = vadd.f32 %v6463_v12, %v5272_v25  ;;  %v1442_v44 = vsel %vm1186_vm8, %v970_v24, %v1314_v33 }
 0x1f4   : > { %v964_v28 = vpop.f32.mrf.mxu0 }
 0x1f5   : > { %v965_v30 = vadd.f32 %v6463_v12, %v964_v28  ;;  %v1440_v32 = vsel %vm1184_vm7, %v962_v22, %v1312_v27  ;;  %v1315_v37 = vmul.f32 0.2, %v973_v29  ;;  %vm1187_vm10 = vcmp.ge.f32.partialorder %v973_v29, 0.0 }
 0x1f6   : > { %v5275_v34 = vpop.f32.mrf.mxu0  ;;  %5459 = vmatmul.mubr.msk.f32.gmra.mxu1 %vm1472_vm1, %v1439_v31 }
 0x1f7   : > { %vm1185_vm9 = vcmp.ge.f32.partialorder %v965_v30, 0.0  ;;  %v1313_v35 = vmul.f32 0.2, %v965_v30  ;;  %5461 = vmatprep.mubr.msk.f32.mxu1 %vm1472_vm1, %v1440_v32  ;;  %v986_v38 = vadd.f32 %v6463_v12, %v5275_v34  ;;  %v1443_v51 = vsel %vm1187_vm10, %v973_v29, %v1315_v37 }
 0x1f8   : > { %v977_v36 = vpop.f32.mrf.mxu0 }
 0x1f9   : > { %v978_v39 = vadd.f32 %v6463_v12, %v977_v36  ;;  %v1441_v40 = vsel %vm1185_vm9, %v965_v30, %v1313_v35  ;;  %v1318_v49 = vmul.f32 0.2, %v986_v38  ;;  %vm1190_vm12 = vcmp.ge.f32.partialorder %v986_v38, 0.0 }
 0x1fa   : > { %v5276_v41 = vpop.f32.mrf.mxu0  ;;  %v6511_v43 = vpop.f32.mrf.mxu1  ;;  %5462 = vmatmul.mubr.msk.f32.gmra.mxu1 %vm1472_vm1, %v1441_v40 }
 0x1fb   : > { %vm1188_vm11 = vcmp.ge.f32.partialorder %v978_v39, 0.0  ;;  %v1316_v45 = vmul.f32 0.2, %v978_v39  ;;  %5464 = vmatprep.mubr.msk.f32.mxu1 %vm1472_vm1, %v1442_v44  ;;  %v989_v46 = vadd.f32 %v6463_v12, %v5276_v41  ;;  %v1446_v61 = vsel %vm1190_vm12, %v986_v38, %v1318_v49 }
 0x1fc   : > { %v980_v47 = vpop.f32.mrf.mxu0  ;;  %v6516_v48 = vpop.f32.mrf.mxu1 }
 0x1fd   : > { %v981_v50 = vadd.f32 %v6463_v12, %v980_v47  ;;  %v1444_v54 = vsel %vm1188_vm11, %v978_v39, %v1316_v45  ;;  %v1319_v56 = vmul.f32 0.2, %v989_v46  ;;  %vm1191_vm14 = vcmp.ge.f32.partialorder %v989_v46, 0.0 }
 0x1fe   : > { %v5279_v52 = vpop.f32.mrf.mxu0  ;;  %v6519_v53 = vpop.f32.mrf.mxu1  ;;  %5465 = vmatmul.mubr.msk.f32.gmra.mxu1 %vm1472_vm1, %v1443_v51 }
 0x1ff   : > { %vm1189_vm13 = vcmp.ge.f32.partialorder %v981_v50, 0.0  ;;  %v1317_v55 = vmul.f32 0.2, %v981_v50  ;;  %5467 = vmatprep.mubr.msk.f32.mxu1 %vm1472_vm1, %v1444_v54  ;;  %v1002_v59 = vadd.f32 %v6463_v12, %v5279_v52  ;;  %v1447_v5 = vsel %vm1191_vm14, %v989_v46, %v1319_v56 }
 0x200   : > { %v993_v57 = vpop.f32.mrf.mxu0  ;;  %v6523_v58 = vpop.f32.mrf.mxu1 }
 0x201   : > { %v994_v60 = vadd.f32 %v6463_v12, %v993_v57  ;;  %v1445_v0 = vsel %vm1189_vm13, %v981_v50, %v1317_v55  ;;  %v1322_v6 = vmul.f32 0.2, %v1002_v59  ;;  %vm1194_vm0 = vcmp.ge.f32.partialorder %v1002_v59, 0.0 }
 0x202   : > { %v5280_v62 = vpop.f32.mrf.mxu0  ;;  %v6527_v63 = vpop.f32.mrf.mxu1  ;;  %5468 = vmatmul.mubr.msk.f32.gmra.mxu1 %vm1472_vm1, %v1445_v0 }
 0x203   : > { %vm1192_vm15 = vcmp.ge.f32.partialorder %v994_v60, 0.0  ;;  %v1320_v1 = vmul.f32 0.2, %v994_v60  ;;  %v1005_v2 = vadd.f32 %v6463_v12, %v5280_v62  ;;  %5470 = vmatprep.mubr.msk.f32.mxu1 %vm1472_vm1, %v1446_v61  ;;  %v1450_v18 = vsel %vm1194_vm0, %v1002_v59, %v1322_v6 }
 0x204   : > { %v996_v3 = vpop.f32.mrf.mxu0  ;;  %v6531_v4 = vpop.f32.mrf.mxu1 }
 0x205   : > { %v997_v7 = vadd.f32 %v6463_v12, %v996_v3  ;;  %v1448_v10 = vsel %vm1192_vm15, %v994_v60, %v1320_v1  ;;  %v1323_v13 = vmul.f32 0.2, %v1005_v2  ;;  %vm1195_vm3 = vcmp.ge.f32.partialorder %v1005_v2, 0.0 }
 0x206   : > { %v5283_v8 = vpop.f32.mrf.mxu0  ;;  %v6535_v9 = vpop.f32.mrf.mxu1  ;;  %5471 = vmatmul.mubr.msk.f32.gmra.mxu1 %vm1472_vm1, %v1447_v5 }
 0x207   : > { %vm1193_vm2 = vcmp.ge.f32.partialorder %v997_v7, 0.0  ;;  %v1321_v11 = vmul.f32 0.2, %v997_v7  ;;  %5473 = vmatprep.mubr.msk.f32.mxu1 %vm1472_vm1, %v1448_v10  ;;  %v1018_v16 = vadd.f32 %v6463_v12, %v5283_v8  ;;  %v1451_v25 = vsel %vm1195_vm3, %v1005_v2, %v1323_v13 }
 0x208   : > { %v1009_v14 = vpop.f32.mrf.mxu0  ;;  %v6538_v15 = vpop.f32.mrf.mxu1 }
 0x209   : > { %v1010_v17 = vadd.f32 %v6463_v12, %v1009_v14  ;;  %v1449_v20 = vsel %vm1193_vm2, %v997_v7, %v1321_v11  ;;  %v1326_v26 = vmul.f32 0.2, %v1018_v16  ;;  %vm1198_vm5 = vcmp.ge.f32.partialorder %v1018_v16, 0.0 }
 0x20a   : > { %v5284_v42 = vpop.f32.mrf.mxu0  ;;  %v6543_v19 = vpop.f32.mrf.mxu1  ;;  %5474 = vmatmul.mubr.msk.f32.gmra.mxu1 %vm1472_vm1, %v1449_v20 }
 0x20b   : > { %vm1196_vm4 = vcmp.ge.f32.partialorder %v1010_v17, 0.0  ;;  %v1324_v21 = vmul.f32 0.2, %v1010_v17  ;;  %v1021_v22 = vadd.f32 %v6463_v12, %v5284_v42  ;;  %5476 = vmatprep.mubr.msk.f32.mxu1 %vm1472_vm1, %v1450_v18  ;;  %v1454_v37 = vsel %vm1198_vm5, %v1018_v16, %v1326_v26 }
 0x20c   : > { %v1012_v23 = vpop.f32.mrf.mxu0  ;;  %v6547_v24 = vpop.f32.mrf.mxu1 }
 0x20d   : > { %v1013_v27 = vadd.f32 %v6463_v12, %v1012_v23  ;;  %v1452_v30 = vsel %vm1196_vm4, %v1010_v17, %v1324_v21  ;;  %v1327_v32 = vmul.f32 0.2, %v1021_v22  ;;  %vm1199_vm7 = vcmp.ge.f32.partialorder %v1021_v22, 0.0 }
 0x20e   : > { %v5287_v28 = vpop.f32.mrf.mxu0  ;;  %v6551_v29 = vpop.f32.mrf.mxu1  ;;  %5477 = vmatmul.mubr.msk.f32.gmra.mxu1 %vm1472_vm1, %v1451_v25 }
 0x20f   : > { %vm1197_vm6 = vcmp.ge.f32.partialorder %v1013_v27, 0.0  ;;  %v1325_v31 = vmul.f32 0.2, %v1013_v27  ;;  %v1034_v33 = vadd.f32 %v6463_v12, %v5287_v28  ;;  %5479 = vmatprep.mubr.msk.f32.mxu1 %vm1472_vm1, %v1452_v30  ;;  %v1455_v49 = vsel %vm1199_vm7, %v1021_v22, %v1327_v32 }
 0x210   : > { %v1025_v34 = vpop.f32.mrf.mxu0  ;;  %v6555_v35 = vpop.f32.mrf.mxu1 }
 0x211   : > { %v1026_v36 = vadd.f32 %v6463_v12, %v1025_v34  ;;  %v1453_v40 = vsel %vm1197_vm6, %v1013_v27, %v1325_v31  ;;  %v1330_v44 = vmul.f32 0.2, %v1034_v33  ;;  %vm1202_vm9 = vcmp.ge.f32.partialorder %v1034_v33, 0.0 }
 0x212   : > { %v5288_v38 = vpop.f32.mrf.mxu0  ;;  %v6559_v39 = vpop.f32.mrf.mxu1  ;;  %5480 = vmatmul.mubr.msk.f32.gmra.mxu1 %vm1472_vm1, %v1453_v40 }
 0x213   : > { %vm1200_vm8 = vcmp.ge.f32.partialorder %v1026_v36, 0.0  ;;  %v1328_v41 = vmul.f32 0.2, %v1026_v36  ;;  %v1037_v45 = vadd.f32 %v6463_v12, %v5288_v38  ;;  %5482 = vmatprep.mubr.msk.f32.mxu1 %vm1472_vm1, %v1454_v37  ;;  %v1458_v60 = vsel %vm1202_vm9, %v1034_v33, %v1330_v44 }
 0x214   : > { %v1028_v46 = vpop.f32.mrf.mxu0  ;;  %v6563_v47 = vpop.f32.mrf.mxu1 }
 0x215   : > { %8697 = vst [vmem:[#allocation14_spill] sm:$0xff] %v6563_v47  ;;  %v1029_v50 = vadd.f32 %v6463_v12, %v1028_v46  ;;  %v1456_v54 = vsel %vm1200_vm8, %v1026_v36, %v1328_v41  ;;  %v1331_v56 = vmul.f32 0.2, %v1037_v45  ;;  %vm1203_vm11 = vcmp.ge.f32.partialorder %v1037_v45, 0.0 }
 0x216   : > { %v5291_v51 = vpop.f32.mrf.mxu0  ;;  %v6567_v52 = vpop.f32.mrf.mxu1  ;;  %5483 = vmatmul.mubr.msk.f32.gmra.mxu1 %vm1472_vm1, %v1455_v49 }
 0x217   : > { %8698 = vst [vmem:[#allocation15_spill] sm:$0xff] %v6567_v52  ;;  %vm1201_vm10 = vcmp.ge.f32.partialorder %v1029_v50, 0.0  ;;  %v1329_v55 = vmul.f32 0.2, %v1029_v50  ;;  %5485 = vmatprep.mubr.msk.f32.mxu1 %vm1472_vm1, %v1456_v54  ;;  %v1050_v62 = vadd.f32 %v6463_v12, %v5291_v51  ;;  %v1459_v5 = vsel %vm1203_vm11, %v1037_v45, %v1331_v56 }
 0x218   : > { %v1041_v57 = vpop.f32.mrf.mxu0  ;;  %v6570_v59 = vpop.f32.mrf.mxu1 }
 0x219   : > { %8699 = vst [vmem:[#allocation16_spill] sm:$0xff] %v6570_v59  ;;  %v1457_v61 = vsel %vm1201_vm10, %v1029_v50, %v1329_v55  ;;  %v1042_v0 = vadd.f32 %v6463_v12, %v1041_v57  ;;  %v1334_v10 = vmul.f32 0.2, %v1050_v62  ;;  %vm1206_vm13 = vcmp.ge.f32.partialorder %v1050_v62, 0.0 }
 0x21a   : > { %v5292_v1 = vpop.f32.mrf.mxu0  ;;  %v6575_v2 = vpop.f32.mrf.mxu1  ;;  %5486 = vmatmul.mubr.msk.f32.gmra.mxu1 %vm1472_vm1, %v1457_v61 }
 0x21b   : > { %8700 = vst [vmem:[#allocation17_spill] sm:$0xff] %v6575_v2  ;;  %vm1204_vm12 = vcmp.ge.f32.partialorder %v1042_v0, 0.0  ;;  %v1332_v3 = vmul.f32 0.2, %v1042_v0  ;;  %v1053_v6 = vadd.f32 %v6463_v12, %v5292_v1  ;;  %5488 = vmatprep.mubr.msk.f32.mxu1 %vm1472_vm1, %v1458_v60  ;;  %v1462_v25 = vsel %vm1206_vm13, %v1050_v62, %v1334_v10 }
 0x21c   : > { %v1044_v7 = vpop.f32.mrf.mxu0  ;;  %v6579_v8 = vpop.f32.mrf.mxu1 }
 0x21d   : > { %8701 = vst [vmem:[#allocation18_spill] sm:$0xff] %v6579_v8  ;;  %v1045_v11 = vadd.f32 %v6463_v12, %v1044_v7  ;;  %v1460_v16 = vsel %vm1204_vm12, %v1042_v0, %v1332_v3  ;;  %v1335_v18 = vmul.f32 0.2, %v1053_v6  ;;  %vm1207_vm15 = vcmp.ge.f32.partialorder %v1053_v6, 0.0 }
 0x21e   : > { %v5295_v13 = vpop.f32.mrf.mxu0  ;;  %v6583_v14 = vpop.f32.mrf.mxu1  ;;  %5489 = vmatmul.mubr.msk.f32.gmra.mxu1 %vm1472_vm1, %v1459_v5 }
 0x21f   : > { %8702 = vst [vmem:[#allocation19_spill] sm:$0xff] %v6583_v14  ;;  %vm1205_vm14 = vcmp.ge.f32.partialorder %v1045_v11, 0.0  ;;  %v1333_v17 = vmul.f32 0.2, %v1045_v11  ;;  %v1066_v42 = vadd.f32 %v6463_v12, %v5295_v13  ;;  %5491 = vmatprep.mubr.msk.f32.mxu1 %vm1472_vm1, %v1460_v16  ;;  %v1463_v30 = vsel %vm1207_vm15, %v1053_v6, %v1335_v18 }
 0x220   : > { %v1057_v20 = vpop.f32.mrf.mxu0  ;;  %v6587_v21 = vpop.f32.mrf.mxu1 }
 0x221   : > { %8703 = vst [vmem:[#allocation20_spill] sm:$0xff] %v6587_v21  ;;  %v1461_v22 = vsel %vm1205_vm14, %v1045_v11, %v1333_v17  ;;  %v1058_v23 = vadd.f32 %v6463_v12, %v1057_v20  ;;  %v1338_v31 = vmul.f32 0.2, %v1066_v42  ;;  %vm1210_vm2 = vcmp.ge.f32.partialorder %v1066_v42, 0.0 }
 0x222   : > { %v5296_v26 = vpop.f32.mrf.mxu0  ;;  %v6591_v27 = vpop.f32.mrf.mxu1  ;;  %5492 = vmatmul.mubr.msk.f32.gmra.mxu1 %vm1472_vm1, %v1461_v22 }
 0x223   : > { %8704 = vst [vmem:[#allocation21_spill] sm:$0xff] %v6591_v27  ;;  %vm1208_vm0 = vcmp.ge.f32.partialorder %v1058_v23, 0.0  ;;  %v1336_v28 = vmul.f32 0.2, %v1058_v23  ;;  %v1069_v32 = vadd.f32 %v6463_v12, %v5296_v26  ;;  %5494 = vmatprep.mubr.msk.f32.mxu1 %vm1472_vm1, %v1462_v25  ;;  %v1466_v49 = vsel %vm1210_vm2, %v1066_v42, %v1338_v31 }
 0x224   : > { %v1060_v33 = vpop.f32.mrf.mxu0  ;;  %v6595_v34 = vpop.f32.mrf.mxu1 }
 0x225   : > { %8705 = vst [vmem:[#allocation22_spill] sm:$0xff] %v6595_v34  ;;  %v1061_v36 = vadd.f32 %v6463_v12, %v1060_v33  ;;  %v1464_v40 = vsel %vm1208_vm0, %v1058_v23, %v1336_v28  ;;  %v1339_v44 = vmul.f32 0.2, %v1069_v32  ;;  %vm1211_vm4 = vcmp.ge.f32.partialorder %v1069_v32, 0.0 }
 0x226   : > { %v5299_v37 = vpop.f32.mrf.mxu0  ;;  %v6599_v38 = vpop.f32.mrf.mxu1  ;;  %5495 = vmatmul.mubr.msk.f32.gmra.mxu1 %vm1472_vm1, %v1463_v30 }
 0x227   : > { %8706 = vst [vmem:[#allocation23_spill] sm:$0xff] %v6599_v38  ;;  %vm1209_vm3 = vcmp.ge.f32.partialorder %v1061_v36, 0.0  ;;  %v1337_v41 = vmul.f32 0.2, %v1061_v36  ;;  %5497 = vmatprep.mubr.msk.f32.mxu1 %vm1472_vm1, %v1464_v40  ;;  %v1082_v51 = vadd.f32 %v6463_v12, %v5299_v37  ;;  %v1467_v60 = vsel %vm1211_vm4, %v1069_v32, %v1339_v44 }
 0x228   : > { %v1073_v45 = vpop.f32.mrf.mxu0  ;;  %v6602_v46 = vpop.f32.mrf.mxu1 }
 0x229   : > { %8707 = vst [vmem:[#allocation24_spill] sm:$0xff] %v6602_v46  ;;  %v1465_v50 = vsel %vm1209_vm3, %v1061_v36, %v1337_v41  ;;  %v1074_v54 = vadd.f32 %v6463_v12, %v1073_v45  ;;  %v1342_v1 = vmul.f32 0.2, %v1082_v51  ;;  %vm1214_vm6 = vcmp.ge.f32.partialorder %v1082_v51, 0.0 }
 0x22a   : > { %v5300_v55 = vpop.f32.mrf.mxu0  ;;  %v6607_v56 = vpop.f32.mrf.mxu1  ;;  %5498 = vmatmul.mubr.msk.f32.gmra.mxu1 %vm1472_vm1, %v1465_v50 }
 0x22b   : > { %8708 = vst [vmem:[#allocation25_spill] sm:$0xff] %v6607_v56  ;;  %vm1212_vm5 = vcmp.ge.f32.partialorder %v1074_v54, 0.0  ;;  %v1340_v57 = vmul.f32 0.2, %v1074_v54  ;;  %v1085_v61 = vadd.f32 %v6463_v12, %v5300_v55  ;;  %5500 = vmatprep.mubr.msk.f32.mxu1 %vm1472_vm1, %v1466_v49  ;;  %v1470_v16 = vsel %vm1214_vm6, %v1082_v51, %v1342_v1 }
 0x22c   : > { %v1076_v62 = vpop.f32.mrf.mxu0  ;;  %v6611_v0 = vpop.f32.mrf.mxu1 }
 0x22d   : > { %8709 = vst [vmem:[#allocation26_spill] sm:$0xff] %v6611_v0  ;;  %v1077_v3 = vadd.f32 %v6463_v12, %v1076_v62  ;;  %v1468_v6 = vsel %vm1212_vm5, %v1074_v54, %v1340_v57  ;;  %v1343_v10 = vmul.f32 0.2, %v1085_v61  ;;  %vm1215_vm8 = vcmp.ge.f32.partialorder %v1085_v61, 0.0 }
 0x22e   : > { %v6615_v5 = vpop.f32.mrf.mxu1  ;;  %5501 = vmatmul.mubr.msk.f32.gmra.mxu1 %vm1472_vm1, %v1467_v60 }
 0x22f   : > { %8710 = vst [vmem:[#allocation27_spill] sm:$0xff] %v6615_v5  ;;  %vm1213_vm7 = vcmp.ge.f32.partialorder %v1077_v3, 0.0  ;;  %v1341_v7 = vmul.f32 0.2, %v1077_v3  ;;  %5503 = vmatprep.mubr.msk.f32.mxu1 %vm1472_vm1, %v1468_v6  ;;  %v1471_v12 = vsel %vm1215_vm8, %v1085_v61, %v1343_v10 }
 0x230   : > { %v6618_v11 = vpop.f32.mrf.mxu1 }
 0x231   : > { %8711 = vst [vmem:[#allocation28_spill] sm:$0xff] %v6618_v11  ;;  %v1469_v13 = vsel %vm1213_vm7, %v1077_v3, %v1341_v7 }
 0x232   : > { %v6621_v17 = vpop.f32.mrf.mxu1  ;;  %5504 = vmatmul.mubr.msk.f32.gmra.mxu1 %vm1472_vm1, %v1469_v13 }
 0x233   : > { %8712 = vst [vmem:[#allocation29_spill] sm:$0xff] %v6621_v17  ;;  %5506 = vmatprep.mubr.msk.f32.mxu1 %vm1472_vm1, %v1470_v16 }
 0x234   : > { %v6624_v18 = vpop.f32.mrf.mxu1 }
 0x235   : > { %8713 = vst [vmem:[#allocation30_spill] sm:$0xff] %v6624_v18 }
 0x236   : > { %v6627_v42 = vpop.f32.mrf.mxu1  ;;  %5507 = vmatmul.mubr.msk.f32.gmra.mxu1 %vm1472_vm1, %v1471_v12  ;;  %vm2562_vm1 = vcmask 7168  }
 0x237   : > { %8714 = vst [vmem:[#allocation31_spill] sm:$0xff] %v6627_v42  ;;  %v2563_v17 = vsel %vm2562_vm1, %v6516_v48, -inf }
 0x238   : > { %v6630_v20 = vpop.f32.mrf.mxu1 }
 0x239   : > { %8715 = vst [vmem:[#allocation32_spill] sm:$0xff] %v6630_v20 }
 0x23a   : > { %v6632_v22 = vpop.f32.mrf.mxu1 }
 0x23c   : > { %v6634_v23 = vpop.f32.mrf.mxu1 }
 0x23e   : > { %v6636_v25 = vpop.f32.mrf.mxu1 }
 0x240   : > { %v6638_v26 = vpop.f32.mrf.mxu1 }
 0x242   : > { %v6640_v28 = vpop.f32.mrf.mxu1 }
 0x244   : > { %v6642_v30 = vpop.f32.mrf.mxu1 }
 0x246   : > { %v6644_v31 = vpop.f32.mrf.mxu1 }
 0x248   : > { %v6646_v32 = vpop.f32.mrf.mxu1 }
 0x24a   : > { %v6648_v33 = vpop.f32.mrf.mxu1 }
 0x24c   : > { %v6650_v36 = vpop.f32.mrf.mxu1 }
 0x24e   : > { %v6652_v37 = vpop.f32.mrf.mxu1 }
 0x24f   : > { %8716 = vst [vmem:[#allocation33_spill] sm:$0xff] %v6652_v37 }
 0x250   : > { %v6654_v40 = vpop.f32.mrf.mxu1 }
 0x251   : > { %8717 = vst [vmem:[#allocation34_spill] sm:$0xff] %v6654_v40  ;;  %v2564_v40 = vsel %vm2562_vm1, %v6634_v23, -inf }
 0x252   : > { %v6656_v41 = vpop.f32.mrf.mxu1 }
 0x253   : > { %8718 = vst [vmem:[#allocation35_spill] sm:$0xff] %v6656_v41 }
 0x254   : > { %v6658_v44 = vpop.f32.mrf.mxu1 }
 0x255   : > { %8719 = vst [vmem:[#allocation36_spill] sm:$0xff] %v6658_v44 }
 0x256   : > { %v6660_v45 = vpop.f32.mrf.mxu1 }
 0x257   : > { %8720 = vst [vmem:[#allocation37_spill] sm:$0xff] %v6660_v45 }
 0x258   : > { %v6662_v49 = vpop.f32.mrf.mxu1 }
 0x259   : > { %8721 = vst [vmem:[#allocation38_spill] sm:$0xff] %v6662_v49  ;;  %v6000_v49 = vmov 0  }
 0x25a   : > { %v6664_v50 = vpop.f32.mrf.mxu1  ;;  %5568 = vset.pattern.permute.xlu1 %v6000_v49  ;;  %5567 = vset.pattern.permute.xlu0 %v6000_v49 }
 0x25b   : > { %8722 = vst [vmem:[#allocation39_spill] sm:$0xff] %v6664_v50 }
 0x25c   : > { %v6666_v51 = vpop.f32.mrf.mxu1 }
 0x25d   : > { %8723 = vst [vmem:[#allocation40_spill] sm:$0xff] %v6666_v51 }
 0x25e   : > { %v6668_v54 = vpop.f32.mrf.mxu1 }
 0x25f   : > { %8724 = vst [vmem:[#allocation41_spill] sm:$0xff] %v6668_v54 }
 0x260   : > { %v6670_v55 = vpop.f32.mrf.mxu1 }
 0x261   : > { %8725 = vst [vmem:[#allocation42_spill] sm:$0xff] %v6670_v55 }
 0x262   : > { %v6672_v57 = vpop.f32.mrf.mxu1 }
 0x263   : > { %8726 = vst [vmem:[#allocation43_spill] sm:$0xff] %v6672_v57 }
 0x264   : > { %v6674_v60 = vpop.f32.mrf.mxu1 }
 0x265   : > { %8727 = vst [vmem:[#allocation44_spill] sm:$0xff] %v6674_v60 }
 0x266   : > { %v6676_v61 = vpop.f32.mrf.mxu1 }
 0x267   : > { %8728 = vst [vmem:[#allocation45_spill] sm:$0xff] %v6676_v61 }
 0x268   : > { %v6678_v62 = vpop.f32.mrf.mxu1 }
 0x269   : > { %8729 = vst [vmem:[#allocation46_spill] sm:$0xff] %v6678_v62 }
 0x26a   : > { %v6680_v1 = vpop.f32.mrf.mxu1 }
 0x26b   : > { %8730 = vst [vmem:[#allocation47_spill] sm:$0xff] %v6680_v1 }
 0x26c   : > { %v6682_v3 = vpop.f32.mrf.mxu1 }
 0x26d   : > { %8731 = vst [vmem:[#allocation48_spill] sm:$0xff] %v6682_v3 }
 0x26e   : > { %v6684_v6 = vpop.f32.mrf.mxu1 }
 0x26f   : > { %8732 = vst [vmem:[#allocation49_spill] sm:$0xff] %v6684_v6 }
 0x270   : > { %v6686_v7 = vpop.f32.mrf.mxu1 }
 0x271   : > { %8733 = vst [vmem:[#allocation50_spill] sm:$0xff] %v6686_v7 }
 0x272   : > { %v6688_v10 = vpop.f32.mrf.mxu1 }
 0x273   : > { %8734 = vst [vmem:[#allocation51_spill] sm:$0xff] %v6688_v10 }
 0x274   : > { %v6690_v13 = vpop.f32.mrf.mxu1 }
 0x275   : > { %8735 = vst [vmem:[#allocation52_spill] sm:$0xff] %v6690_v13 }
 0x276   : > { %v6692_v16 = vpop.f32.mrf.mxu1 }
 0x277   : > { %8736 = vst [vmem:[#allocation53_spill] sm:$0xff] %v6692_v16 }
 0x278   : > { %v6694_v12 = vpop.f32.mrf.mxu1 }
 0x279   : > { %8737 = vst [vmem:[#allocation54_spill] sm:$0xff] %v6694_v12 }
 0x27a   : > { %v5415_v60 = vpop.f32.mrf.mxu1 }
 0x27c   : > { %v6696_v61 = vpop.f32.mrf.mxu1 }
 0x27e   : > { %v6698_v62 = vpop.f32.mrf.mxu1 }
 0x280   : > { %v6700_v1 = vpop.f32.mrf.mxu1 }
 0x282   : > { %v6702_v3 = vpop.f32.mrf.mxu1 }
 0x284   : > { %v6704_v6 = vpop.f32.mrf.mxu1 }
 0x286   : > { %v6706_v7 = vpop.f32.mrf.mxu1 }
 0x288   : > { %v6708_v10 = vpop.f32.mrf.mxu1 }
 0x28a   : > { %v6710_v13 = vpop.f32.mrf.mxu1 }
 0x28c   : > { %v6712_v16 = vpop.f32.mrf.mxu1 }
 0x28e   : > { %v6714_v12 = vpop.f32.mrf.mxu1 }
 0x28f   : > { %8738 = vst [vmem:[#allocation55_spill] sm:$0xff] %v6714_v12 }
 0x290   : > { %v6716_v57 = vpop.f32.mrf.mxu1 }
 0x291   : > { %8739 = vst [vmem:[#allocation56_spill] sm:$0xff] %v6716_v57 }
 0x292   : > { %v6718_v55 = vpop.f32.mrf.mxu1 }
 0x293   : > { %8740 = vst [vmem:[#allocation57_spill] sm:$0xff] %v6718_v55 }
 0x294   : > { %v6720_v54 = vpop.f32.mrf.mxu1 }
 0x295   : > { %8741 = vst [vmem:[#allocation58_spill] sm:$0xff] %v6720_v54 }
 0x296   : > { %v6722_v51 = vpop.f32.mrf.mxu1 }
 0x297   : > { %8742 = vst [vmem:[#allocation59_spill] sm:$0xff] %v6722_v51 }
 0x298   : > { %v6724_v50 = vpop.f32.mrf.mxu1 }
 0x299   : > { %8743 = vst [vmem:[#allocation60_spill] sm:$0xff] %v6724_v50 }
 0x29a   : > { %v6726_v45 = vpop.f32.mrf.mxu1 }
 0x29b   : > { %8744 = vst [vmem:[#allocation61_spill] sm:$0xff] %v6726_v45 }
 0x29c   : > { %v6728_v44 = vpop.f32.mrf.mxu1 }
 0x29d   : > { %8745 = vst [vmem:[#allocation62_spill] sm:$0xff] %v6728_v44 }
 0x29e   : > { %v6730_v20 = vpop.f32.mrf.mxu1 }
 0x29f   : > { %8746 = vst [vmem:[#allocation63_spill] sm:$0xff] %v6730_v20 }
 0x2a0   : > { %v6732_v12 = vpop.f32.mrf.mxu1 }
 0x2a1   : > { %8747 = vst [vmem:[#allocation64_spill] sm:$0xff] %v6732_v12 }
 0x2a2   : > { %v6734_v57 = vpop.f32.mrf.mxu1 }
 0x2a3   : > { %8748 = vst [vmem:[#allocation65_spill] sm:$0xff] %v6734_v57 }
 0x2a4   : > { %v6736_v55 = vpop.f32.mrf.mxu1 }
 0x2a5   : > { %8749 = vst [vmem:[#allocation66_spill] sm:$0xff] %v6736_v55 }
 0x2a6   : > { %v6738_v54 = vpop.f32.mrf.mxu1 }
 0x2a7   : > { %8750 = vst [vmem:[#allocation67_spill] sm:$0xff] %v6738_v54 }
 0x2a8   : > { %v6740_v51 = vpop.f32.mrf.mxu1 }
 0x2a9   : > { %8751 = vst [vmem:[#allocation68_spill] sm:$0xff] %v6740_v51  ;;  %v2571_v51 = vsel %vm2562_vm1, %v6632_v22, -inf }
 0x2aa   : > { %v6742_v50 = vpop.f32.mrf.mxu1 }
 0x2ab   : > { %8752 = vst [vmem:[#allocation69_spill] sm:$0xff] %v6742_v50 }
 0x2ac   : > { %v6744_v41 = vpop.f32.mrf.mxu1 }
 0x2ad   : > { %8753 = vst [vmem:[#allocation70_spill] sm:$0xff] %v6744_v41  ;;  %v2570_v41 = vsel %vm2562_vm1, %v6511_v43, -inf }
 0x2ae   : > { %v6746_v49 = vpop.f32.mrf.mxu1  ;;  %v2572_v50 = vmax.f32 %v2570_v41, %v2571_v51  ;;  %v2566_v41 = vsel %vm2562_vm1, %v6696_v61, -inf }
 0x2af   : > { %8754 = vst [vmem:[#allocation71_spill] sm:$0xff] %v6746_v49  ;;  %v2573_v49 = vsel %vm2562_vm1, %v5415_v60, -inf }
 0x2b0   : > { %v6748_v45 = vpop.f32.mrf.mxu1 }
 0x2b1   : > { %8755 = vst [vmem:[#allocation72_spill] sm:$0xff] %v6748_v45 }
 0x2b2   : > { %v6750_v44 = vpop.f32.mrf.mxu1 }
 0x2b3   : > { %8756 = vst [vmem:[#allocation73_spill] sm:$0xff] %v6750_v44  ;;  %v2574_v44 = vmax.f32 %v2572_v50, %v2573_v49  ;;  %v2565_v50 = vmax.f32 %v2563_v17, %v2564_v40 }
 0x2b4   : > { %v6752_v20 = vpop.f32.mrf.mxu1 }
 0x2b5   : > { %8757 = vst [vmem:[#allocation74_spill] sm:$0xff] %v6752_v20 }
 0x2b6   : > { %v6754_v12 = vpop.f32.mrf.mxu1 }
 0x2b7   : > { %8758 = vst [vmem:[#allocation75_spill] sm:$0xff] %v6754_v12 }
 0x2b8   : > { %v6756_v57 = vpop.f32.mrf.mxu1 }
 0x2b9   : > { %8759 = vst [vmem:[#allocation76_spill] sm:$0xff] %v6756_v57 }
 0x2ba   : > { %v5463_v54 = vpop.f32.mrf.mxu1 }
 0x2bb   : > { %v2575_v45 = vsel %vm2562_vm1, %v5463_v54, -inf }
 0x2bc   : > { %v2576_v55 = vmax.f32 %v2574_v44, %v2575_v45  ;;  %v2403_v18 = vpop.f32.mrf.mxu1  ;;  %v2567_v44 = vmax.f32 %v2565_v50, %v2566_v41 }
 0x2be   : > { %v2788_v20 = vsub.f32 %v6511_v43, %v2576_v55  ;;  %v2820_v12 = vsub.f32 %v6632_v22, %v2576_v55  ;;  %v2852_v37 = vsub.f32 %v5415_v60, %v2576_v55  ;;  %v2568_v43 = vsel %vm2562_vm1, %v2403_v18, -inf }
 0x2bf   : > { %v2884_v22 = vsub.f32 %v5463_v54, %v2576_v55  ;;  %v2569_v45 = vmax.f32 %v2567_v44, %v2568_v43  ;;  %v5466_v54 = vpop.f32.mrf.mxu1 }
 0x2c0   : > { %v2917_v57 = vmul.f32 1.442695, %v2788_v20  ;;  %v2981_v42 = vmul.f32 1.442695, %v2820_v12  ;;  %v3045_v20 = vmul.f32 1.442695, %v2852_v37 }
 0x2c1   : > { %v3109_v51 = vmul.f32 1.442695, %v2884_v22  ;;  %v2787_v60 = vsub.f32 %v6516_v48, %v2569_v45  ;;  %v2819_v12 = vsub.f32 %v6634_v23, %v2569_v45  ;;  %v2585_v48 = vsel %vm2562_vm1, %v6636_v25, -inf }
 0x2c2   : > { %5577 = vpow2.f32 %v2917_v57  ;;  %v2584_v23 = vsel %vm2562_vm1, %v6519_v53, -inf  ;;  %v2587_v57 = vsel %vm2562_vm1, %v6698_v62, -inf  ;;  %v2883_v41 = vsub.f32 %v2403_v18, %v2569_v45 }
 0x2c3   : > { %5579 = vpow2.f32 %v2981_v42  ;;  %v2915_v11 = vmul.f32 1.442695, %v2787_v60  ;;  %v2979_v17 = vmul.f32 1.442695, %v2819_v12  ;;  %v2851_v42 = vsub.f32 %v6696_v61, %v2569_v45 }
 0x2c4   : > { %5581 = vpow2.f32 %v3045_v20  ;;  %v2586_v43 = vmax.f32 %v2584_v23, %v2585_v48  ;;  %v2589_v44 = vsel %vm2562_vm1, %v5466_v54, -inf  ;;  %v3107_v60 = vmul.f32 1.442695, %v2883_v41 }
 0x2c5   : > { %5583 = vpow2.f32 %v3109_v51  ;;  %v3043_v50 = vmul.f32 1.442695, %v2851_v42 }
 0x2c6   : > { %5585 = vpow2.f32 %v2915_v11  ;;  %v2588_v11 = vmax.f32 %v2586_v43, %v2587_v57 }
 0x2c7   : > { %5587 = vpow2.f32 %v2979_v17 }
 0x2c8   : > { %5589 = vpow2.f32 %v3043_v50  ;;  %v2590_v12 = vmax.f32 %v2588_v11, %v2589_v44  ;;  %v2413_v44 = vpop.f32.mrf.mxu1 }
 0x2c9   : > { %5591 = vpow2.f32 %v3107_v60 }
 0x2ca   : > { %v2790_v18 = vsub.f32 %v6519_v53, %v2590_v12  ;;  %v2822_v42 = vsub.f32 %v6636_v25, %v2590_v12  ;;  %v2578_v25 = vsel %vm2562_vm1, %v6638_v26, -inf  ;;  %v2886_v50 = vsub.f32 %v5466_v54, %v2590_v12 }
 0x2cc   : > { %v2985_v57 = vmul.f32 1.442695, %v2822_v42  ;;  %v3113_v54 = vmul.f32 1.442695, %v2886_v50 }
 0x2cf   : > { %v6775_v49 = vpop.eup %5577 }
 0x2d0   : > { %v6777_v5 = vpop.eup %5579  ;;  %v3178_v40 = vsel %vm2562_vm1, %v6775_v49, 0.0 }
 0x2d1   : > { %v3179_v37 = vsel %vm2562_vm1, %v6777_v5, 0.0  ;;  %v6788_v55 = vpop.eup %5581 }
 0x2d2   : > { %v3180_v61 = vadd.f32 %v3179_v37, %v3178_v40  ;;  %v3181_v22 = vsel %vm2562_vm1, %v6788_v55, 0.0  ;;  %v6795_v20 = vpop.eup %5583  ;;  %v2921_v37 = vmul.f32 1.442695, %v2790_v18 }
 0x2d3   : > { %v3183_v17 = vsel %vm2562_vm1, %v6795_v20, 0.0  ;;  %v6800_v45 = vpop.eup %5585 }
 0x2d4   : > { %v3182_v51 = vadd.f32 %v3181_v22, %v3180_v61  ;;  %v6803_v40 = vpop.eup %5587  ;;  %v3171_v48 = vsel %vm2562_vm1, %v6800_v45, 0.0  ;;  %v2854_v61 = vsub.f32 %v6698_v62, %v2590_v12  ;;  %v2577_v22 = vsel %vm2562_vm1, %v6523_v58, -inf }
 0x2d5   : > { %v3172_v23 = vsel %vm2562_vm1, %v6803_v40, 0.0  ;;  %v6810_v41 = vpop.eup %5589  ;;  %v2580_v62 = vsel %vm2562_vm1, %v6700_v1, -inf  ;;  %v2579_v60 = vmax.f32 %v2577_v22, %v2578_v25  ;;  %v2601_v25 = vsel %vm2562_vm1, %v6702_v3, -inf }
 0x2d6   : > { %v3184_v0 = vadd.f32 %v3183_v17, %v3182_v51  ;;  %v3173_v53 = vadd.f32 %v3172_v23, %v3171_v48  ;;  %v3049_v43 = vmul.f32 1.442695, %v2854_v61  ;;  %v6816_v11 = vpop.eup %5591  ;;  %v2582_v17 = vsel %vm2562_vm1, %v2413_v44, -inf  ;;  %v6827_v48 = vpop.f32.mrf.mxu1 }
 0x2d7   : > { %8760 = vst [vmem:[#allocation77_spill] sm:$0xff] %v6816_v11  ;;  %v2581_v18 = vmax.f32 %v2579_v60, %v2580_v62  ;;  %v3176_v42 = vsel %vm2562_vm1, %v6816_v11, 0.0  ;;  %v2599_v23 = vsel %vm2562_vm1, %v6640_v28, -inf  ;;  %v2598_v61 = vsel %vm2562_vm1, %v6527_v63, -inf }
 0x2d8   : > { %5593 = vrcp.f32 %v3184_v0  ;;  %v3174_v0 = vsel %vm2562_vm1, %v6810_v41, 0.0  ;;  %v2600_v50 = vmax.f32 %v2598_v61, %v2599_v23  ;;  %v2591_v62 = vsel %vm2562_vm1, %v6531_v4, -inf }
 0x2d9   : > { %5595 = vpow2.f32 %v2921_v37  ;;  %v3175_v51 = vadd.f32 %v3174_v0, %v3173_v53  ;;  %v2592_v53 = vsel %vm2562_vm1, %v6642_v30, -inf }
 0x2da   : > { %5597 = vpow2.f32 %v2985_v57  ;;  %v2583_v57 = vmax.f32 %v2581_v18, %v2582_v17  ;;  %v2603_v17 = vsel %vm2562_vm1, %v6827_v48, -inf }
 0x2db   : > { %5599 = vpow2.f32 %v3049_v43  ;;  %v3177_v37 = vadd.f32 %v3176_v42, %v3175_v51  ;;  %v6839_v43 = vpop.f32.mrf.mxu1  ;;  %v2594_v51 = vsel %vm2562_vm1, %v6704_v6, -inf  ;;  %v2602_v42 = vmax.f32 %v2600_v50, %v2601_v25 }
 0x2dc   : > { %5601 = vpow2.f32 %v3113_v54  ;;  %v2789_v60 = vsub.f32 %v6523_v58, %v2583_v57  ;;  %v2821_v54 = vsub.f32 %v6638_v26, %v2583_v57 }
 0x2dd   : > { %5603 = vrcp.f32 %v3177_v37  ;;  %v2596_v37 = vsel %vm2562_vm1, %v6839_v43, -inf  ;;  %v6855_v61 = vmax.f32 %v2602_v42, %v2603_v17 }
 0x2de   : > { %v2919_v56 = vmul.f32 1.442695, %v2789_v60  ;;  %v2983_v25 = vmul.f32 1.442695, %v2821_v54  ;;  %v2612_v54 = vsel %vm2562_vm1, %v6535_v9, -inf }
 0x2df   : > { %v2792_v17 = vsub.f32 %v6527_v63, %v6855_v61  ;;  %v2824_v60 = vsub.f32 %v6640_v28, %v6855_v61 }
 0x2e0   : > { %5605 = vpow2.f32 %v2919_v56 }
 0x2e1   : > { %5607 = vpow2.f32 %v2983_v25  ;;  %v2925_v42 = vmul.f32 1.442695, %v2792_v17  ;;  %v2605_v17 = vsel %vm2562_vm1, %v6538_v15, -inf }
 0x2e5   : > { %v6825_v12 = vpop.eup %5593 }
 0x2e6   : > { %v3460_v0 = vmul.f32 %v6825_v12, %v6777_v5  ;;  %v6841_v22 = vpop.eup %5595  ;;  %v2593_v5 = vmax.f32 %v2591_v62, %v2592_v53  ;;  %v3428_v11 = vmul.f32 %v6825_v12, %v6775_v49  ;;  %v2853_v53 = vsub.f32 %v6700_v1, %v2583_v57 }
 0x2e7   : > { %v6850_v18 = vpop.eup %5597  ;;  %v3192_v58 = vsel %vm2562_vm1, %v6841_v22, 0.0  ;;  %v3492_v50 = vmul.f32 %v6825_v12, %v6788_v55  ;;  %v2885_v62 = vsub.f32 %v2413_v44, %v2583_v57  ;;  %v2613_v55 = vsel %vm2562_vm1, %v6644_v31, -inf }
 0x2e8   : > { %3819 = vperm.xlu1 %5568, %v3460_v0   ;;  %v2595_v23 = vmax.f32 %v2593_v5, %v2594_v51  ;;  %v3193_v0 = vsel %vm2562_vm1, %v6850_v18, 0.0  ;;  %3594 = vperm.xlu0 %5567, %v3428_v11   ;;  %v6868_v51 = vpop.eup %5599  ;;  %v3047_v1 = vmul.f32 1.442695, %v2853_v53 }
 0x2e9   : > { %v3194_v49 = vadd.f32 %v3193_v0, %v3192_v58  ;;  %v3195_v44 = vsel %vm2562_vm1, %v6868_v51, 0.0  ;;  %v3111_v57 = vmul.f32 1.442695, %v2885_v62  ;;  %v6882_v5 = vpop.eup %5601  ;;  %v2615_v58 = vsel %vm2562_vm1, %v6706_v7, -inf }
 0x2ea   : > { %v6864_v26 = vmax.f32 %v2595_v23, %v2596_v37  ;;  %v6884_v28 = vpop.eup %5603  ;;  %v6888_v37 = vpop.f32.mrf.mxu1  ;;  %v2614_v23 = vmax.f32 %v2612_v54, %v2613_v55  ;;  %5609 = vpow2.f32 %v3047_v1  ;;  %v3197_v53 = vsel %vm2562_vm1, %v6882_v5, 0.0 }
 0x2eb   : > { %v3196_v56 = vadd.f32 %v3195_v44, %v3194_v49  ;;  %5611 = vpow2.f32 %v3111_v57  ;;  %v2856_v62 = vsub.f32 %v6702_v3, %v6855_v61  ;;  %v3427_v49 = vmul.f32 %v6884_v28, %v6800_v45 }
 0x2ec   : > { %4076 = vperm.xlu1 %5568, %v3492_v50   ;;  %v2791_v11 = vsub.f32 %v6531_v4, %v6864_v26  ;;  %v2823_v63 = vsub.f32 %v6642_v30, %v6864_v26  ;;  %v2989_v4 = vmul.f32 1.442695, %v2824_v60  ;;  %v2606_v30 = vsel %vm2562_vm1, %v6646_v32, -inf }
 0x2ed   : > { %v3198_v50 = vadd.f32 %v3197_v53, %v3196_v56  ;;  %5613 = vpow2.f32 %v2925_v42  ;;  %v2616_v60 = vmax.f32 %v2614_v23, %v2615_v58  ;;  %v2617_v1 = vsel %vm2562_vm1, %v6888_v37, -inf  ;;  %3589 = vperm.xlu0 %5567, %v3427_v49  }
 0x2ee   : > { %v2923_v0 = vmul.f32 1.442695, %v2791_v11  ;;  %v2987_v25 = vmul.f32 1.442695, %v2823_v63  ;;  %5615 = vpow2.f32 %v2989_v4  ;;  %v6904_v11 = vpop.f32.mrf.mxu1  ;;  %v2608_v55 = vsel %vm2562_vm1, %v6708_v10, -inf }
 0x2ef   : > { %v2855_v3 = vsub.f32 %v6704_v6, %v6864_v26  ;;  %v3524_v45 = vmul.f32 %v6825_v12, %v6795_v20  ;;  %v2607_v44 = vmax.f32 %v2605_v17, %v2606_v30  ;;  %v2888_v57 = vsub.f32 %v6827_v48, %v6855_v61  ;;  %v6928_v48 = vpop.eup %5605 }
 0x2f0   : > { %5617 = vpow2.f32 %v2923_v0  ;;  %v3053_v63 = vmul.f32 1.442695, %v2856_v62  ;;  %v6914_v56 = vmax.f32 %v2616_v60, %v2617_v1  ;;  %v2610_v42 = vsel %vm2562_vm1, %v6904_v11, -inf  ;;  %v6940_v0 = vpop.eup %5607 }
 0x2f1   : > { %5619 = vpow2.f32 %v2987_v25  ;;  %4333 = vperm.xlu1 %5568, %v3524_v45   ;;  %v2626_v6 = vsel %vm2562_vm1, %v6543_v19, -inf  ;;  %v6922_v54 = vsel %vm2562_vm1, %v6547_v24, -inf  ;;  %v6926_v20 = vsel %vm2562_vm1, %v6551_v29, -inf }
 0x2f2   : > { %5621 = vrcp.f32 %v3198_v50  ;;  %v2609_v12 = vmax.f32 %v2607_v44, %v2608_v55  ;;  %v6932_v61 = vsel %vm2562_vm1, %v6555_v35, -inf  ;;  %v6936_v4 = vsel %vm2562_vm1, %v6559_v39, -inf }
 0x2f3   : > { %v2887_v23 = vsub.f32 %v6839_v43, %v6864_v26  ;;  %v3051_v58 = vmul.f32 1.442695, %v2855_v3  ;;  %v6944_v30 = vsel %vm2562_vm1, %v6563_v47, -inf  ;;  %v6948_v53 = vsel %vm2562_vm1, %v6567_v52, -inf  ;;  %v8768_v47 = vld [vmem:[#allocation27_spill] sm:$0xff] }
 0x2f4   : > { %v6952_v25 = vsel %vm2562_vm1, %v6570_v59, -inf  ;;  %v6954_v50 = vmax.f32 %v2609_v12, %v2610_v42  ;;  %v6958_v43 = vsel %vm2562_vm1, %v6575_v2, -inf  ;;  %5623 = vpow2.f32 %v3053_v63 }
 0x2f5   : > { %v3117_v26 = vmul.f32 1.442695, %v2888_v57  ;;  %v2794_v62 = vsub.f32 %v6535_v9, %v6914_v56  ;;  %v6964_v49 = vsel %vm2562_vm1, %v6579_v8, -inf  ;;  %v6968_v17 = vsel %vm2562_vm1, %v6583_v14, -inf }
 0x2f6   : > { %v2826_v60 = vsub.f32 %v6644_v31, %v6914_v56  ;;  %v3459_v1 = vmul.f32 %v6884_v28, %v6803_v40  ;;  %v3185_v55 = vsel %vm2562_vm1, %v6928_v48, 0.0  ;;  %v3186_v9 = vsel %vm2562_vm1, %v6940_v0, 0.0 }
 0x2f7   : > { %5625 = vpow2.f32 %v3051_v58  ;;  %v3115_v3 = vmul.f32 1.442695, %v2887_v23  ;;  %v6978_v45 = vpop.eup %5609  ;;  %v6982_v44 = vsel %vm2562_vm1, %v6587_v21, -inf  ;;  %v6986_v31 = vsel %vm2562_vm1, %v6591_v27, -inf }
 0x2f8   : > { %v2627_v40 = vsel %vm2562_vm1, %v6648_v33, -inf  ;;  %v2793_v57 = vsub.f32 %v6538_v15, %v6954_v50  ;;  %3814 = vperm.xlu0 %5567, %v3459_v1   ;;  %v6992_v63 = vpop.eup %5611  ;;  %v2620_v42 = vsel %vm2562_vm1, %v6650_v36, -inf  ;;  %5627 = vpow2.f32 %v3117_v26  ;;  %v7004_v15 = vpop.f32.mrf.mxu1 }
 0x2f9   : > { %v2929_v12 = vmul.f32 1.442695, %v2794_v62  ;;  %v2825_v23 = vsub.f32 %v6646_v32, %v6954_v50  ;;  %v7002_v27 = vsel %vm2562_vm1, %v6595_v34, -inf  ;;  %v3187_v21 = vadd.f32 %v3186_v9, %v3185_v55 }
 0x2fa   : > { %v6998_v58 = vpop.eup %5613  ;;  %8761 = vst [vmem:[#allocation78_spill] sm:$0xff] %v7002_v27  ;;  %v2993_v14 = vmul.f32 1.442695, %v2826_v60  ;;  %v3491_v1 = vmul.f32 %v6884_v28, %v6810_v41  ;;  %v7012_v26 = vsel %vm2562_vm1, %v6599_v38, -inf  ;;  %v7016_v32 = vsel %vm2562_vm1, %v6602_v46, -inf }
 0x2fb   : > { %v7008_v8 = vpop.eup %5615  ;;  %8762 = vst [vmem:[#allocation79_spill] sm:$0xff] %v7012_v26  ;;  %8763 = vst [vmem:[#allocation80_spill] sm:$0xff] %v7016_v32  ;;  %v2629_v62 = vsel %vm2562_vm1, %v6710_v13, -inf  ;;  %5629 = vpow2.f32 %v3115_v3  ;;  %v2628_v55 = vmax.f32 %v2626_v6, %v2627_v40  ;;  %v2621_v9 = vmax.f32 %v6922_v54, %v2620_v42 }
 0x2fc   : > { %v2858_v41 = vsub.f32 %v6706_v7, %v6914_v56  ;;  %v2927_v34 = vmul.f32 1.442695, %v2793_v57  ;;  %4071 = vperm.xlu0 %5567, %v3491_v1   ;;  %v3188_v46 = vsel %vm2562_vm1, %v6978_v45, 0.0  ;;  %5631 = vpow2.f32 %v2929_v12 }
 0x2fd   : > { %v7020_v60 = vpop.eup %5617  ;;  %v2991_v2 = vmul.f32 1.442695, %v2825_v23  ;;  %v2631_v3 = vsel %vm2562_vm1, %v7004_v15, -inf  ;;  %v2630_v6 = vmax.f32 %v2628_v55, %v2629_v62  ;;  %v2622_v54 = vsel %vm2562_vm1, %v6712_v16, -inf  ;;  %v7043_v23 = vpop.f32.mrf.mxu1 }
 0x2fe   : > { %v7025_v38 = vpop.eup %5619  ;;  %v3189_v40 = vadd.f32 %v3188_v46, %v3187_v21  ;;  %5633 = vpow2.f32 %v2993_v14  ;;  %v3206_v7 = vsel %vm2562_vm1, %v6998_v58, 0.0  ;;  %v3207_v57 = vsel %vm2562_vm1, %v7008_v8, 0.0 }
 0x2ff   : > { %v7031_v59 = vpop.eup %5621  ;;  %v2890_v42 = vsub.f32 %v6888_v37, %v6914_v56  ;;  %v2857_v12 = vsub.f32 %v6708_v10, %v6954_v50  ;;  %v3190_v1 = vsel %vm2562_vm1, %v6992_v63, 0.0  ;;  %v3057_v62 = vmul.f32 1.442695, %v2858_v41  ;;  %v8764_v56 = vld [vmem:[#allocation25_spill] sm:$0xff] }
 0x300   : > { %5635 = vpow2.f32 %v2927_v34  ;;  %v7047_v14 = vmax.f32 %v2630_v6, %v2631_v3  ;;  %v3199_v21 = vsel %vm2562_vm1, %v7020_v60, 0.0  ;;  %v3200_v46 = vsel %vm2562_vm1, %v7025_v38, 0.0  ;;  %v8766_v6 = vld [vmem:[#allocation26_spill] sm:$0xff] }
 0x301   : > { %5637 = vpow2.f32 %v2991_v2  ;;  %v3430_v37 = vmul.f32 %v7031_v59, %v6841_v22  ;;  %v7055_v10 = vpop.eup %5623  ;;  %v7059_v55 = vsel %vm2562_vm1, %v8764_v56, -inf  ;;  %v3191_v41 = vadd.f32 %v3190_v1, %v3189_v40  ;;  %v8771_v1 = vld [vmem:[#allocation28_spill] sm:$0xff] }
 0x302   : > { %8765 = vst [vmem:[#allocation81_spill] sm:$0xff] %v7059_v55  ;;  %v3208_v34 = vadd.f32 %v3207_v57, %v3206_v7  ;;  %v2624_v3 = vsel %vm2562_vm1, %v7043_v23, -inf  ;;  %v7065_v32 = vsel %vm2562_vm1, %v8766_v6, -inf  ;;  %v2623_v52 = vmax.f32 %v2621_v9, %v2622_v54  ;;  %v8782_v6 = vld [vmem:[#allocation35_spill] sm:$0xff] }
 0x303   : > { %8767 = vst [vmem:[#allocation82_spill] sm:$0xff] %v7065_v32  ;;  %v2889_v2 = vsub.f32 %v6904_v11, %v6954_v50  ;;  %v3055_v22 = vmul.f32 1.442695, %v2857_v12  ;;  %3604 = vperm.xlu1 %5568, %v3430_v37   ;;  %v7073_v56 = vsel %vm2562_vm1, %v8768_v47, -inf  ;;  %v3201_v40 = vadd.f32 %v3200_v46, %v3199_v21  ;;  %v8770_v11 = vld [vmem:[#allocation77_spill] sm:$0xff]  ;;  %v8780_v47 = vld [vmem:[#allocation31_spill] sm:$0xff] }
 0x304   : > { %v7069_v26 = vpop.eup %5625  ;;  %8769 = vst [vmem:[#allocation83_spill] sm:$0xff] %v7073_v56  ;;  %5639 = vpow2.f32 %v3057_v62  ;;  %v3121_v7 = vmul.f32 1.442695, %v2890_v42  ;;  %v3209_v57 = vsel %vm2562_vm1, %v7055_v10, 0.0  ;;  %v2796_v9 = vsub.f32 %v6543_v19, %v7047_v14  ;;  %v8773_v21 = vld [vmem:[#allocation29_spill] sm:$0xff] }
 0x305   : > { %v7079_v54 = vmax.f32 %v2623_v52, %v2624_v3  ;;  %v3523_v50 = vmul.f32 %v6884_v28, %v8770_v11  ;;  %v7083_v12 = vpop.eup %5627  ;;  %v7087_v37 = vsel %vm2562_vm1, %v8771_v1, -inf  ;;  %v7091_v42 = vsel %vm2562_vm1, %v8773_v21, -inf  ;;  %v8775_v3 = vld [vmem:[#allocation30_spill] sm:$0xff]  ;;  %v8777_v1 = vld [vmem:[#allocation33_spill] sm:$0xff] }
 0x306   : > { %8772 = vst [vmem:[#allocation77_spill] sm:$0xff] %v7087_v37  ;;  %8774 = vst [vmem:[#allocation84_spill] sm:$0xff] %v7091_v42  ;;  %5641 = vrcp.f32 %v3191_v41  ;;  %v3210_v62 = vadd.f32 %v3209_v57, %v3208_v34  ;;  %v3202_v19 = vsel %vm2562_vm1, %v7069_v26, 0.0  ;;  %v3119_v52 = vmul.f32 1.442695, %v2889_v2  ;;  %v8778_v34 = vld [vmem:[#allocation34_spill] sm:$0xff]  ;;  %v7127_v42 = vpop.f32.mrf.mxu1 }
 0x307   : > { %5643 = vpow2.f32 %v3055_v22  ;;  %v2828_v28 = vsub.f32 %v6648_v33, %v7047_v14  ;;  %4328 = vperm.xlu0 %5567, %v3523_v50   ;;  %v7101_v11 = vsel %vm2562_vm1, %v8775_v3, -inf  ;;  %v2641_v21 = vsel %vm2562_vm1, %v8777_v1, -inf }
 0x308   : > { %v7097_v46 = vpop.eup %5629  ;;  %8776 = vst [vmem:[#allocation85_spill] sm:$0xff] %v7101_v11  ;;  %v3203_v41 = vadd.f32 %v3202_v19, %v3201_v40  ;;  %5645 = vpow2.f32 %v3121_v7  ;;  %v2634_v57 = vsel %vm2562_vm1, %v8778_v34, -inf  ;;  %v3211_v2 = vsel %vm2562_vm1, %v7083_v12, 0.0 }
 0x309   : > { %v2933_v22 = vmul.f32 1.442695, %v2796_v9  ;;  %v2795_v33 = vsub.f32 %v6547_v24, %v7079_v54  ;;  %v7111_v50 = vpop.eup %5631  ;;  %v7115_v3 = vsel %vm2562_vm1, %v8780_v47, -inf  ;;  %v7119_v40 = vsel %vm2562_vm1, %v8782_v6, -inf }
 0x30a   : > { %8779 = vst [vmem:[#allocation33_spill] sm:$0xff] %v7111_v50  ;;  %8781 = vst [vmem:[#allocation34_spill] sm:$0xff] %v7115_v3  ;;  %v3212_v7 = vadd.f32 %v3211_v2, %v3210_v62  ;;  %v2827_v19 = vsub.f32 %v6650_v36, %v7079_v54  ;;  %v3204_v9 = vsel %vm2562_vm1, %v7097_v46, 0.0  ;;  %5647 = vpow2.f32 %v3119_v52  ;;  %v8784_v3 = vld [vmem:[#allocation32_spill] sm:$0xff] }
 0x30b   : > { %v7123_v11 = vpop.eup %5633  ;;  %v2997_v24 = vmul.f32 1.442695, %v2828_v28  ;;  %v3462_v47 = vmul.f32 %v7031_v59, %v6850_v18  ;;  %v7133_v37 = vsel %vm2562_vm1, %v8784_v3, -inf  ;;  %v2642_v62 = vmax.f32 %v6926_v20, %v2641_v21  ;;  %v8787_v28 = vld [vmem:[#allocation55_spill] sm:$0xff] }
 0x30c   : > { %8783 = vst [vmem:[#allocation35_spill] sm:$0xff] %v7123_v11  ;;  %8785 = vst [vmem:[#allocation86_spill] sm:$0xff] %v7133_v37  ;;  %v2635_v36 = vmax.f32 %v6932_v61, %v2634_v57  ;;  %v3205_v2 = vadd.f32 %v3204_v9, %v3203_v41  ;;  %v2643_v32 = vsel %vm2562_vm1, %v8787_v28, -inf  ;;  %5649 = vpow2.f32 %v2933_v22  ;;  %v8789_v41 = vld [vmem:[#allocation36_spill] sm:$0xff]  ;;  %v7157_v22 = vpop.f32.mrf.mxu1 }
 0x30d   : > { %v7137_v56 = vpop.eup %5635  ;;  %v2931_v55 = vmul.f32 1.442695, %v2795_v33  ;;  %3829 = vperm.xlu1 %5568, %v3462_v47   ;;  %5651 = vrcp.f32 %v3212_v7  ;;  %v3220_v20 = vsel %vm2562_vm1, %v7111_v50, 0.0  ;;  %v3221_v61 = vsel %vm2562_vm1, %v7123_v11, 0.0  ;;  %v8790_v7 = vld [vmem:[#allocation56_spill] sm:$0xff]  ;;  %v8791_v11 = vld [vmem:[#allocation37_spill] sm:$0xff] }
 0x30e   : > { %8786 = vst [vmem:[#allocation87_spill] sm:$0xff] %v7137_v56  ;;  %v7143_v18 = vpop.eup %5637  ;;  %v2995_v21 = vmul.f32 1.442695, %v2827_v19  ;;  %v7151_v57 = vsel %vm2562_vm1, %v8789_v41, -inf  ;;  %v2860_v9 = vsub.f32 %v6710_v13, %v7047_v14  ;;  %5653 = vpow2.f32 %v2997_v24 }
 0x30f   : > { %8788 = vst [vmem:[#allocation55_spill] sm:$0xff] %v7143_v18  ;;  %v2645_v47 = vsel %vm2562_vm1, %v7127_v42, -inf  ;;  %v2644_v33 = vmax.f32 %v2642_v62, %v2643_v32  ;;  %v2636_v52 = vsel %vm2562_vm1, %v8790_v7, -inf  ;;  %5655 = vrcp.f32 %v3205_v2 }
 0x310   : > { %v2859_v19 = vsub.f32 %v6712_v16, %v7079_v54  ;;  %v3222_v37 = vadd.f32 %v3221_v61, %v3220_v20  ;;  %v3213_v13 = vsel %vm2562_vm1, %v7137_v56, 0.0  ;;  %v3214_v24 = vsel %vm2562_vm1, %v7143_v18, 0.0 }
 0x311   : > { %v7163_v3 = vpop.eup %5639  ;;  %5657 = vpow2.f32 %v2931_v55  ;;  %v7171_v32 = vsel %vm2562_vm1, %v8791_v11, -inf  ;;  %v7173_v62 = vmax.f32 %v2644_v33, %v2645_v47  ;;  %v2638_v16 = vsel %vm2562_vm1, %v7157_v22, -inf }
 0x312   : > { %5659 = vpow2.f32 %v2995_v21  ;;  %v2637_v61 = vmax.f32 %v2635_v36, %v2636_v52  ;;  %v2892_v56 = vsub.f32 %v7004_v15, %v7047_v14  ;;  %v3061_v18 = vmul.f32 1.442695, %v2860_v9  ;;  %v8792_v14 = vld [vmem:[#allocation38_spill] sm:$0xff] }
 0x313   : > { %v5642_v2 = vpop.eup %5641  ;;  %v3223_v11 = vsel %vm2562_vm1, %v7163_v3, 0.0  ;;  %v3215_v21 = vadd.f32 %v3214_v24, %v3213_v13  ;;  %v2891_v47 = vsub.f32 %v7043_v23, %v7079_v54  ;;  %v3059_v33 = vmul.f32 1.442695, %v2859_v19  ;;  %v8793_v13 = vld [vmem:[#allocation39_spill] sm:$0xff] }
 0x314   : > { %v7181_v55 = vpop.eup %5643  ;;  %v3224_v36 = vadd.f32 %v3223_v11, %v3222_v37  ;;  %v7191_v52 = vmax.f32 %v2637_v61, %v2638_v16  ;;  %v3494_v15 = vmul.f32 %v7031_v59, %v6868_v51  ;;  %v7197_v9 = vsel %vm2562_vm1, %v8792_v14, -inf }
 0x315   : > { %v7187_v50 = vpop.eup %5645  ;;  %v7201_v24 = vsel %vm2562_vm1, %v8793_v13, -inf  ;;  %v2798_v23 = vsub.f32 %v6551_v29, %v7173_v62  ;;  %v3461_v54 = vmul.f32 %v5642_v2, %v6940_v0  ;;  %v3216_v37 = vsel %vm2562_vm1, %v7181_v55, 0.0  ;;  %v8794_v29 = vld [vmem:[#allocation40_spill] sm:$0xff] }
 0x316   : > { %5661 = vpow2.f32 %v3061_v18  ;;  %v3125_v11 = vmul.f32 1.442695, %v2892_v56  ;;  %v2830_v51 = vsub.f32 %v8777_v1, %v7173_v62  ;;  %4086 = vperm.xlu1 %5568, %v3494_v15   ;;  %v3225_v16 = vsel %vm2562_vm1, %v7187_v50, 0.0  ;;  %v8797_v15 = vld [vmem:[#allocation41_spill] sm:$0xff] }
 0x317   : > { %v7210_v19 = vpop.eup %5647  ;;  %v3217_v61 = vadd.f32 %v3216_v37, %v3215_v21  ;;  %5663 = vpow2.f32 %v3059_v33  ;;  %v3123_v20 = vmul.f32 1.442695, %v2891_v47  ;;  %3824 = vperm.xlu0 %5567, %v3461_v54   ;;  %v7216_v0 = vsel %vm2562_vm1, %v8794_v29, -inf }
 0x318   : > { %8795 = vst [vmem:[#allocation36_spill] sm:$0xff] %v7216_v0  ;;  %v3226_v13 = vadd.f32 %v3225_v16, %v3224_v36  ;;  %v2797_v56 = vsub.f32 %v6555_v35, %v7191_v52  ;;  %v3526_v1 = vmul.f32 %v7031_v59, %v6882_v5  ;;  %v2937_v21 = vmul.f32 1.442695, %v2798_v23  ;;  %v7235_v5 = vpop.f32.mrf.mxu1  ;;  %v8796_v23 = vld [vmem:[#allocation57_spill] sm:$0xff] }
 0x319   : > { %v7222_v18 = vpop.eup %5649  ;;  %v2829_v47 = vsub.f32 %v8778_v34, %v7191_v52  ;;  %v3493_v33 = vmul.f32 %v5642_v2, %v6978_v45  ;;  %v3218_v35 = vsel %vm2562_vm1, %v7210_v19, 0.0  ;;  %5665 = vpow2.f32 %v3125_v11 }
 0x31a   : > { %v7229_v54 = vpop.eup %5651  ;;  %v3001_v59 = vmul.f32 1.442695, %v2830_v51  ;;  %4343 = vperm.xlu1 %5568, %v3526_v1   ;;  %v2657_v45 = vsel %vm2562_vm1, %v8796_v23, -inf  ;;  %v3219_v16 = vadd.f32 %v3218_v35, %v3217_v61  ;;  %5667 = vpow2.f32 %v3123_v20 }
 0x31b   : > { %v7237_v37 = vpop.eup %5653  ;;  %4081 = vperm.xlu0 %5567, %v3493_v33   ;;  %v7247_v11 = vsel %vm2562_vm1, %v8797_v15, -inf  ;;  %5669 = vrcp.f32 %v3226_v13  ;;  %v2935_v51 = vmul.f32 1.442695, %v2797_v56  ;;  %v3429_v1 = vmul.f32 %v5642_v2, %v6928_v48  ;;  %v8798_v33 = vld [vmem:[#allocation42_spill] sm:$0xff] }
 0x31c   : > { %v7243_v36 = vpop.eup %5655  ;;  %5671 = vpow2.f32 %v2937_v21  ;;  %v2999_v34 = vmul.f32 1.442695, %v2829_v47  ;;  %v2659_v0 = vsel %vm2562_vm1, %v7235_v5, -inf  ;;  %v3525_v20 = vmul.f32 %v5642_v2, %v6992_v63  ;;  %v8800_v21 = vld [vmem:[#allocation58_spill] sm:$0xff] }
 0x31d   : > { %v7259_v35 = vsel %vm2562_vm1, %v8798_v33, -inf  ;;  %v8799_v13 = vmax.f32 %v6936_v4, %v7119_v40  ;;  %v2862_v48 = vsub.f32 %v8787_v28, %v7173_v62  ;;  %5673 = vpow2.f32 %v3001_v59  ;;  %v7272_v33 = vpop.f32.mrf.mxu1 }
 0x31e   : > { %v7250_v29 = vpop.eup %5657  ;;  %3599 = vperm.xlu1 %5568, %v3429_v1   ;;  %v2650_v47 = vsel %vm2562_vm1, %v8800_v21, -inf  ;;  %5675 = vrcp.f32 %v3219_v16  ;;  %v3234_v63 = vsel %vm2562_vm1, %v7222_v18, 0.0  ;;  %v2861_v2 = vsub.f32 %v8790_v7, %v7191_v52 }
 0x31f   : > { %v7255_v61 = vpop.eup %5659  ;;  %v2658_v56 = vmax.f32 %v8799_v13, %v2657_v45  ;;  %4338 = vperm.xlu0 %5567, %v3525_v20   ;;  %v3235_v4 = vsel %vm2562_vm1, %v7237_v37, 0.0  ;;  %5677 = vpow2.f32 %v2935_v51  ;;  %v3432_v28 = vmul.f32 %v7229_v54, %v6998_v58 }
 0x320   : > { %v3227_v59 = vsel %vm2562_vm1, %v7250_v29, 0.0  ;;  %v3228_v45 = vsel %vm2562_vm1, %v7255_v61, 0.0  ;;  %5679 = vpow2.f32 %v2999_v34  ;;  %v3431_v7 = vmul.f32 %v7243_v36, %v7020_v60 }
 0x321   : > { %v7276_v40 = vmax.f32 %v2658_v56, %v2659_v0  ;;  %v2894_v0 = vsub.f32 %v7127_v42, %v7173_v62  ;;  %v3065_v51 = vmul.f32 1.442695, %v2862_v48  ;;  %v2652_v58 = vsel %vm2562_vm1, %v7272_v33, -inf  ;;  %v8802_v62 = vld [vmem:[#allocation43_spill] sm:$0xff] }
 0x322   : > { %3614 = vperm.xlu1 %5568, %v3432_v28   ;;  %v8801_v20 = vmax.f32 %v6944_v30, %v7151_v57  ;;  %v3236_v13 = vadd.f32 %v3235_v4, %v3234_v63  ;;  %v2893_v60 = vsub.f32 %v7157_v22, %v7191_v52  ;;  %v3063_v56 = vmul.f32 1.442695, %v2861_v2  ;;  %v8803_v57 = vld [vmem:[#allocation44_spill] sm:$0xff] }
 0x323   : > { %v7292_v1 = vpop.eup %5661  ;;  %3609 = vperm.xlu0 %5567, %v3431_v7   ;;  %v7305_v48 = vsel %vm2562_vm1, %v8802_v62, -inf  ;;  %v3229_v28 = vadd.f32 %v3228_v45, %v3227_v59  ;;  %v3464_v30 = vmul.f32 %v7229_v54, %v7008_v8  ;;  %v2800_v22 = vsub.f32 %v6559_v39, %v7276_v40 }
 0x324   : > { %v2651_v34 = vmax.f32 %v8801_v20, %v2650_v47  ;;  %v7299_v16 = vpop.eup %5663  ;;  %v7311_v47 = vsel %vm2562_vm1, %v8803_v57, -inf  ;;  %v3463_v63 = vmul.f32 %v7243_v36, %v7025_v38  ;;  %v3237_v2 = vsel %vm2562_vm1, %v7292_v1, 0.0  ;;  %v8807_v57 = vld [vmem:[#allocation45_spill] sm:$0xff] }
 0x325   : > { %8804 = vst [vmem:[#allocation56_spill] sm:$0xff] %v7311_v47  ;;  %5681 = vpow2.f32 %v3065_v51  ;;  %v3129_v4 = vmul.f32 1.442695, %v2894_v0  ;;  %v2832_v8 = vsub.f32 %v8782_v6, %v7276_v40  ;;  %v3238_v45 = vadd.f32 %v3237_v2, %v3236_v13 }
 0x326   : > { %v7315_v52 = vmax.f32 %v2651_v34, %v2652_v58  ;;  %3839 = vperm.xlu1 %5568, %v3464_v30   ;;  %v7323_v59 = vpop.eup %5665  ;;  %v3230_v39 = vsel %vm2562_vm1, %v7299_v16, 0.0  ;;  %5683 = vpow2.f32 %v3063_v56  ;;  %v3127_v7 = vmul.f32 1.442695, %v2893_v60  ;;  %v8805_v34 = vld [vmem:[#allocation59_spill] sm:$0xff]  ;;  %v8806_v60 = vld [vmem:[#allocation14_spill] sm:$0xff] }
 0x327   : > { %3834 = vperm.xlu0 %5567, %v3463_v63   ;;  %v7327_v58 = vpop.eup %5667  ;;  %v3231_v51 = vadd.f32 %v3230_v39, %v3229_v28  ;;  %v3496_v6 = vmul.f32 %v7229_v54, %v7055_v10  ;;  %v2671_v13 = vsel %vm2562_vm1, %v8805_v34, -inf  ;;  %v2941_v56 = vmul.f32 1.442695, %v2800_v22  ;;  %v7341_v63 = vpop.f32.mrf.mxu1 }
 0x328   : > { %v7335_v20 = vpop.eup %5669  ;;  %v2799_v30 = vsub.f32 %v8806_v60, %v7315_v52  ;;  %v3495_v2 = vmul.f32 %v7243_v36, %v7069_v26  ;;  %v3239_v28 = vsel %vm2562_vm1, %v7323_v59, 0.0  ;;  %5685 = vpow2.f32 %v3129_v4 }
 0x329   : > { %v7345_v38 = vpop.eup %5671  ;;  %v3005_v10 = vmul.f32 1.442695, %v2832_v8  ;;  %v2831_v39 = vsub.f32 %v8789_v41, %v7315_v52  ;;  %v3240_v0 = vadd.f32 %v3239_v28, %v3238_v45  ;;  %v3232_v60 = vsel %vm2562_vm1, %v7327_v58, 0.0 }
 0x32a   : > { %4096 = vperm.xlu1 %5568, %v3496_v6   ;;  %v7351_v22 = vpop.eup %5673  ;;  %5687 = vpow2.f32 %v3127_v7  ;;  %v2864_v26 = vsub.f32 %v8796_v23, %v7276_v40  ;;  %v7361_v4 = vsel %vm2562_vm1, %v8807_v57, -inf  ;;  %v3233_v8 = vadd.f32 %v3232_v60, %v3231_v51  ;;  %v8810_v51 = vld [vmem:[#allocation60_spill] sm:$0xff] }
 0x32b   : > { %4091 = vperm.xlu0 %5567, %v3495_v2   ;;  %v7357_v42 = vpop.eup %5675  ;;  %8808 = vst [vmem:[#allocation38_spill] sm:$0xff] %v7361_v4  ;;  %v2673_v41 = vsel %vm2562_vm1, %v7341_v63, -inf  ;;  %v3528_v45 = vmul.f32 %v7229_v54, %v7083_v12  ;;  %v8809_v7 = vmax.f32 %v6948_v53, %v7171_v32  ;;  %5689 = vpow2.f32 %v2941_v56  ;;  %v8812_v56 = vld [vmem:[#allocation87_spill] sm:$0xff] }
 0x32c   : > { %v7367_v6 = vpop.eup %5677  ;;  %v2939_v2 = vmul.f32 1.442695, %v2799_v30  ;;  %v3527_v28 = vmul.f32 %v7243_v36, %v7097_v46  ;;  %v2664_v60 = vsel %vm2562_vm1, %v8810_v51, -inf  ;;  %v2896_v62 = vsub.f32 %v7235_v5, %v7276_v40  ;;  %v8811_v5 = vld [vmem:[#allocation33_spill] sm:$0xff]  ;;  %v8818_v4 = vld [vmem:[#allocation35_spill] sm:$0xff] }
 0x32d   : > { %v2672_v23 = vmax.f32 %v8809_v7, %v2671_v13  ;;  %v7374_v57 = vpop.eup %5679  ;;  %5691 = vpow2.f32 %v3005_v10  ;;  %v3003_v12 = vmul.f32 1.442695, %v2831_v39  ;;  %v3069_v54 = vmul.f32 1.442695, %v2864_v26  ;;  %v7384_v13 = vpop.f32.mrf.mxu1  ;;  %v8814_v26 = vld [vmem:[#allocation46_spill] sm:$0xff]  ;;  %v8815_v7 = vld [vmem:[#allocation47_spill] sm:$0xff] }
 0x32e   : > { %4353 = vperm.xlu1 %5568, %v3528_v45   ;;  %5693 = vrcp.f32 %v3240_v0  ;;  %v2863_v53 = vsub.f32 %v8800_v21, %v7315_v52  ;;  %v3248_v46 = vsel %vm2562_vm1, %v7345_v38, 0.0  ;;  %v3249_v36 = vsel %vm2562_vm1, %v7351_v22, 0.0 }
 0x32f   : > { %v7382_v32 = vmax.f32 %v2672_v23, %v2673_v41  ;;  %4348 = vperm.xlu0 %5567, %v3527_v28   ;;  %5695 = vrcp.f32 %v3233_v8  ;;  %v3434_v40 = vmul.f32 %v7335_v20, %v8811_v5  ;;  %v3241_v0 = vsel %vm2562_vm1, %v7367_v6, 0.0 }
 0x330   : > { %v3242_v21 = vsel %vm2562_vm1, %v7374_v57, 0.0  ;;  %5697 = vpow2.f32 %v2939_v2  ;;  %v3433_v30 = vmul.f32 %v7357_v42, %v8812_v56  ;;  %v7402_v8 = vsel %vm2562_vm1, %v8814_v26, -inf }
 0x331   : > { %5699 = vpow2.f32 %v3003_v12  ;;  %v2666_v41 = vsel %vm2562_vm1, %v7384_v13, -inf  ;;  %v7410_v23 = vsel %vm2562_vm1, %v8815_v7, -inf  ;;  %v8817_v2 = vmax.f32 %v6952_v25, %v7197_v9  ;;  %v8819_v7 = vld [vmem:[#allocation15_spill] sm:$0xff] }
 0x332   : > { %3624 = vperm.xlu1 %5568, %v3434_v40   ;;  %v7406_v45 = vpop.eup %5681  ;;  %8816 = vst [vmem:[#allocation57_spill] sm:$0xff] %v7410_v23  ;;  %v3250_v5 = vadd.f32 %v3249_v36, %v3248_v46  ;;  %v3133_v56 = vmul.f32 1.442695, %v2896_v62  ;;  %v3243_v12 = vadd.f32 %v3242_v21, %v3241_v0  ;;  %v2895_v26 = vsub.f32 %v7272_v33, %v7315_v52  ;;  %v8820_v25 = vld [vmem:[#allocation55_spill] sm:$0xff]  ;;  %v8821_v62 = vld [vmem:[#allocation80_spill] sm:$0xff]  ;;  %v8823_v52 = vld [vmem:[#allocation37_spill] sm:$0xff] }
 0x333   : > { %v2665_v28 = vmax.f32 %v8817_v2, %v2664_v60  ;;  %3619 = vperm.xlu0 %5567, %v3433_v30   ;;  %v7415_v39 = vpop.eup %5683  ;;  %v3067_v40 = vmul.f32 1.442695, %v2863_v53  ;;  %v3466_v10 = vmul.f32 %v7335_v20, %v8818_v4  ;;  %5701 = vpow2.f32 %v3069_v54  ;;  %v8824_v53 = vld [vmem:[#allocation48_spill] sm:$0xff]  ;;  %v8825_v21 = vld [vmem:[#allocation61_spill] sm:$0xff]  ;;  %v7445_v2 = vpop.f32.mrf.mxu1 }
 0x334   : > { %v2802_v47 = vsub.f32 %v8819_v7, %v7382_v32  ;;  %v3465_v9 = vmul.f32 %v7357_v42, %v8820_v25  ;;  %v3251_v33 = vsel %vm2562_vm1, %v7406_v45, 0.0  ;;  %v2834_v4 = vsub.f32 %v8823_v52, %v7382_v32  ;;  %v8826_v60 = vld [vmem:[#allocation16_spill] sm:$0xff] }
 0x335   : > { %v7423_v27 = vmax.f32 %v2665_v28, %v2666_v41  ;;  %v7435_v54 = vpop.eup %5685  ;;  %v7439_v0 = vsel %vm2562_vm1, %v8824_v53, -inf  ;;  %v2685_v30 = vsel %vm2562_vm1, %v8825_v21, -inf  ;;  %v3252_v41 = vadd.f32 %v3251_v33, %v3250_v5 }
 0x336   : > { %3849 = vperm.xlu1 %5568, %v3466_v10   ;;  %v3244_v7 = vsel %vm2562_vm1, %v7415_v39, 0.0  ;;  %5703 = vpow2.f32 %v3067_v40  ;;  %v3131_v10 = vmul.f32 1.442695, %v2895_v26  ;;  %v3498_v52 = vmul.f32 %v7335_v20, %v7163_v3 }
 0x337   : > { %3844 = vperm.xlu0 %5567, %v3465_v9   ;;  %v7447_v28 = vpop.eup %5687  ;;  %v3245_v25 = vadd.f32 %v3244_v7, %v3243_v12  ;;  %5705 = vpow2.f32 %v3133_v56  ;;  %v2945_v36 = vmul.f32 1.442695, %v2802_v47  ;;  %v2801_v53 = vsub.f32 %v8826_v60, %v7423_v27 }
 0x338   : > { %v3497_v5 = vmul.f32 %v7357_v42, %v7181_v55  ;;  %v7455_v33 = vpop.eup %5689  ;;  %v3253_v9 = vsel %vm2562_vm1, %v7435_v54, 0.0  ;;  %v3009_v23 = vmul.f32 1.442695, %v2834_v4  ;;  %v2833_v26 = vsub.f32 %v8792_v14, %v7423_v27  ;;  %v8828_v14 = vld [vmem:[#allocation62_spill] sm:$0xff] }
 0x339   : > { %v2687_v3 = vsel %vm2562_vm1, %v7445_v2, -inf  ;;  %v8827_v56 = vmax.f32 %v6958_v43, %v7201_v24  ;;  %v3254_v55 = vadd.f32 %v3253_v9, %v3252_v41  ;;  %v3246_v40 = vsel %vm2562_vm1, %v7447_v28, 0.0  ;;  %v7482_v41 = vpop.f32.mrf.mxu1 }
 0x33a   : > { %4106 = vperm.xlu1 %5568, %v3498_v52   ;;  %v7463_v47 = vpop.eup %5691  ;;  %v2866_v60 = vsub.f32 %v8805_v34, %v7382_v32  ;;  %v2678_v7 = vsel %vm2562_vm1, %v8828_v14, -inf  ;;  %v3247_v52 = vadd.f32 %v3246_v40, %v3245_v25  ;;  %5707 = vpow2.f32 %v3131_v10  ;;  %v8833_v40 = vld [vmem:[#allocation49_spill] sm:$0xff] }
 0x33b   : > { %v2686_v12 = vmax.f32 %v8827_v56, %v2685_v30  ;;  %4101 = vperm.xlu0 %5567, %v3497_v5   ;;  %v7472_v4 = vpop.eup %5693  ;;  %v3530_v46 = vmul.f32 %v7335_v20, %v7187_v50  ;;  %5709 = vpow2.f32 %v2945_v36  ;;  %v2943_v24 = vmul.f32 1.442695, %v2801_v53  ;;  %v8829_v36 = vld [vmem:[#allocation36_spill] sm:$0xff] }
 0x33c   : > { %v7478_v43 = vpop.eup %5695  ;;  %v3529_v34 = vmul.f32 %v7357_v42, %v7210_v19  ;;  %v3262_v25 = vsel %vm2562_vm1, %v7455_v33, 0.0  ;;  %v3263_v10 = vsel %vm2562_vm1, %v7463_v47, 0.0  ;;  %5711 = vpow2.f32 %v3009_v23 }
 0x33d   : > { %v7480_v30 = vmax.f32 %v2686_v12, %v2687_v3  ;;  %v7486_v5 = vpop.eup %5697  ;;  %v3007_v50 = vmul.f32 1.442695, %v2833_v26  ;;  %v8830_v53 = vmax.f32 %v6964_v49, %v8829_v36  ;;  %5713 = vrcp.f32 %v3254_v55  ;;  %v8831_v49 = vld [vmem:[#allocation17_spill] sm:$0xff]  ;;  %v8832_v55 = vld [vmem:[#allocation39_spill] sm:$0xff] }
 0x33e   : > { %4363 = vperm.xlu1 %5568, %v3530_v46   ;;  %v7492_v20 = vpop.eup %5699  ;;  %v2898_v19 = vsub.f32 %v7341_v63, %v7382_v32  ;;  %v3073_v42 = vmul.f32 1.442695, %v2866_v60  ;;  %5715 = vrcp.f32 %v3247_v52  ;;  %v2865_v3 = vsub.f32 %v8810_v51, %v7423_v27 }
 0x33f   : > { %v2679_v9 = vmax.f32 %v8830_v53, %v2678_v7  ;;  %4358 = vperm.xlu0 %5567, %v3529_v34   ;;  %v2680_v23 = vsel %vm2562_vm1, %v7482_v41, -inf  ;;  %v3436_v46 = vmul.f32 %v7472_v4, %v7222_v18  ;;  %v3264_v26 = vadd.f32 %v3263_v10, %v3262_v25  ;;  %v8834_v7 = vld [vmem:[#allocation50_spill] sm:$0xff] }
 0x340   : > { %5717 = vpow2.f32 %v2943_v24  ;;  %v2804_v56 = vsub.f32 %v8831_v49, %v7480_v30  ;;  %v3435_v63 = vmul.f32 %v7478_v43, %v7250_v29  ;;  %v7509_v32 = vpop.eup %5701  ;;  %v3255_v12 = vsel %vm2562_vm1, %v7486_v5, 0.0 }
 0x341   : > { %v3256_v51 = vsel %vm2562_vm1, %v7492_v20, 0.0  ;;  %5719 = vpow2.f32 %v3007_v50  ;;  %v2836_v18 = vsub.f32 %v8832_v55, %v7480_v30  ;;  %v7519_v60 = vsel %vm2562_vm1, %v8833_v40, -inf }
 0x342   : > { %3634 = vperm.xlu1 %5568, %v3436_v46   ;;  %v7523_v29 = vsel %vm2562_vm1, %v8834_v7, -inf  ;;  %v3137_v52 = vmul.f32 1.442695, %v2898_v19  ;;  %v2897_v24 = vsub.f32 %v7384_v13, %v7423_v27  ;;  %5721 = vpow2.f32 %v3073_v42  ;;  %v8835_v27 = vld [vmem:[#allocation82_spill] sm:$0xff]  ;;  %v7551_v42 = vpop.f32.mrf.mxu1  ;;  %v8841_v13 = vld [vmem:[#allocation51_spill] sm:$0xff] }
 0x343   : > { %3629 = vperm.xlu0 %5567, %v3435_v63   ;;  %v3071_v34 = vmul.f32 1.442695, %v2865_v3  ;;  %v7527_v25 = vmax.f32 %v2679_v9, %v2680_v23  ;;  %v3468_v10 = vmul.f32 %v7472_v4, %v7237_v37  ;;  %v7531_v50 = vpop.eup %5703  ;;  %v3265_v36 = vsel %vm2562_vm1, %v7509_v32, 0.0  ;;  %v8836_v9 = vld [vmem:[#allocation83_spill] sm:$0xff]  ;;  %v8837_v23 = vld [vmem:[#allocation77_spill] sm:$0xff] }
 0x344   : > { %v3257_v53 = vadd.f32 %v3256_v51, %v3255_v12  ;;  %v2949_v46 = vmul.f32 1.442695, %v2804_v56  ;;  %v3467_v19 = vmul.f32 %v7478_v43, %v7255_v61  ;;  %v7537_v49 = vpop.eup %5705  ;;  %v3266_v3 = vadd.f32 %v3265_v36, %v3264_v26  ;;  %v8838_v51 = vld [vmem:[#allocation18_spill] sm:$0xff] }
 0x345   : > { %v3013_v37 = vmul.f32 1.442695, %v2836_v18  ;;  %5723 = vpow2.f32 %v3137_v52  ;;  %v3135_v12 = vmul.f32 1.442695, %v2897_v24  ;;  %v2868_v56 = vsub.f32 %v8825_v21, %v7480_v30 }
 0x346   : > { %3859 = vperm.xlu1 %5568, %v3468_v10   ;;  %v3258_v61 = vsel %vm2562_vm1, %v7531_v50, 0.0  ;;  %5725 = vpow2.f32 %v3071_v34  ;;  %v2803_v55 = vsub.f32 %v8838_v51, %v7527_v25  ;;  %v3500_v26 = vmul.f32 %v7472_v4, %v7292_v1  ;;  %v8839_v34 = vld [vmem:[#allocation63_spill] sm:$0xff]  ;;  %v8840_v51 = vld [vmem:[#allocation40_spill] sm:$0xff] }
 0x347   : > { %3854 = vperm.xlu0 %5567, %v3467_v19   ;;  %v7555_v18 = vpop.eup %5707  ;;  %v3267_v52 = vsel %vm2562_vm1, %v7537_v49, 0.0  ;;  %v3259_v24 = vadd.f32 %v3258_v61, %v3257_v53  ;;  %5727 = vpow2.f32 %v2949_v46  ;;  %v3499_v21 = vmul.f32 %v7478_v43, %v7299_v16 }
 0x348   : > { %v7561_v10 = vpop.eup %5709  ;;  %v2699_v36 = vsel %vm2562_vm1, %v8839_v34, -inf  ;;  %v3268_v19 = vadd.f32 %v3267_v52, %v3266_v3  ;;  %5729 = vpow2.f32 %v3013_v37  ;;  %v2835_v1 = vsub.f32 %v8840_v51, %v7527_v25  ;;  %v7581_v52 = vpop.f32.mrf.mxu1 }
 0x349   : > { %v7567_v63 = vpop.eup %5711  ;;  %v7571_v53 = vsel %vm2562_vm1, %v8841_v13, -inf  ;;  %5731 = vpow2.f32 %v3135_v12  ;;  %v2900_v16 = vsub.f32 %v7445_v2, %v7480_v30  ;;  %v3077_v46 = vmul.f32 1.442695, %v2868_v56  ;;  %v8844_v56 = vld [vmem:[#allocation64_spill] sm:$0xff] }
 0x34a   : > { %4116 = vperm.xlu1 %5568, %v3500_v26   ;;  %8842 = vst [vmem:[#allocation41_spill] sm:$0xff] %v7571_v53  ;;  %v7575_v61 = vpop.eup %5713  ;;  %v3260_v3 = vsel %vm2562_vm1, %v7555_v18, 0.0  ;;  %v2947_v37 = vmul.f32 1.442695, %v2803_v55  ;;  %v2701_v26 = vsel %vm2562_vm1, %v7551_v42, -inf  ;;  %v3532_v51 = vmul.f32 %v7472_v4, %v7323_v59 }
 0x34b   : > { %4111 = vperm.xlu0 %5567, %v3499_v21   ;;  %v7585_v12 = vpop.eup %5715  ;;  %v8843_v2 = vmax.f32 %v6968_v17, %v7247_v11  ;;  %v2692_v21 = vsel %vm2562_vm1, %v8844_v56, -inf  ;;  %v3261_v13 = vadd.f32 %v3260_v3, %v3259_v24  ;;  %v3531_v55 = vmul.f32 %v7478_v43, %v7327_v58 }
 0x34c   : > { %5733 = vrcp.f32 %v3268_v19  ;;  %v3276_v40 = vsel %vm2562_vm1, %v7561_v10, 0.0  ;;  %v3277_v59 = vsel %vm2562_vm1, %v7567_v63, 0.0  ;;  %v3011_v4 = vmul.f32 1.442695, %v2835_v1 }
 0x34d   : > { %v2700_v30 = vmax.f32 %v8843_v2, %v2699_v36  ;;  %v7594_v7 = vpop.eup %5717  ;;  %5735 = vpow2.f32 %v3077_v46  ;;  %v2867_v11 = vsub.f32 %v8828_v14, %v7527_v25  ;;  %v2694_v58 = vsel %vm2562_vm1, %v7581_v52, -inf }
 0x34e   : > { %4373 = vperm.xlu1 %5568, %v3532_v51   ;;  %v7600_v17 = vpop.eup %5719  ;;  %v8845_v43 = vmax.f32 %v6982_v44, %v7259_v35  ;;  %v3141_v19 = vmul.f32 1.442695, %v2900_v16  ;;  %5737 = vpow2.f32 %v2947_v37  ;;  %v3438_v1 = vmul.f32 %v7575_v61, %v7345_v38 }
 0x34f   : > { %v7604_v24 = vmax.f32 %v2700_v30, %v2701_v26  ;;  %4368 = vperm.xlu0 %5567, %v3531_v55   ;;  %v7613_v3 = vpop.eup %5721  ;;  %5739 = vrcp.f32 %v3261_v13  ;;  %v3278_v46 = vadd.f32 %v3277_v59, %v3276_v40  ;;  %v2899_v14 = vsub.f32 %v7482_v41, %v7527_v25  ;;  %v8847_v40 = vld [vmem:[#allocation65_spill] sm:$0xff]  ;;  %v8848_v25 = vld [vmem:[#allocation19_spill] sm:$0xff]  ;;  %v8849_v59 = vld [vmem:[#allocation52_spill] sm:$0xff] }
 0x350   : > { %v2693_v36 = vmax.f32 %v8845_v43, %v2692_v21  ;;  %v3437_v26 = vmul.f32 %v7585_v12, %v7367_v6  ;;  %v3269_v51 = vsel %vm2562_vm1, %v7594_v7, 0.0  ;;  %v3270_v44 = vsel %vm2562_vm1, %v7600_v17, 0.0 }
 0x351   : > { %5741 = vpow2.f32 %v3011_v4  ;;  %v2713_v16 = vsel %vm2562_vm1, %v8847_v40, -inf  ;;  %v3075_v41 = vmul.f32 1.442695, %v2867_v11  ;;  %v2806_v6 = vsub.f32 %v8848_v25, %v7604_v24  ;;  %v8853_v25 = vld [vmem:[#allocation20_spill] sm:$0xff] }
 0x352   : > { %v7623_v35 = vmax.f32 %v2693_v36, %v2694_v58  ;;  %3644 = vperm.xlu1 %5568, %v3438_v1   ;;  %v7631_v37 = vpop.eup %5723  ;;  %v3279_v2 = vsel %vm2562_vm1, %v7613_v3, 0.0  ;;  %5743 = vpow2.f32 %v3141_v19  ;;  %v2838_v30 = vsub.f32 %v8797_v15, %v7604_v24  ;;  %v8852_v1 = vld [vmem:[#allocation66_spill] sm:$0xff] }
 0x353   : > { %3639 = vperm.xlu0 %5567, %v3437_v26   ;;  %v3470_v21 = vmul.f32 %v7575_v61, %v7351_v22  ;;  %v7639_v55 = vpop.eup %5725  ;;  %v7643_v4 = vsel %vm2562_vm1, %v8849_v59, -inf  ;;  %v3280_v11 = vadd.f32 %v3279_v2, %v3278_v46  ;;  %v3271_v58 = vadd.f32 %v3270_v44, %v3269_v51  ;;  %v7656_v59 = vpop.f32.mrf.mxu1 }
 0x354   : > { %8850 = vst [vmem:[#allocation58_spill] sm:$0xff] %v7643_v4  ;;  %v3469_v43 = vmul.f32 %v7585_v12, %v7374_v57  ;;  %v7647_v36 = vpop.eup %5727  ;;  %v8851_v19 = vmax.f32 %v6986_v31, %v7305_v48  ;;  %v2706_v22 = vsel %vm2562_vm1, %v8852_v1, -inf  ;;  %v3139_v26 = vmul.f32 1.442695, %v2899_v14  ;;  %v8854_v31 = vld [vmem:[#allocation42_spill] sm:$0xff] }
 0x355   : > { %v2805_v13 = vsub.f32 %v8853_v25, %v7623_v35  ;;  %v7658_v46 = vpop.eup %5729  ;;  %v3281_v57 = vsel %vm2562_vm1, %v7631_v37, 0.0  ;;  %5745 = vpow2.f32 %v3075_v41  ;;  %v2953_v51 = vmul.f32 1.442695, %v2806_v6 }
 0x356   : > { %v2714_v15 = vmax.f32 %v8851_v19, %v2713_v16  ;;  %3869 = vperm.xlu1 %5568, %v3470_v21   ;;  %v2837_v48 = vsub.f32 %v8854_v31, %v7623_v35  ;;  %v7664_v44 = vpop.eup %5731  ;;  %v3272_v14 = vsel %vm2562_vm1, %v7639_v55, 0.0  ;;  %v2870_v16 = vsub.f32 %v8839_v34, %v7604_v24 }
 0x357   : > { %3864 = vperm.xlu0 %5567, %v3469_v43   ;;  %v3017_v2 = vmul.f32 1.442695, %v2838_v30  ;;  %v3502_v21 = vmul.f32 %v7575_v61, %v7406_v45  ;;  %v3282_v19 = vadd.f32 %v3281_v57, %v3280_v11  ;;  %v3273_v25 = vadd.f32 %v3272_v14, %v3271_v58 }
 0x358   : > { %v2715_v41 = vsel %vm2562_vm1, %v7656_v59, -inf  ;;  %v3501_v6 = vmul.f32 %v7585_v12, %v7415_v39  ;;  %v3290_v43 = vsel %vm2562_vm1, %v7647_v36, 0.0  ;;  %v3291_v31 = vsel %vm2562_vm1, %v7658_v46, 0.0 }
 0x359   : > { %5747 = vpow2.f32 %v3139_v26  ;;  %v2951_v34 = vmul.f32 1.442695, %v2805_v13  ;;  %v7680_v30 = vpop.eup %5733  ;;  %v2902_v45 = vsub.f32 %v7551_v42, %v7604_v24  ;;  %v2869_v11 = vsub.f32 %v8844_v56, %v7623_v35  ;;  %v7692_v13 = vpop.f32.mrf.mxu1 }
 0x35a   : > { %4126 = vperm.xlu1 %5568, %v3502_v21   ;;  %5749 = vpow2.f32 %v2953_v51  ;;  %v3015_v58 = vmul.f32 1.442695, %v2837_v48  ;;  %v7686_v39 = vpop.eup %5735  ;;  %v3274_v57 = vsel %vm2562_vm1, %v7664_v44, 0.0  ;;  %v7690_v26 = vmax.f32 %v2714_v15, %v2715_v41  ;;  %v8855_v21 = vld [vmem:[#allocation85_spill] sm:$0xff]  ;;  %v8856_v15 = vld [vmem:[#allocation78_spill] sm:$0xff]  ;;  %v8857_v41 = vld [vmem:[#allocation56_spill] sm:$0xff] }
 0x35b   : > { %4121 = vperm.xlu0 %5567, %v3501_v6   ;;  %5751 = vpow2.f32 %v3017_v2  ;;  %v3534_v14 = vmul.f32 %v7575_v61, %v7435_v54  ;;  %v7696_v42 = vpop.eup %5737  ;;  %v3275_v24 = vadd.f32 %v3274_v57, %v3273_v25  ;;  %v3292_v56 = vadd.f32 %v3291_v31, %v3290_v43  ;;  %v8859_v61 = vld [vmem:[#allocation67_spill] sm:$0xff]  ;;  %v8860_v43 = vld [vmem:[#allocation21_spill] sm:$0xff] }
 0x35c   : > { %5753 = vrcp.f32 %v3282_v19  ;;  %v3533_v51 = vmul.f32 %v7585_v12, %v7447_v28  ;;  %v7700_v48 = vpop.eup %5739  ;;  %v8858_v6 = vmax.f32 %v8856_v15, %v8857_v41  ;;  %v3081_v38 = vmul.f32 1.442695, %v2870_v16  ;;  %v3556_v2 = vld [vmem:[%s6117_s2 + $0x8] sm:$0xff] }
 0x35d   : > { %5755 = vpow2.f32 %v2951_v34  ;;  %v2727_v19 = vsel %vm2562_vm1, %v8859_v61, -inf  ;;  %v2901_v28 = vsub.f32 %v7581_v52, %v7623_v35  ;;  %v2708_v12 = vsel %vm2562_vm1, %v7692_v13, -inf }
 0x35e   : > { %v2707_v53 = vmax.f32 %v8858_v6, %v2706_v22  ;;  %4383 = vperm.xlu1 %5568, %v3534_v14   ;;  %v7707_v54 = vpop.eup %5741  ;;  %5757 = vpow2.f32 %v3015_v58  ;;  %v3293_v22 = vsel %vm2562_vm1, %v7686_v39, 0.0  ;;  %v3079_v16 = vmul.f32 1.442695, %v2869_v11  ;;  %v8866_v6 = vld [vmem:[#allocation43_spill] sm:$0xff] }
 0x35f   : > { %4378 = vperm.xlu0 %5567, %v3533_v51   ;;  %v2808_v31 = vsub.f32 %v8860_v43, %v7690_v26  ;;  %v3440_v34 = vmul.f32 %v7680_v30, %v7455_v33  ;;  %v7721_v57 = vpop.eup %5743  ;;  %5759 = vrcp.f32 %v3275_v24  ;;  %v3294_v52 = vadd.f32 %v3293_v22, %v3292_v56  ;;  %v8862_v33 = vld [vmem:[#allocation53_spill] sm:$0xff]  ;;  %v8863_v24 = vld [vmem:[#allocation79_spill] sm:$0xff]  ;;  %v8864_v56 = vld [vmem:[#allocation38_spill] sm:$0xff] }
 0x360   : > { %8861 = vst [vmem:[#allocation59_spill] sm:$0xff] %v7721_v57  ;;  %v3145_v35 = vmul.f32 1.442695, %v2902_v45  ;;  %v3439_v58 = vmul.f32 %v7700_v48, %v7486_v5  ;;  %v3283_v14 = vsel %vm2562_vm1, %v7696_v42, 0.0  ;;  %v3284_v11 = vsel %vm2562_vm1, %v7707_v54, 0.0  ;;  %v4841_v43 = vld [vmem:[%s6117_s2 + $0x108] sm:$0xff] }
 0x361   : > { %5761 = vpow2.f32 %v3081_v38  ;;  %v7729_v51 = vmax.f32 %v2707_v53, %v2708_v12  ;;  %v7733_v15 = vsel %vm2562_vm1, %v8862_v33, -inf  ;;  %v8865_v45 = vmax.f32 %v8863_v24, %v8864_v56  ;;  %v8867_v33 = vld [vmem:[#allocation22_spill] sm:$0xff] }
 0x362   : > { %3654 = vperm.xlu1 %5568, %v3440_v34   ;;  %v3143_v5 = vmul.f32 1.442695, %v2901_v28  ;;  %v2840_v22 = vsub.f32 %v8866_v6, %v7690_v26  ;;  %v7742_v53 = vpop.eup %5745  ;;  %v3295_v12 = vsel %vm2562_vm1, %v7721_v57, 0.0  ;;  %5763 = vpow2.f32 %v3079_v16 }
 0x363   : > { %v3820_v25 = vpop.permute.xlu1 %3819  ;;  %v2728_v41 = vmax.f32 %v8865_v45, %v2727_v19  ;;  %3649 = vperm.xlu0 %5567, %v3439_v58   ;;  %v3595_v38 = vpop.permute.xlu0 %3594  ;;  %v2957_v34 = vmul.f32 1.442695, %v2808_v31  ;;  %v3472_v24 = vmul.f32 %v7680_v30, %v7463_v47  ;;  %v3296_v19 = vadd.f32 %v3295_v12, %v3294_v52  ;;  %v4873_v45 = vld [vmem:[%s6117_s2 + $0x208] sm:$0xff]  ;;  %v8868_v52 = vld [vmem:[#allocation44_spill] sm:$0xff] }
 0x364   : > { %v3285_v56 = vadd.f32 %v3284_v11, %v3283_v14  ;;  %v2872_v28 = vsub.f32 %v8847_v40, %v7690_v26  ;;  %v3471_v58 = vmul.f32 %v7700_v48, %v7492_v20  ;;  %5765 = vpow2.f32 %v3145_v35  ;;  %v7761_v14 = vpop.f32.mrf.mxu1 }
 0x365   : > { %v2807_v4 = vsub.f32 %v8867_v33, %v7729_v51  ;;  %v3973_v16 = vmul.f32 %v4841_v43, %v3820_v25  ;;  %v3748_v31 = vmul.f32 %v3595_v38, %v3556_v2  ;;  %5767 = vpow2.f32 %v3143_v5 }
 0x366   : > { %3879 = vperm.xlu1 %5568, %v3472_v24   ;;  %v7755_v57 = vpop.eup %5747  ;;  %v2904_v47 = vsub.f32 %v7656_v59, %v7690_v26  ;;  %v3021_v40 = vmul.f32 1.442695, %v2840_v22  ;;  %v2839_v20 = vsub.f32 %v8868_v52, %v7729_v51  ;;  %v3286_v25 = vsel %vm2562_vm1, %v7742_v53, 0.0  ;;  %v4905_v22 = vld [vmem:[%s6117_s2 + $0x308] sm:$0xff] }
 0x367   : > { %v4077_v6 = vpop.permute.xlu1 %4076  ;;  %3874 = vperm.xlu0 %5567, %v3471_v58   ;;  %v7763_v35 = vpop.eup %5749  ;;  %5769 = vpow2.f32 %v2957_v34  ;;  %v3504_v2 = vmul.f32 %v7680_v30, %v7509_v32  ;;  %v3287_v59 = vadd.f32 %v3286_v25, %v3285_v56  ;;  %v3085_v26 = vmul.f32 1.442695, %v2872_v28  ;;  %v8869_v25 = vld [vmem:[#allocation68_spill] sm:$0xff] }
 0x368   : > { %v4230_v11 = vmul.f32 %v4873_v45, %v4077_v6  ;;  %v7769_v33 = vpop.eup %5751  ;;  %5771 = vrcp.f32 %v3296_v19  ;;  %v3503_v5 = vmul.f32 %v7700_v48, %v7531_v50  ;;  %v3288_v38 = vsel %vm2562_vm1, %v7755_v57, 0.0 }
 0x369   : > { %v7774_v43 = vpop.eup %5753  ;;  %v2955_v12 = vmul.f32 1.442695, %v2807_v4  ;;  %v2729_v34 = vsel %vm2562_vm1, %v7761_v14, -inf  ;;  %v4005_v32 = vadd.f32 %v3973_v16, %v3748_v31  ;;  %v3304_v19 = vsel %vm2562_vm1, %v7763_v35, 0.0 }
 0x36a   : > { %4136 = vperm.xlu1 %5568, %v3504_v2   ;;  %v7781_v24 = vpop.eup %5755  ;;  %5773 = vpow2.f32 %v3021_v40  ;;  %v2871_v50 = vsub.f32 %v8852_v1, %v7729_v51  ;;  %v3019_v56 = vmul.f32 1.442695, %v2839_v20  ;;  %v3305_v4 = vsel %vm2562_vm1, %v7769_v33, 0.0  ;;  %v7795_v40 = vpop.f32.mrf.mxu1 }
 0x36b   : > { %4131 = vperm.xlu0 %5567, %v3503_v5   ;;  %v7787_v58 = vpop.eup %5757  ;;  %v3536_v45 = vmul.f32 %v7680_v30, %v7537_v49  ;;  %v4262_v6 = vadd.f32 %v4230_v11, %v4005_v32  ;;  %v3289_v31 = vadd.f32 %v3288_v38, %v3287_v59  ;;  %5775 = vpow2.f32 %v3085_v26 }
 0x36c   : > { %v4334_v28 = vpop.permute.xlu1 %4333  ;;  %v7793_v52 = vmax.f32 %v2728_v41, %v2729_v34  ;;  %v3535_v1 = vmul.f32 %v7700_v48, %v7555_v18  ;;  %v7799_v20 = vpop.eup %5759  ;;  %v2720_v2 = vsel %vm2562_vm1, %v8869_v25, -inf  ;;  %v3149_v5 = vmul.f32 1.442695, %v2904_v47 }
 0x36d   : > { %v4487_v16 = vmul.f32 %v4905_v22, %v4334_v28  ;;  %5777 = vpow2.f32 %v2955_v12  ;;  %v3306_v11 = vadd.f32 %v3305_v4, %v3304_v19  ;;  %v3297_v41 = vsel %vm2562_vm1, %v7781_v24, 0.0  ;;  %v7809_v18 = vpop.permute.xlu0 %3589  ;;  %v8874_v28 = vld [vmem:[#allocation45_spill] sm:$0xff] }
 0x36e   : > { %4393 = vperm.xlu1 %5568, %v3536_v45   ;;  %v7803_v30 = vpop.eup %5761  ;;  %v3298_v59 = vsel %vm2562_vm1, %v7787_v58, 0.0  ;;  %5779 = vpow2.f32 %v3019_v56  ;;  %v2903_v48 = vsub.f32 %v7692_v13, %v7729_v51  ;;  %v3083_v47 = vmul.f32 1.442695, %v2871_v50  ;;  %v8872_v13 = vld [vmem:[#allocation23_spill] sm:$0xff] }
 0x36f   : > { %v4519_v49 = vadd.f32 %v4487_v16, %v4262_v6  ;;  %4388 = vperm.xlu0 %5567, %v3535_v1   ;;  %v2722_v26 = vsel %vm2562_vm1, %v7795_v40, -inf  ;;  %v3442_v22 = vmul.f32 %v7774_v43, %v7561_v10  ;;  %v7822_v38 = vpop.eup %5763  ;;  %v8871_v12 = vmax.f32 %v8821_v62, %v7402_v8  ;;  %v8873_v10 = vld [vmem:[#allocation34_spill] sm:$0xff] }
 0x370   : > { %8870 = vst [vmem:[#allocation14_spill] sm:$0xff] %v7822_v38  ;;  %5781 = vrcp.f32 %v3289_v31  ;;  %v2810_v51 = vsub.f32 %v8872_v13, %v7793_v52  ;;  %v3441_v32 = vmul.f32 %v7799_v20, %v7594_v7  ;;  %v3307_v50 = vsel %vm2562_vm1, %v7803_v30, 0.0  ;;  %v8875_v62 = vld [vmem:[#allocation54_spill] sm:$0xff]  ;;  %v8877_v31 = vld [vmem:[#allocation69_spill] sm:$0xff] }
 0x371   : > { %4551 = vst [vmem:[%s7819_s30 + $0x8] sm:$0xff] %v4519_v49  ;;  %v2721_v34 = vmax.f32 %v8871_v12, %v2720_v2  ;;  %v3299_v56 = vadd.f32 %v3298_v59, %v3297_v41  ;;  %v2842_v4 = vsub.f32 %v8874_v28, %v7793_v52  ;;  %v7837_v8 = vpop.eup %5765  ;;  %v7841_v45 = vsel %vm2562_vm1, %v8875_v62, -inf  ;;  %v8883_v62 = vld [vmem:[#allocation24_spill] sm:$0xff] }
 0x372   : > { %3664 = vperm.xlu1 %5568, %v3442_v22   ;;  %8876 = vst [vmem:[#allocation60_spill] sm:$0xff] %v7841_v45  ;;  %v3308_v6 = vadd.f32 %v3307_v50, %v3306_v11  ;;  %5783 = vpow2.f32 %v3149_v5  ;;  %v7845_v16 = vpop.eup %5767  ;;  %v2741_v1 = vsel %vm2562_vm1, %v8877_v31, -inf  ;;  %v3147_v2 = vmul.f32 1.442695, %v2903_v48  ;;  %v8880_v50 = vld [vmem:[#allocation57_spill] sm:$0xff] }
 0x373   : > { %v7843_v7 = vmax.f32 %v2721_v34, %v2722_v26  ;;  %3659 = vperm.xlu0 %5567, %v3441_v32   ;;  %5785 = vpow2.f32 %v3083_v47  ;;  %v3474_v49 = vmul.f32 %v7774_v43, %v7567_v63  ;;  %v3300_v59 = vsel %vm2562_vm1, %v7822_v38, 0.0  ;;  %v3815_v22 = vpop.permute.xlu0 %3814  ;;  %v8879_v32 = vld [vmem:[#allocation81_spill] sm:$0xff] }
 0x374   : > { %v7851_v41 = vpop.eup %5769  ;;  %v2874_v5 = vsub.f32 %v8859_v61, %v7793_v52  ;;  %v2961_v11 = vmul.f32 1.442695, %v2810_v51  ;;  %v3473_v26 = vmul.f32 %v7799_v20, %v7600_v17  ;;  %v3309_v63 = vsel %vm2562_vm1, %v7837_v8, 0.0  ;;  %v8882_v51 = vld [vmem:[#allocation70_spill] sm:$0xff] }
 0x375   : > { %v7859_v12 = vpop.eup %5771  ;;  %v3301_v34 = vadd.f32 %v3300_v59, %v3299_v56  ;;  %v3025_v13 = vmul.f32 1.442695, %v2842_v4  ;;  %v8881_v28 = vmax.f32 %v8879_v32, %v8880_v50  ;;  %v2734_v17 = vsel %vm2562_vm1, %v8882_v51, -inf  ;;  %v8884_v4 = vld [vmem:[#allocation46_spill] sm:$0xff] }
 0x376   : > { %3889 = vperm.xlu1 %5568, %v3474_v49   ;;  %v3310_v19 = vadd.f32 %v3309_v63, %v3308_v6  ;;  %v2809_v38 = vsub.f32 %v8883_v62, %v7843_v7  ;;  %5787 = vpow2.f32 %v3147_v2  ;;  %v2906_v56 = vsub.f32 %v7761_v14, %v7793_v52  ;;  %v7882_v62 = vpop.f32.mrf.mxu1 }
 0x377   : > { %v2742_v61 = vmax.f32 %v8881_v28, %v2741_v1  ;;  %3884 = vperm.xlu0 %5567, %v3473_v26   ;;  %v7872_v47 = vpop.eup %5773  ;;  %v2841_v49 = vsub.f32 %v8884_v4, %v7843_v7  ;;  %v3506_v1 = vmul.f32 %v7774_v43, %v7613_v3  ;;  %v3302_v59 = vsel %vm2562_vm1, %v7845_v16, 0.0  ;;  %v4840_v26 = vld [vmem:[%s6117_s2 + $0x100] sm:$0xff]  ;;  %v8886_v3 = vld [vmem:[#allocation71_spill] sm:$0xff] }
 0x378   : > { %5789 = vpow2.f32 %v2961_v11  ;;  %v3089_v6 = vmul.f32 1.442695, %v2874_v5  ;;  %v3505_v2 = vmul.f32 %v7799_v20, %v7639_v55  ;;  %v7887_v14 = vpop.eup %5775  ;;  %v8885_v52 = vmax.f32 %v8835_v27, %v7439_v0  ;;  %v3555_v4 = vld [vmem:[%s6117_s2] sm:$0xff]  ;;  %v4072_v27 = vpop.permute.xlu0 %4071 }
 0x379   : > { %v2755_v32 = vsel %vm2562_vm1, %v8886_v3, -inf  ;;  %v3303_v50 = vadd.f32 %v3302_v59, %v3301_v34  ;;  %5791 = vpow2.f32 %v3025_v13  ;;  %v3318_v11 = vsel %vm2562_vm1, %v7851_v41, 0.0  ;;  %v4872_v0 = vld [vmem:[%s6117_s2 + $0x200] sm:$0xff]  ;;  %v7910_v59 = vpop.f32.mrf.mxu1 }
 0x37a   : > { %v2735_v63 = vmax.f32 %v8885_v52, %v2734_v17  ;;  %4146 = vperm.xlu1 %5568, %v3506_v1   ;;  %v7894_v5 = vpop.eup %5777  ;;  %5793 = vrcp.f32 %v3310_v19  ;;  %v3319_v55 = vsel %vm2562_vm1, %v7872_v47, 0.0  ;;  %v2959_v28 = vmul.f32 1.442695, %v2809_v38 }
 0x37b   : > { %4141 = vperm.xlu0 %5567, %v3505_v2   ;;  %v7902_v17 = vpop.eup %5779  ;;  %v3023_v52 = vmul.f32 1.442695, %v2841_v49  ;;  %v2743_v34 = vsel %vm2562_vm1, %v7882_v62, -inf  ;;  %v3538_v19 = vmul.f32 %v7774_v43, %v7631_v37  ;;  %v3972_v13 = vmul.f32 %v4840_v26, %v3815_v22 }
 0x37c   : > { %5795 = vpow2.f32 %v3089_v6  ;;  %v3153_v1 = vmul.f32 1.442695, %v2906_v56  ;;  %v2873_v38 = vsub.f32 %v8869_v25, %v7843_v7  ;;  %v3537_v2 = vmul.f32 %v7799_v20, %v7664_v44  ;;  %v4904_v56 = vld [vmem:[%s6117_s2 + $0x300] sm:$0xff] }
 0x37d   : > { %v7914_v45 = vpop.eup %5781  ;;  %5797 = vrcp.f32 %v3303_v50  ;;  %v3320_v49 = vadd.f32 %v3319_v55, %v3318_v11  ;;  %v3747_v48 = vmul.f32 %v7809_v18, %v3555_v4  ;;  %v4229_v37 = vmul.f32 %v4872_v0, %v4072_v27 }
 0x37e   : > { %4403 = vperm.xlu1 %5568, %v3538_v19   ;;  %v3311_v43 = vsel %vm2562_vm1, %v7894_v5, 0.0  ;;  %v3312_v22 = vsel %vm2562_vm1, %v7902_v17, 0.0  ;;  %5799 = vpow2.f32 %v2959_v28  ;;  %v7921_v25 = vmax.f32 %v2742_v61, %v2743_v34  ;;  %v8888_v34 = vld [vmem:[#allocation25_spill] sm:$0xff] }
 0x37f   : > { %4398 = vperm.xlu0 %5567, %v3537_v2   ;;  %v7924_v44 = vpop.eup %5783  ;;  %5801 = vpow2.f32 %v3023_v52  ;;  %v2736_v20 = vsel %vm2562_vm1, %v7910_v59, -inf  ;;  %v3444_v18 = vmul.f32 %v7859_v12, %v7647_v36  ;;  %v4004_v6 = vadd.f32 %v3972_v13, %v3747_v48 }
 0x380   : > { %v7930_v26 = vpop.eup %5785  ;;  %v3321_v50 = vsel %vm2562_vm1, %v7887_v14, 0.0  ;;  %v2905_v61 = vsub.f32 %v7795_v40, %v7843_v7  ;;  %v3087_v11 = vmul.f32 1.442695, %v2873_v38  ;;  %v3443_v55 = vmul.f32 %v7914_v45, %v7696_v42  ;;  %v8889_v42 = vld [vmem:[#allocation47_spill] sm:$0xff] }
 0x381   : > { %v3322_v4 = vadd.f32 %v3321_v50, %v3320_v49  ;;  %v3313_v0 = vadd.f32 %v3312_v22, %v3311_v43  ;;  %v4261_v27 = vadd.f32 %v4229_v37, %v4004_v6  ;;  %v8887_v36 = vmax.f32 %v8836_v9, %v7519_v60  ;;  %v7961_v49 = vpop.permute.xlu1 %3604  ;;  %v8892_v6 = vld [vmem:[#allocation74_spill] sm:$0xff] }
 0x382   : > { %v4329_v28 = vpop.permute.xlu0 %4328  ;;  %3674 = vperm.xlu1 %5568, %v3444_v18   ;;  %5803 = vpow2.f32 %v3153_v1  ;;  %v2812_v19 = vsub.f32 %v8888_v34, %v7921_v25  ;;  %v7945_v40 = vmax.f32 %v2735_v63, %v2736_v20  ;;  %v2844_v7 = vsub.f32 %v8889_v42, %v7921_v25  ;;  %v8891_v20 = vld [vmem:[#allocation73_spill] sm:$0xff]  ;;  %v8894_v34 = vld [vmem:[#allocation48_spill] sm:$0xff] }
 0x383   : > { %v4486_v52 = vmul.f32 %v4904_v56, %v4329_v28  ;;  %v7941_v48 = vmax.f32 %v8887_v36, %v2755_v32  ;;  %3669 = vperm.xlu0 %5567, %v3443_v55   ;;  %v2876_v13 = vsub.f32 %v8877_v31, %v7921_v25  ;;  %v3476_v38 = vmul.f32 %v7859_v12, %v7658_v46  ;;  %v7953_v9 = vpop.eup %5787  ;;  %v8890_v31 = vld [vmem:[#allocation72_spill] sm:$0xff] }
 0x384   : > { %v3323_v32 = vsel %vm2562_vm1, %v7924_v44, 0.0  ;;  %v3314_v63 = vsel %vm2562_vm1, %v7930_v26, 0.0  ;;  %v3151_v1 = vmul.f32 1.442695, %v2905_v61  ;;  %v3475_v2 = vmul.f32 %v7914_v45, %v7707_v54  ;;  %v8893_v61 = vld [vmem:[#allocation26_spill] sm:$0xff] }
 0x385   : > { %v4518_v60 = vadd.f32 %v4486_v52, %v4261_v27  ;;  %v7963_v37 = vpop.eup %5789  ;;  %v2748_v46 = vsel %vm2562_vm1, %v8890_v31, -inf  ;;  %v3324_v43 = vadd.f32 %v3323_v32, %v3322_v4  ;;  %v3315_v22 = vadd.f32 %v3314_v63, %v3313_v0  ;;  %v7980_v27 = vpop.f32.mrf.mxu1 }
 0x386   : > { %5805 = vpow2.f32 %v3087_v11  ;;  %3899 = vperm.xlu1 %5568, %v3476_v38   ;;  %v7968_v56 = vpop.eup %5791  ;;  %v2769_v18 = vsel %vm2562_vm1, %v8891_v20, -inf  ;;  %v2762_v54 = vsel %vm2562_vm1, %v8892_v6, -inf  ;;  %v2965_v50 = vmul.f32 1.442695, %v2812_v19 }
 0x387   : > { %4550 = vst [vmem:[%s7819_s30] sm:$0xff] %v4518_v60  ;;  %v2811_v55 = vsub.f32 %v8893_v61, %v7945_v40  ;;  %3894 = vperm.xlu0 %5567, %v3475_v2   ;;  %v7976_v28 = vpop.eup %5793  ;;  %v2908_v11 = vsub.f32 %v7882_v62, %v7921_v25  ;;  %v3029_v4 = vmul.f32 1.442695, %v2844_v7  ;;  %v3093_v0 = vmul.f32 1.442695, %v2876_v13  ;;  %v8896_v2 = vld [vmem:[#allocation84_spill] sm:$0xff] }
 0x388   : > { %v3508_v52 = vmul.f32 %v7859_v12, %v7686_v39  ;;  %v3316_v36 = vsel %vm2562_vm1, %v7953_v9, 0.0  ;;  %5807 = vpow2.f32 %v3151_v1  ;;  %v2843_v19 = vsub.f32 %v8894_v34, %v7945_v40  ;;  %v3830_v63 = vpop.permute.xlu1 %3829 }
 0x389   : > { %v3507_v42 = vmul.f32 %v7914_v45, %v7742_v53  ;;  %v7990_v38 = vpop.eup %5795  ;;  %5809 = vrcp.f32 %v3324_v43  ;;  %v3317_v62 = vadd.f32 %v3316_v36, %v3315_v22  ;;  %v3332_v25 = vsel %vm2562_vm1, %v7963_v37, 0.0  ;;  %v8897_v43 = vld [vmem:[#allocation41_spill] sm:$0xff] }
 0x38a   : > { %v3333_v39 = vsel %vm2562_vm1, %v7968_v56, 0.0  ;;  %4156 = vperm.xlu1 %5568, %v3508_v52   ;;  %v7996_v7 = vpop.eup %5797  ;;  %v8895_v13 = vmax.f32 %v8837_v23, %v7523_v29  ;;  %5811 = vpow2.f32 %v2965_v50  ;;  %v2963_v53 = vmul.f32 1.442695, %v2811_v55  ;;  %v8899_v52 = vld [vmem:[#allocation58_spill] sm:$0xff]  ;;  %v8901_v23 = vld [vmem:[#allocation59_spill] sm:$0xff] }
 0x38b   : > { %v2757_v32 = vsel %vm2562_vm1, %v7980_v27, -inf  ;;  %4151 = vperm.xlu0 %5567, %v3507_v42   ;;  %v8003_v1 = vpop.eup %5799  ;;  %v8898_v22 = vmax.f32 %v8896_v2, %v8897_v43  ;;  %v8900_v36 = vmax.f32 %v8855_v21, %v8899_v52  ;;  %5813 = vpow2.f32 %v3029_v4  ;;  %v4843_v42 = vld [vmem:[%s6117_s2 + $0x118] sm:$0xff] }
 0x38c   : > { %v2749_v60 = vmax.f32 %v8895_v13, %v2748_v46  ;;  %v3540_v46 = vmul.f32 %v7859_v12, %v8901_v23  ;;  %v8017_v50 = vpop.eup %5801  ;;  %v3334_v55 = vadd.f32 %v3333_v39, %v3332_v25  ;;  %5815 = vpow2.f32 %v3093_v0  ;;  %v8902_v13 = vld [vmem:[#allocation75_spill] sm:$0xff] }
 0x38d   : > { %v8008_v61 = vmax.f32 %v8898_v22, %v2769_v18  ;;  %v8013_v29 = vmax.f32 %v8900_v36, %v2762_v54  ;;  %v3027_v34 = vmul.f32 1.442695, %v2843_v19  ;;  %v3539_v18 = vmul.f32 %v7914_v45, %v7755_v57  ;;  %v8033_v57 = vpop.f32.mrf.mxu1  ;;  %v3558_v45 = vld [vmem:[%s6117_s2 + $0x18] sm:$0xff]  ;;  %v8904_v23 = vld [vmem:[#allocation27_spill] sm:$0xff] }
 0x38e   : > { %v2783_v21 = vsel %vm2562_vm1, %v8902_v13, -inf  ;;  %5817 = vrcp.f32 %v3317_v62  ;;  %v3157_v54 = vmul.f32 1.442695, %v2908_v11  ;;  %v8025_v4 = vmax.f32 %v7941_v48, %v2757_v32  ;;  %4413 = vperm.xlu1 %5568, %v3540_v46   ;;  %v4875_v62 = vld [vmem:[%s6117_s2 + $0x218] sm:$0xff] }
 0x38f   : > { %v3335_v12 = vsel %vm2562_vm1, %v7990_v38, 0.0  ;;  %v2875_v0 = vsub.f32 %v8882_v51, %v7945_v40  ;;  %v2907_v19 = vsub.f32 %v7910_v59, %v7945_v40  ;;  %5819 = vpow2.f32 %v2963_v53  ;;  %4408 = vperm.xlu0 %5567, %v3539_v18   ;;  %v8037_v11 = vpop.eup %5803 }
 0x390   : > { %v3325_v48 = vsel %vm2562_vm1, %v8003_v1, 0.0  ;;  %v3326_v25 = vsel %vm2562_vm1, %v8017_v50, 0.0  ;;  %v3975_v39 = vmul.f32 %v4843_v42, %v3830_v63  ;;  %v3446_v51 = vmul.f32 %v7976_v28, %v7763_v35 }
 0x391   : > { %v8903_v59 = vmax.f32 %v8873_v10, %v7733_v15  ;;  %v3336_v53 = vadd.f32 %v3335_v12, %v3334_v55  ;;  %5821 = vpow2.f32 %v3027_v34  ;;  %v4087_v32 = vpop.permute.xlu1 %4086  ;;  %v3445_v2 = vmul.f32 %v7996_v7, %v7781_v24  ;;  %v4907_v24 = vld [vmem:[%s6117_s2 + $0x318] sm:$0xff] }
 0x392   : > { %5823 = vpow2.f32 %v3157_v54  ;;  %v2750_v43 = vsel %vm2562_vm1, %v8033_v57, -inf  ;;  %v3750_v63 = vmul.f32 %v7961_v49, %v3558_v45  ;;  %v4232_v22 = vmul.f32 %v4875_v62, %v4087_v32  ;;  %v3825_v35 = vpop.permute.xlu0 %3824  ;;  %3684 = vperm.xlu1 %5568, %v3446_v51   ;;  %v8905_v34 = vld [vmem:[#allocation49_spill] sm:$0xff] }
 0x393   : > { %v8048_v40 = vmax.f32 %v8903_v59, %v2783_v21  ;;  %v8055_v52 = vpop.eup %5805  ;;  %v3337_v15 = vsel %vm2562_vm1, %v8037_v11, 0.0  ;;  %v3327_v10 = vadd.f32 %v3326_v25, %v3325_v48  ;;  %v3091_v36 = vmul.f32 1.442695, %v2875_v0  ;;  %3679 = vperm.xlu0 %5567, %v3445_v2   ;;  %v8906_v21 = vld [vmem:[#allocation76_spill] sm:$0xff]  ;;  %v8080_v25 = vpop.f32.mrf.mxu1 }
 0x394   : > { %v2814_v46 = vsub.f32 %v8904_v23, %v8025_v4  ;;  %v3155_v55 = vmul.f32 1.442695, %v2907_v19  ;;  %v2846_v42 = vsub.f32 %v8905_v34, %v8025_v4  ;;  %v4007_v49 = vadd.f32 %v3975_v39, %v3750_v63  ;;  %v4842_v2 = vld [vmem:[%s6117_s2 + $0x110] sm:$0xff] }
 0x395   : > { %v3478_v18 = vmul.f32 %v7976_v28, %v7769_v33  ;;  %v8068_v54 = vsel %vm2562_vm1, %v8906_v21, -inf  ;;  %v3338_v12 = vadd.f32 %v3337_v15, %v3336_v53  ;;  %v8070_v45 = vmax.f32 %v2749_v60, %v2750_v43  ;;  %v4344_v0 = vpop.permute.xlu1 %4343  ;;  %v8074_v19 = vpop.eup %5807  ;;  %v3557_v43 = vld [vmem:[%s6117_s2 + $0x10] sm:$0xff] }
 0x396   : > { %v3477_v62 = vmul.f32 %v7996_v7, %v7787_v58  ;;  %v3328_v48 = vsel %vm2562_vm1, %v8055_v52, 0.0  ;;  %v2878_v33 = vsub.f32 %v8886_v3, %v8025_v4  ;;  %v4264_v39 = vadd.f32 %v4232_v22, %v4007_v49  ;;  %v4082_v60 = vpop.permute.xlu0 %4081  ;;  %v8082_v59 = vpop.eup %5809 }
 0x397   : > { %v4489_v51 = vmul.f32 %v4907_v24, %v4344_v0  ;;  %3909 = vperm.xlu1 %5568, %v3478_v18   ;;  %v3329_v53 = vadd.f32 %v3328_v48, %v3327_v10  ;;  %5825 = vpow2.f32 %v3091_v36  ;;  %v2910_v58 = vsub.f32 %v7980_v27, %v8025_v4  ;;  %v8088_v63 = vpop.eup %5811  ;;  %v8907_v10 = vld [vmem:[#allocation28_spill] sm:$0xff]  ;;  %v8908_v24 = vld [vmem:[#allocation14_spill] sm:$0xff] }
 0x398   : > { %v2969_v32 = vmul.f32 1.442695, %v2814_v46  ;;  %3904 = vperm.xlu0 %5567, %v3477_v62   ;;  %5827 = vpow2.f32 %v3155_v55  ;;  %v3033_v3 = vmul.f32 1.442695, %v2846_v42  ;;  %v3510_v15 = vmul.f32 %v7976_v28, %v7803_v30  ;;  %v8092_v23 = vpop.eup %5813  ;;  %v4874_v4 = vld [vmem:[%s6117_s2 + $0x210] sm:$0xff]  ;;  %v8909_v42 = vld [vmem:[#allocation50_spill] sm:$0xff] }
 0x399   : > { %v4521_v22 = vadd.f32 %v4489_v51, %v4264_v39  ;;  %5829 = vrcp.f32 %v3338_v12  ;;  %v2813_v36 = vsub.f32 %v8907_v10, %v8070_v45  ;;  %v2771_v27 = vsel %vm2562_vm1, %v8080_v25, -inf  ;;  %v3600_v46 = vpop.permute.xlu1 %3599  ;;  %v8101_v34 = vpop.eup %5815  ;;  %v4906_v10 = vld [vmem:[%s6117_s2 + $0x310] sm:$0xff] }
 0x39a   : > { %v3509_v55 = vmul.f32 %v7996_v7, %v8908_v24  ;;  %v3330_v30 = vsel %vm2562_vm1, %v8074_v19, 0.0  ;;  %v2845_v49 = vsub.f32 %v8909_v42, %v8070_v45  ;;  %v3974_v18 = vmul.f32 %v4842_v2, %v3825_v35  ;;  %v4339_v12 = vpop.permute.xlu0 %4338 }
 0x39b   : > { %4553 = vst [vmem:[%s7819_s30 + $0x18] sm:$0xff] %v4521_v22  ;;  %v3749_v0 = vmul.f32 %v3600_v46, %v3557_v43  ;;  %4166 = vperm.xlu1 %5568, %v3510_v15   ;;  %v8108_v62 = vpop.eup %5817  ;;  %v3331_v48 = vadd.f32 %v3330_v30, %v3329_v53  ;;  %v3346_v39 = vsel %vm2562_vm1, %v8088_v63, 0.0  ;;  %5831 = vpow2.f32 %v2969_v32 }
 0x39c   : > { %v3097_v51 = vmul.f32 1.442695, %v2878_v33  ;;  %4161 = vperm.xlu0 %5567, %v3509_v55   ;;  %v8113_v24 = vpop.eup %5819  ;;  %v3347_v42 = vsel %vm2562_vm1, %v8092_v23, 0.0  ;;  %v4231_v35 = vmul.f32 %v4874_v4, %v4082_v60  ;;  %v3542_v43 = vmul.f32 %v7976_v28, %v7837_v8 }
 0x39d   : > { %v4006_v2 = vadd.f32 %v3974_v18, %v3749_v0  ;;  %5833 = vpow2.f32 %v3033_v3  ;;  %v2967_v22 = vmul.f32 1.442695, %v2813_v36  ;;  %v8120_v53 = vmax.f32 %v8008_v61, %v2771_v27  ;;  %v3615_v15 = vpop.permute.xlu1 %3614 }
 0x39e   : > { %v3541_v33 = vmul.f32 %v7996_v7, %v7845_v16  ;;  %v8124_v32 = vpop.eup %5821  ;;  %v2877_v46 = vsub.f32 %v8890_v31, %v8070_v45  ;;  %v3031_v55 = vmul.f32 1.442695, %v2845_v49  ;;  %v4488_v60 = vmul.f32 %v4906_v10, %v4339_v12  ;;  %v3610_v30 = vpop.permute.xlu0 %3609  ;;  %v8910_v12 = vld [vmem:[#allocation29_spill] sm:$0xff] }
 0x39f   : > { %v4263_v4 = vadd.f32 %v4231_v35, %v4006_v2  ;;  %4423 = vperm.xlu1 %5568, %v3542_v43   ;;  %v8128_v8 = vpop.eup %5823  ;;  %v3348_v28 = vadd.f32 %v3347_v42, %v3346_v39  ;;  %5835 = vpow2.f32 %v3097_v51  ;;  %v3161_v61 = vmul.f32 1.442695, %v2910_v58  ;;  %v8132_v16 = vpop.f32.mrf.mxu1  ;;  %v3560_v42 = vld [vmem:[%s6117_s2 + $0x28] sm:$0xff] }
 0x3a0   : > { %v2909_v3 = vsub.f32 %v8033_v57, %v8070_v45  ;;  %4418 = vperm.xlu0 %5567, %v3541_v33   ;;  %5837 = vrcp.f32 %v3331_v48  ;;  %v3349_v31 = vsel %vm2562_vm1, %v8101_v34, 0.0  ;;  %v3448_v36 = vmul.f32 %v8082_v59, %v7851_v41  ;;  %v4845_v57 = vld [vmem:[%s6117_s2 + $0x128] sm:$0xff]  ;;  %v4844_v48 = vld [vmem:[%s6117_s2 + $0x120] sm:$0xff] }
 0x3a1   : > { %v4520_v7 = vadd.f32 %v4488_v60, %v4263_v4  ;;  %v3339_v27 = vsel %vm2562_vm1, %v8113_v24, 0.0  ;;  %v3340_v58 = vsel %vm2562_vm1, %v8124_v32, 0.0  ;;  %5839 = vpow2.f32 %v2967_v22  ;;  %v3840_v45 = vpop.permute.xlu1 %3839  ;;  %v4877_v35 = vld [vmem:[%s6117_s2 + $0x228] sm:$0xff]  ;;  %v4876_v60 = vld [vmem:[%s6117_s2 + $0x220] sm:$0xff] }
 0x3a2   : > { %v3447_v49 = vmul.f32 %v8108_v62, %v7894_v5  ;;  %5841 = vpow2.f32 %v3031_v55  ;;  %v3095_v18 = vmul.f32 1.442695, %v2877_v46  ;;  %v2816_v0 = vsub.f32 %v8910_v12, %v8120_v53  ;;  %v3835_v39 = vpop.permute.xlu0 %3834  ;;  %v8911_v22 = vld [vmem:[#allocation51_spill] sm:$0xff]  ;;  %v3559_v46 = vld [vmem:[%s6117_s2 + $0x20] sm:$0xff] }
 0x3a3   : > { %v2764_v41 = vsel %vm2562_vm1, %v8132_v16, -inf  ;;  %4552 = vst [vmem:[%s7819_s30 + $0x10] sm:$0xff] %v4520_v7  ;;  %3694 = vperm.xlu1 %5568, %v3448_v36   ;;  %v3350_v51 = vadd.f32 %v3349_v31, %v3348_v28  ;;  %v3351_v10 = vsel %vm2562_vm1, %v8128_v8, 0.0  ;;  %5843 = vpow2.f32 %v3161_v61 }
 0x3a4   : > { %v3159_v5 = vmul.f32 1.442695, %v2909_v3  ;;  %3689 = vperm.xlu0 %5567, %v3447_v49   ;;  %v8155_v2 = vpop.eup %5825  ;;  %v3341_v43 = vadd.f32 %v3340_v58, %v3339_v27  ;;  %v2848_v33 = vsub.f32 %v8911_v22, %v8120_v53  ;;  %v3977_v55 = vmul.f32 %v4845_v57, %v3840_v45 }
 0x3a5   : > { %v3480_v4 = vmul.f32 %v8082_v59, %v7872_v47  ;;  %v8163_v28 = vpop.eup %5827  ;;  %v2880_v61 = vsub.f32 %v8891_v20, %v8120_v53  ;;  %v8168_v3 = vmax.f32 %v8013_v29, %v2764_v41  ;;  %v3976_v31 = vmul.f32 %v4844_v48, %v3835_v39  ;;  %v4097_v7 = vpop.permute.xlu1 %4096  ;;  %v4909_v48 = vld [vmem:[%s6117_s2 + $0x328] sm:$0xff] }
 0x3a6   : > { %v3479_v36 = vmul.f32 %v8108_v62, %v7902_v17  ;;  %v8172_v27 = vpop.eup %5829  ;;  %v2912_v58 = vsub.f32 %v8080_v25, %v8120_v53  ;;  %v2973_v47 = vmul.f32 1.442695, %v2816_v0  ;;  %v3752_v57 = vmul.f32 %v3615_v15, %v3560_v42  ;;  %v4092_v49 = vpop.permute.xlu0 %4091  ;;  %v4908_v25 = vld [vmem:[%s6117_s2 + $0x320] sm:$0xff] }
 0x3a7   : > { %v4234_v45 = vmul.f32 %v4877_v35, %v4097_v7  ;;  %3919 = vperm.xlu1 %5568, %v3480_v4   ;;  %v3352_v20 = vadd.f32 %v3351_v10, %v3350_v51  ;;  %v3342_v29 = vsel %vm2562_vm1, %v8155_v2, 0.0  ;;  %v3751_v12 = vmul.f32 %v3610_v30, %v3559_v46  ;;  %v8912_v0 = vld [vmem:[#allocation30_spill] sm:$0xff] }
 0x3a8   : > { %v4233_v41 = vmul.f32 %v4876_v60, %v4092_v49  ;;  %3914 = vperm.xlu0 %5567, %v3479_v36   ;;  %v8179_v17 = vpop.eup %5831  ;;  %v3343_v39 = vadd.f32 %v3342_v29, %v3341_v43  ;;  %5845 = vpow2.f32 %v3095_v18  ;;  %v4009_v22 = vadd.f32 %v3977_v55, %v3752_v57  ;;  %v8913_v43 = vld [vmem:[#allocation52_spill] sm:$0xff]  ;;  %v8192_v55 = vpop.f32.mrf.mxu1 }
 0x3a9   : > { %v3512_v53 = vmul.f32 %v8082_v59, %v7887_v14  ;;  %v3037_v15 = vmul.f32 1.442695, %v2848_v33  ;;  %v2815_v51 = vsub.f32 %v8912_v0, %v8168_v3  ;;  %v4008_v10 = vadd.f32 %v3976_v31, %v3751_v12  ;;  %v4354_v42 = vpop.permute.xlu1 %4353 }
 0x3aa   : > { %v3511_v30 = vmul.f32 %v8108_v62, %v7930_v26  ;;  %v8188_v35 = vpop.eup %5833  ;;  %v3101_v46 = vmul.f32 1.442695, %v2880_v61  ;;  %v2847_v18 = vsub.f32 %v8913_v43, %v8168_v3  ;;  %v4266_v60 = vadd.f32 %v4234_v45, %v4009_v22  ;;  %v4349_v14 = vpop.permute.xlu0 %4348 }
 0x3ab   : > { %v4491_v4 = vmul.f32 %v4909_v48, %v4354_v42  ;;  %4176 = vperm.xlu1 %5568, %v3512_v53   ;;  %v3344_v33 = vsel %vm2562_vm1, %v8163_v28, 0.0  ;;  %5847 = vpow2.f32 %v3159_v5  ;;  %v4265_v31 = vadd.f32 %v4233_v41, %v4008_v10  ;;  %v8914_v53 = vld [vmem:[#allocation86_spill] sm:$0xff] }
 0x3ac   : > { %v4490_v7 = vmul.f32 %v4908_v25, %v4349_v14  ;;  %4171 = vperm.xlu0 %5567, %v3511_v30   ;;  %v8196_v26 = vpop.eup %5835  ;;  %5849 = vrcp.f32 %v3352_v20  ;;  %v3345_v61 = vadd.f32 %v3344_v33, %v3343_v39  ;;  %v3544_v57 = vmul.f32 %v8082_v59, %v7924_v44  ;;  %v8210_v59 = vpop.f32.mrf.mxu1  ;;  %v4847_v30 = vld [vmem:[%s6117_s2 + $0x138] sm:$0xff] }
 0x3ad   : > { %v4523_v36 = vadd.f32 %v4491_v4, %v4266_v60  ;;  %v8200_v45 = vpop.eup %5837  ;;  %5851 = vpow2.f32 %v2973_v47  ;;  %v2971_v49 = vmul.f32 1.442695, %v2815_v51  ;;  %v3625_v12 = vpop.permute.xlu1 %3624  ;;  %v3543_v5 = vmul.f32 %v8108_v62, %v7953_v9  ;;  %v3562_v4 = vld [vmem:[%s6117_s2 + $0x38] sm:$0xff] }
 0x3ae   : > { %v4522_v29 = vadd.f32 %v4490_v7, %v4265_v31  ;;  %v8204_v41 = vpop.eup %5839  ;;  %v3360_v20 = vsel %vm2562_vm1, %v8179_v17, 0.0  ;;  %v3361_v48 = vsel %vm2562_vm1, %v8188_v35, 0.0  ;;  %5853 = vpow2.f32 %v3037_v15  ;;  %v3620_v47 = vpop.permute.xlu0 %3619  ;;  %v8915_v15 = vld [vmem:[#allocation60_spill] sm:$0xff] }
 0x3af   : > { %v3035_v44 = vmul.f32 1.442695, %v2847_v18  ;;  %4555 = vst [vmem:[%s7819_s30 + $0x28] sm:$0xff] %v4523_v36  ;;  %4433 = vperm.xlu1 %5568, %v3544_v57   ;;  %v8213_v39 = vpop.eup %5841  ;;  %5855 = vpow2.f32 %v3101_v46  ;;  %v3165_v9 = vmul.f32 1.442695, %v2912_v58  ;;  %v2879_v62 = vsub.f32 %v8892_v6, %v8168_v3  ;;  %v4879_v14 = vld [vmem:[%s6117_s2 + $0x238] sm:$0xff] }
 0x3b0   : > { %v2785_v22 = vsel %vm2562_vm1, %v8192_v55, -inf  ;;  %4554 = vst [vmem:[%s7819_s30 + $0x20] sm:$0xff] %v4522_v29  ;;  %4428 = vperm.xlu0 %5567, %v3543_v5   ;;  %v8220_v25 = vpop.eup %5843  ;;  %v8916_v0 = vmax.f32 %v8914_v53, %v8915_v15  ;;  %5857 = vrcp.f32 %v3345_v61  ;;  %v2911_v58 = vsub.f32 %v8132_v16, %v8168_v3  ;;  %v4846_v3 = vld [vmem:[%s6117_s2 + $0x130] sm:$0xff] }
 0x3b1   : > { %v3450_v6 = vmul.f32 %v8172_v27, %v7963_v37  ;;  %v3362_v10 = vadd.f32 %v3361_v48, %v3360_v20  ;;  %5859 = vpow2.f32 %v2971_v49  ;;  %v2778_v42 = vsel %vm2562_vm1, %v8210_v59, -inf  ;;  %v3850_v46 = vpop.permute.xlu1 %3849  ;;  %v3561_v7 = vld [vmem:[%s6117_s2 + $0x30] sm:$0xff] }
 0x3b2   : > { %v2777_v51 = vmax.f32 %v8916_v0, %v8068_v54  ;;  %v3449_v43 = vmul.f32 %v8200_v45, %v8003_v1  ;;  %v3353_v54 = vsel %vm2562_vm1, %v8204_v41, 0.0  ;;  %v3354_v16 = vsel %vm2562_vm1, %v8213_v39, 0.0  ;;  %v3845_v18 = vpop.permute.xlu0 %3844 }
 0x3b3   : > { %5861 = vpow2.f32 %v3035_v44  ;;  %v8240_v37 = vmax.f32 %v8048_v40, %v2785_v22  ;;  %3704 = vperm.xlu1 %5568, %v3450_v6   ;;  %v3363_v60 = vsel %vm2562_vm1, %v8196_v26, 0.0  ;;  %v3099_v1 = vmul.f32 1.442695, %v2879_v62  ;;  %v4878_v40 = vld [vmem:[%s6117_s2 + $0x230] sm:$0xff] }
 0x3b4   : > { %5863 = vpow2.f32 %v3165_v9  ;;  %3699 = vperm.xlu0 %5567, %v3449_v43   ;;  %v3365_v33 = vsel %vm2562_vm1, %v8220_v25, 0.0  ;;  %v8249_v31 = vmax.f32 %v2777_v51, %v2778_v42  ;;  %v3979_v61 = vmul.f32 %v4847_v30, %v3850_v46  ;;  %v8917_v9 = vld [vmem:[#allocation31_spill] sm:$0xff] }
 0x3b5   : > { %v3482_v36 = vmul.f32 %v8172_v27, %v7968_v56  ;;  %v8255_v57 = vpop.eup %5845  ;;  %v3364_v49 = vadd.f32 %v3363_v60, %v3362_v10  ;;  %v3355_v29 = vadd.f32 %v3354_v16, %v3353_v54  ;;  %v3978_v5 = vmul.f32 %v4846_v3, %v3845_v18  ;;  %v4107_v20 = vpop.permute.xlu1 %4106  ;;  %v8918_v56 = vld [vmem:[#allocation53_spill] sm:$0xff]  ;;  %v4910_v46 = vld [vmem:[%s6117_s2 + $0x330] sm:$0xff] }
 0x3b6   : > { %v3481_v48 = vmul.f32 %v8200_v45, %v8017_v50  ;;  %v3163_v44 = vmul.f32 1.442695, %v2911_v58  ;;  %v2818_v62 = vsub.f32 %v8917_v9, %v8240_v37  ;;  %v3754_v22 = vmul.f32 %v3625_v12, %v3562_v4  ;;  %v4102_v15 = vpop.permute.xlu0 %4101  ;;  %v4911_v10 = vld [vmem:[%s6117_s2 + $0x338] sm:$0xff] }
 0x3b7   : > { %v4236_v53 = vmul.f32 %v4879_v14, %v4107_v20  ;;  %3929 = vperm.xlu1 %5568, %v3482_v36   ;;  %5865 = vpow2.f32 %v3099_v1  ;;  %v2850_v0 = vsub.f32 %v8918_v56, %v8240_v37  ;;  %v3753_v51 = vmul.f32 %v3620_v47, %v3561_v7  ;;  %v8919_v58 = vld [vmem:[#allocation32_spill] sm:$0xff]  ;;  %v8920_v14 = vld [vmem:[#allocation54_spill] sm:$0xff] }
 0x3b8   : > { %v4235_v6 = vmul.f32 %v4878_v40, %v4102_v15  ;;  %3924 = vperm.xlu0 %5567, %v3481_v48   ;;  %v8264_v42 = vpop.eup %5847  ;;  %v3356_v50 = vsel %vm2562_vm1, %v8255_v57, 0.0  ;;  %v2817_v30 = vsub.f32 %v8919_v58, %v8249_v31  ;;  %v4011_v12 = vadd.f32 %v3979_v61, %v3754_v22 }
 0x3b9   : > { %v3514_v43 = vmul.f32 %v8172_v27, %v7990_v38  ;;  %v8273_v54 = vpop.eup %5849  ;;  %v3366_v16 = vadd.f32 %v3365_v33, %v3364_v49  ;;  %v3357_v47 = vadd.f32 %v3356_v50, %v3355_v29  ;;  %v4010_v3 = vadd.f32 %v3978_v5, %v3753_v51  ;;  %v4364_v18 = vpop.permute.xlu1 %4363  ;;  %v4849_v50 = vld [vmem:[%s6117_s2 + $0x148] sm:$0xff] }
 0x3ba   : > { %v3513_v60 = vmul.f32 %v8200_v45, %v8055_v52  ;;  %v8277_v1 = vpop.eup %5851  ;;  %v2977_v4 = vmul.f32 1.442695, %v2818_v62  ;;  %v2849_v7 = vsub.f32 %v8920_v14, %v8249_v31  ;;  %v4268_v61 = vadd.f32 %v4236_v53, %v4011_v12  ;;  %v4359_v36 = vpop.permute.xlu0 %4358  ;;  %v4880_v14 = vld [vmem:[%s6117_s2 + $0x240] sm:$0xff] }
 0x3bb   : > { %v4493_v40 = vmul.f32 %v4911_v10, %v4364_v18  ;;  %4186 = vperm.xlu1 %5568, %v3514_v43   ;;  %v8281_v38 = vpop.eup %5853  ;;  %5867 = vpow2.f32 %v3163_v44  ;;  %v3041_v33 = vmul.f32 1.442695, %v2850_v0  ;;  %v4267_v49 = vadd.f32 %v4235_v6, %v4010_v3  ;;  %v4881_v3 = vld [vmem:[%s6117_s2 + $0x248] sm:$0xff] }
 0x3bc   : > { %v4492_v29 = vmul.f32 %v4910_v46, %v4359_v36  ;;  %4181 = vperm.xlu0 %5567, %v3513_v60   ;;  %v8283_v5 = vpop.eup %5855  ;;  %v3358_v52 = vsel %vm2562_vm1, %v8264_v42, 0.0  ;;  %v2975_v20 = vmul.f32 1.442695, %v2817_v30  ;;  %v3546_v9 = vmul.f32 %v8172_v27, %v8037_v11  ;;  %v3563_v60 = vld [vmem:[%s6117_s2 + $0x40] sm:$0xff] }
 0x3bd   : > { %v4525_v48 = vadd.f32 %v4493_v40, %v4268_v61  ;;  %v8289_v62 = vpop.eup %5857  ;;  %5869 = vrcp.f32 %v3366_v16  ;;  %v3359_v44 = vadd.f32 %v3358_v52, %v3357_v47  ;;  %v3635_v53 = vpop.permute.xlu1 %3634  ;;  %v3545_v15 = vmul.f32 %v8200_v45, %v8074_v19 }
 0x3be   : > { %v4524_v22 = vadd.f32 %v4492_v29, %v4267_v49  ;;  %v8293_v56 = vpop.eup %5859  ;;  %v2882_v0 = vsub.f32 %v8902_v13, %v8240_v37  ;;  %5871 = vpow2.f32 %v2977_v4  ;;  %v3039_v51 = vmul.f32 1.442695, %v2849_v7  ;;  %v3630_v11 = vpop.permute.xlu0 %3629 }
 0x3bf   : > { %4557 = vst [vmem:[%s7819_s30 + $0x38] sm:$0xff] %v4525_v48  ;;  %4443 = vperm.xlu1 %5568, %v3546_v9   ;;  %5873 = vpow2.f32 %v3041_v33  ;;  %v2881_v6 = vsub.f32 %v8906_v21, %v8249_v31  ;;  %v3374_v13 = vsel %vm2562_vm1, %v8277_v1, 0.0  ;;  %v3375_v45 = vsel %vm2562_vm1, %v8281_v38, 0.0 }
 0x3c0   : > { %v8298_v27 = vpop.eup %5861  ;;  %4556 = vst [vmem:[%s7819_s30 + $0x30] sm:$0xff] %v4524_v22  ;;  %4438 = vperm.xlu0 %5567, %v3545_v15   ;;  %5875 = vpow2.f32 %v2975_v20  ;;  %v3452_v10 = vmul.f32 %v8273_v54, %v8088_v63  ;;  %v2914_v21 = vsub.f32 %v8192_v55, %v8240_v37  ;;  %v3451_v30 = vmul.f32 %v8289_v62, %v8113_v24  ;;  %v4848_v63 = vld [vmem:[%s6117_s2 + $0x140] sm:$0xff]  ;;  %v3564_v37 = vld [vmem:[%s6117_s2 + $0x48] sm:$0xff] }
 0x3c1   : > { %v8303_v19 = vpop.eup %5863  ;;  %5877 = vrcp.f32 %v3359_v44  ;;  %v3860_v58 = vpop.permute.xlu1 %3859  ;;  %v3367_v12 = vsel %vm2562_vm1, %v8293_v56, 0.0  ;;  %v3368_v46 = vsel %vm2562_vm1, %v8298_v27, 0.0  ;;  %v3105_v43 = vmul.f32 1.442695, %v2882_v0  ;;  %v4913_v44 = vld [vmem:[%s6117_s2 + $0x348] sm:$0xff]  ;;  %v4912_v0 = vld [vmem:[%s6117_s2 + $0x340] sm:$0xff] }
 0x3c2   : > { %5879 = vpow2.f32 %v3039_v51  ;;  %v3855_v16 = vpop.permute.xlu0 %3854  ;;  %v3376_v47 = vadd.f32 %v3375_v45, %v3374_v13  ;;  %v2913_v55 = vsub.f32 %v8210_v59, %v8249_v31  ;;  %v3103_v18 = vmul.f32 1.442695, %v2881_v6 }
 0x3c3   : > { %3714 = vperm.xlu1 %5568, %v3452_v10   ;;  %v3981_v4 = vmul.f32 %v4849_v50, %v3860_v58  ;;  %v3484_v7 = vmul.f32 %v8273_v54, %v8092_v23  ;;  %v3369_v61 = vadd.f32 %v3368_v46, %v3367_v12  ;;  %v3169_v40 = vmul.f32 1.442695, %v2914_v21 }
 0x3c4   : > { %3709 = vperm.xlu0 %5567, %v3451_v30   ;;  %v8325_v24 = vpop.eup %5865  ;;  %v3980_v36 = vmul.f32 %v4848_v63, %v3855_v16  ;;  %v3483_v59 = vmul.f32 %v8289_v62, %v8124_v32  ;;  %v3377_v31 = vsel %vm2562_vm1, %v8283_v5, 0.0  ;;  %5881 = vpow2.f32 %v3105_v43 }
 0x3c5   : > { %v4117_v33 = vpop.permute.xlu1 %4116  ;;  %v3756_v49 = vmul.f32 %v3635_v53, %v3564_v37  ;;  %v3378_v20 = vadd.f32 %v3377_v31, %v3376_v47  ;;  %v3167_v48 = vmul.f32 1.442695, %v2913_v55  ;;  %v3755_v23 = vmul.f32 %v3630_v11, %v3563_v60  ;;  %v3566_v31 = vld [vmem:[%s6117_s2 + $0x58] sm:$0xff] }
 0x3c6   : > { %v4238_v29 = vmul.f32 %v4881_v3, %v4117_v33  ;;  %v4112_v52 = vpop.permute.xlu0 %4111  ;;  %v3370_v32 = vsel %vm2562_vm1, %v8325_v24, 0.0  ;;  %5883 = vpow2.f32 %v3103_v18  ;;  %v3516_v53 = vmul.f32 %v8273_v54, %v8101_v34 }
 0x3c7   : > { %3939 = vperm.xlu1 %5568, %v3484_v7   ;;  %v4237_v9 = vmul.f32 %v4880_v14, %v4112_v52  ;;  %v4013_v15 = vadd.f32 %v3981_v4, %v3756_v49  ;;  %v3371_v51 = vadd.f32 %v3370_v32, %v3369_v61  ;;  %v4012_v6 = vadd.f32 %v3980_v36, %v3755_v23  ;;  %v4850_v36 = vld [vmem:[%s6117_s2 + $0x150] sm:$0xff]  ;;  %v4883_v49 = vld [vmem:[%s6117_s2 + $0x258] sm:$0xff] }
 0x3c8   : > { %3934 = vperm.xlu0 %5567, %v3483_v59   ;;  %v8336_v22 = vpop.eup %5867  ;;  %v3515_v11 = vmul.f32 %v8289_v62, %v8155_v2  ;;  %5885 = vpow2.f32 %v3169_v40  ;;  %v3379_v30 = vsel %vm2562_vm1, %v8303_v19, 0.0  ;;  %v3548_v16 = vmul.f32 %v8273_v54, %v8128_v8  ;;  %v3565_v52 = vld [vmem:[%s6117_s2 + $0x50] sm:$0xff] }
 0x3c9   : > { %v4374_v13 = vpop.permute.xlu1 %4373  ;;  %v4270_v10 = vadd.f32 %v4238_v29, %v4013_v15  ;;  %5887 = vpow2.f32 %v3167_v48  ;;  %v4269_v34 = vadd.f32 %v4237_v9, %v4012_v6  ;;  %v3380_v2 = vadd.f32 %v3379_v30, %v3378_v20  ;;  %v4882_v48 = vld [vmem:[%s6117_s2 + $0x250] sm:$0xff] }
 0x3ca   : > { %v8345_v45 = vpop.eup %5869  ;;  %v4495_v21 = vmul.f32 %v4913_v44, %v4374_v13  ;;  %v4369_v50 = vpop.permute.xlu0 %4368  ;;  %v3372_v43 = vsel %vm2562_vm1, %v8336_v22, 0.0  ;;  %v3547_v18 = vmul.f32 %v8289_v62, %v8163_v28  ;;  %v4851_v62 = vld [vmem:[%s6117_s2 + $0x158] sm:$0xff] }
 0x3cb   : > { %4196 = vperm.xlu1 %5568, %v3516_v53   ;;  %v8347_v58 = vpop.eup %5871  ;;  %v4494_v12 = vmul.f32 %v4912_v0, %v4369_v50  ;;  %v3373_v55 = vadd.f32 %v3372_v43, %v3371_v51  ;;  %5889 = vrcp.f32 %v3380_v2  ;;  %v3454_v8 = vmul.f32 %v8345_v45, %v8179_v17 }
 0x3cc   : > { %4191 = vperm.xlu0 %5567, %v3515_v11   ;;  %v8351_v46 = vpop.eup %5873  ;;  %v4527_v63 = vadd.f32 %v4495_v21, %v4270_v10  ;;  %v3388_v28 = vsel %vm2562_vm1, %v8347_v58, 0.0  ;;  %v4915_v10 = vld [vmem:[%s6117_s2 + $0x358] sm:$0xff] }
 0x3cd   : > { %v8357_v47 = vpop.eup %5875  ;;  %v4526_v37 = vadd.f32 %v4494_v12, %v4269_v34  ;;  %v3645_v3 = vpop.permute.xlu1 %3644  ;;  %5891 = vrcp.f32 %v3373_v55  ;;  %v3389_v54 = vsel %vm2562_vm1, %v8351_v46, 0.0  ;;  %v4914_v34 = vld [vmem:[%s6117_s2 + $0x350] sm:$0xff]  ;;  %v3518_v12 = vmul.f32 %v8345_v45, %v8196_v26 }
 0x3ce   : > { %v8361_v60 = vpop.eup %5877  ;;  %4559 = vst [vmem:[%s7819_s30 + $0x48] sm:$0xff] %v4527_v63  ;;  %v3640_v4 = vpop.permute.xlu0 %3639  ;;  %v3381_v40 = vsel %vm2562_vm1, %v8357_v47, 0.0  ;;  %v3390_v29 = vadd.f32 %v3389_v54, %v3388_v28  ;;  %v3758_v0 = vmul.f32 %v3645_v3, %v3566_v31 }
 0x3cf   : > { %4453 = vperm.xlu1 %5568, %v3548_v16   ;;  %v8364_v14 = vpop.eup %5879  ;;  %4558 = vst [vmem:[%s7819_s30 + $0x40] sm:$0xff] %v4526_v37  ;;  %v3453_v61 = vmul.f32 %v8361_v60, %v8204_v41  ;;  %v3486_v41 = vmul.f32 %v8345_v45, %v8188_v35  ;;  %v3485_v15 = vmul.f32 %v8361_v60, %v8213_v39 }
 0x3d0   : > { %4448 = vperm.xlu0 %5567, %v3547_v18   ;;  %v3382_v17 = vsel %vm2562_vm1, %v8364_v14, 0.0  ;;  %v3757_v11 = vmul.f32 %v3640_v4, %v3565_v52  ;;  %v3517_v16 = vmul.f32 %v8361_v60, %v8255_v57  ;;  %v3550_v57 = vmul.f32 %v8345_v45, %v8220_v25  ;;  %v4853_v45 = vld [vmem:[%s6117_s2 + $0x168] sm:$0xff] }
 0x3d1   : > { %v3870_v7 = vpop.permute.xlu1 %3869  ;;  %v8381_v59 = vpop.eup %5881  ;;  %v3383_v9 = vadd.f32 %v3382_v17, %v3381_v40  ;;  %v3549_v17 = vmul.f32 %v8361_v60, %v8264_v42  ;;  %v3568_v60 = vld [vmem:[%s6117_s2 + $0x68] sm:$0xff] }
 0x3d2   : > { %v3865_v33 = vpop.permute.xlu0 %3864  ;;  %v3983_v20 = vmul.f32 %v4851_v62, %v3870_v7  ;;  %v3391_v13 = vsel %vm2562_vm1, %v8381_v59, 0.0  ;;  %v4885_v52 = vld [vmem:[%s6117_s2 + $0x268] sm:$0xff] }
 0x3d3   : > { %3724 = vperm.xlu1 %5568, %v3454_v8   ;;  %v8389_v23 = vpop.eup %5883  ;;  %v3982_v44 = vmul.f32 %v4850_v36, %v3865_v33  ;;  %v3392_v50 = vadd.f32 %v3391_v13, %v3390_v29  ;;  %v4852_v29 = vld [vmem:[%s6117_s2 + $0x160] sm:$0xff]  ;;  %v4917_v13 = vld [vmem:[%s6117_s2 + $0x368] sm:$0xff] }
 0x3d4   : > { %3719 = vperm.xlu0 %5567, %v3453_v61   ;;  %v3384_v30 = vsel %vm2562_vm1, %v8389_v23, 0.0  ;;  %v4015_v39 = vadd.f32 %v3983_v20, %v3758_v0  ;;  %v3567_v20 = vld [vmem:[%s6117_s2 + $0x60] sm:$0xff] }
 0x3d5   : > { %v4127_v32 = vpop.permute.xlu1 %4126  ;;  %v8393_v6 = vpop.eup %5885  ;;  %v3385_v2 = vadd.f32 %v3384_v30, %v3383_v9  ;;  %v4014_v43 = vadd.f32 %v3982_v44, %v3757_v11 }
 0x3d6   : > { %v4240_v53 = vmul.f32 %v4883_v49, %v4127_v32  ;;  %v4122_v51 = vpop.permute.xlu0 %4121  ;;  %v8398_v21 = vpop.eup %5887  ;;  %v3393_v18 = vsel %vm2562_vm1, %v8393_v6, 0.0 }
 0x3d7   : > { %3949 = vperm.xlu1 %5568, %v3486_v41   ;;  %v4239_v35 = vmul.f32 %v4882_v48, %v4122_v51  ;;  %v3394_v28 = vadd.f32 %v3393_v18, %v3392_v50  ;;  %v3386_v26 = vsel %vm2562_vm1, %v8398_v21, 0.0  ;;  %v4884_v41 = vld [vmem:[%s6117_s2 + $0x260] sm:$0xff] }
 0x3d8   : > { %3944 = vperm.xlu0 %5567, %v3485_v15   ;;  %v4272_v55 = vadd.f32 %v4240_v53, %v4015_v39  ;;  %v5890_v62 = vpop.eup %5889  ;;  %v3387_v7 = vadd.f32 %v3386_v26, %v3385_v2 }
 0x3d9   : > { %v4384_v63 = vpop.permute.xlu1 %4383  ;;  %v4271_v4 = vadd.f32 %v4239_v35, %v4014_v43  ;;  %5893 = vrcp.f32 %v3394_v28  ;;  %v3456_v25 = vmul.f32 %v5890_v62, %v8277_v1  ;;  %v3488_v9 = vmul.f32 %v5890_v62, %v8281_v38  ;;  %v4916_v35 = vld [vmem:[%s6117_s2 + $0x360] sm:$0xff]  ;;  %v4854_v28 = vld [vmem:[%s6117_s2 + $0x170] sm:$0xff] }
 0x3da   : > { %v4497_v37 = vmul.f32 %v4915_v10, %v4384_v63  ;;  %v4379_v3 = vpop.permute.xlu0 %4378  ;;  %v5892_v36 = vpop.eup %5891  ;;  %5895 = vrcp.f32 %v3387_v7  ;;  %v3520_v10 = vmul.f32 %v5890_v62, %v8283_v5  ;;  %v3552_v63 = vmul.f32 %v5890_v62, %v8303_v19  ;;  %v4886_v7 = vld [vmem:[%s6117_s2 + $0x270] sm:$0xff] }
 0x3db   : > { %4206 = vperm.xlu1 %5568, %v3518_v12   ;;  %v4496_v8 = vmul.f32 %v4914_v34, %v4379_v3  ;;  %v3455_v49 = vmul.f32 %v5892_v36, %v8293_v56  ;;  %v3487_v32 = vmul.f32 %v5892_v36, %v8298_v27  ;;  %v3519_v38 = vmul.f32 %v5892_v36, %v8325_v24 }
 0x3dc   : > { %4201 = vperm.xlu0 %5567, %v3517_v16   ;;  %v4529_v54 = vadd.f32 %v4497_v37, %v4272_v55  ;;  %v3551_v37 = vmul.f32 %v5892_v36, %v8336_v22  ;;  %v4887_v22 = vld [vmem:[%s6117_s2 + $0x278] sm:$0xff] }
 0x3dd   : > { %v4528_v61 = vadd.f32 %v4496_v8, %v4271_v4  ;;  %v3655_v40 = vpop.permute.xlu1 %3654  ;;  %v4855_v4 = vld [vmem:[%s6117_s2 + $0x178] sm:$0xff] }
 0x3de   : > { %4561 = vst [vmem:[%s7819_s30 + $0x58] sm:$0xff] %v4529_v54  ;;  %v3650_v33 = vpop.permute.xlu0 %3649  ;;  %v3760_v15 = vmul.f32 %v3655_v40, %v3568_v60  ;;  %v3570_v54 = vld [vmem:[%s6117_s2 + $0x78] sm:$0xff] }
 0x3df   : > { %4463 = vperm.xlu1 %5568, %v3550_v57   ;;  %4560 = vst [vmem:[%s7819_s30 + $0x50] sm:$0xff] %v4528_v61  ;;  %v3759_v53 = vmul.f32 %v3650_v33, %v3567_v20  ;;  %v3569_v57 = vld [vmem:[%s6117_s2 + $0x70] sm:$0xff] }
 0x3e0   : > { %4458 = vperm.xlu0 %5567, %v3549_v17  }
 0x3e1   : > { %v3880_v31 = vpop.permute.xlu1 %3879 }
 0x3e2   : > { %v3875_v42 = vpop.permute.xlu0 %3874  ;;  %v3985_v48 = vmul.f32 %v4853_v45, %v3880_v31  ;;  %v4919_v31 = vld [vmem:[%s6117_s2 + $0x378] sm:$0xff] }
 0x3e3   : > { %3734 = vperm.xlu1 %5568, %v3456_v25   ;;  %v3984_v44 = vmul.f32 %v4852_v29, %v3875_v42  ;;  %v4918_v29 = vld [vmem:[%s6117_s2 + $0x370] sm:$0xff] }
 0x3e4   : > { %3729 = vperm.xlu0 %5567, %v3455_v49   ;;  %v4017_v11 = vadd.f32 %v3985_v48, %v3760_v15 }
 0x3e5   : > { %v4137_v1 = vpop.permute.xlu1 %4136  ;;  %v4016_v50 = vadd.f32 %v3984_v44, %v3759_v53  ;;  %v4856_v53 = vld [vmem:[%s6117_s2 + $0x180] sm:$0xff] }
 0x3e6   : > { %v4242_v0 = vmul.f32 %v4885_v52, %v4137_v1  ;;  %v4132_v56 = vpop.permute.xlu0 %4131  ;;  %v5894_v16 = vpop.eup %5893 }
 0x3e7   : > { %3959 = vperm.xlu1 %5568, %v3488_v9   ;;  %v4241_v51 = vmul.f32 %v4884_v41, %v4132_v56  ;;  %v5896_v24 = vpop.eup %5895  ;;  %v3458_v18 = vmul.f32 %v5894_v16, %v8347_v58  ;;  %v3490_v61 = vmul.f32 %v5894_v16, %v8351_v46  ;;  %v3522_v42 = vmul.f32 %v5894_v16, %v8381_v59 }
 0x3e8   : > { %3954 = vperm.xlu0 %5567, %v3487_v32   ;;  %v4274_v39 = vadd.f32 %v4242_v0, %v4017_v11  ;;  %v3457_v19 = vmul.f32 %v5896_v24, %v8357_v47  ;;  %v3489_v58 = vmul.f32 %v5896_v24, %v8364_v14  ;;  %v3521_v46 = vmul.f32 %v5896_v24, %v8389_v23  ;;  %v4857_v0 = vld [vmem:[%s6117_s2 + $0x188] sm:$0xff] }
 0x3e9   : > { %v4394_v30 = vpop.permute.xlu1 %4393  ;;  %v4273_v12 = vadd.f32 %v4241_v51, %v4016_v50  ;;  %v3554_v59 = vmul.f32 %v5894_v16, %v8393_v6  ;;  %v3553_v23 = vmul.f32 %v5896_v24, %v8398_v21  ;;  %v4889_v11 = vld [vmem:[%s6117_s2 + $0x288] sm:$0xff] }
 0x3ea   : > { %v4499_v34 = vmul.f32 %v4917_v13, %v4394_v30  ;;  %v4389_v27 = vpop.permute.xlu0 %4388  ;;  %v3572_v13 = vld [vmem:[%s6117_s2 + $0x88] sm:$0xff] }
 0x3eb   : > { %4216 = vperm.xlu1 %5568, %v3520_v10   ;;  %v4498_v2 = vmul.f32 %v4916_v35, %v4389_v27  ;;  %v3571_v35 = vld [vmem:[%s6117_s2 + $0x80] sm:$0xff] }
 0x3ec   : > { %4211 = vperm.xlu0 %5567, %v3519_v38   ;;  %v4531_v43 = vadd.f32 %v4499_v34, %v4274_v39  ;;  %v4888_v10 = vld [vmem:[%s6117_s2 + $0x280] sm:$0xff] }
 0x3ed   : > { %v4530_v5 = vadd.f32 %v4498_v2, %v4273_v12  ;;  %v3665_v55 = vpop.permute.xlu1 %3664  ;;  %v4921_v12 = vld [vmem:[%s6117_s2 + $0x388] sm:$0xff] }
 0x3ee   : > { %4563 = vst [vmem:[%s7819_s30 + $0x68] sm:$0xff] %v4531_v43  ;;  %v3660_v3 = vpop.permute.xlu0 %3659  ;;  %v3762_v36 = vmul.f32 %v3665_v55, %v3570_v54  ;;  %v4920_v43 = vld [vmem:[%s6117_s2 + $0x380] sm:$0xff]  ;;  %v4858_v54 = vld [vmem:[%s6117_s2 + $0x190] sm:$0xff] }
 0x3ef   : > { %4473 = vperm.xlu1 %5568, %v3552_v63   ;;  %4562 = vst [vmem:[%s7819_s30 + $0x60] sm:$0xff] %v4530_v5  ;;  %v3761_v25 = vmul.f32 %v3660_v3, %v3569_v57  ;;  %v3574_v57 = vld [vmem:[%s6117_s2 + $0x98] sm:$0xff] }
 0x3f0   : > { %4468 = vperm.xlu0 %5567, %v3551_v37  }
 0x3f1   : > { %v3890_v8 = vpop.permute.xlu1 %3889 }
 0x3f2   : > { %v3885_v26 = vpop.permute.xlu0 %3884  ;;  %v3987_v62 = vmul.f32 %v4855_v4, %v3890_v8 }
 0x3f3   : > { %3744 = vperm.xlu1 %5568, %v3458_v18   ;;  %v3986_v40 = vmul.f32 %v4854_v28, %v3885_v26  ;;  %v4859_v28 = vld [vmem:[%s6117_s2 + $0x198] sm:$0xff] }
 0x3f4   : > { %3739 = vperm.xlu0 %5567, %v3457_v19   ;;  %v4019_v49 = vadd.f32 %v3987_v62, %v3762_v36  ;;  %v4891_v62 = vld [vmem:[%s6117_s2 + $0x298] sm:$0xff] }
 0x3f5   : > { %v4147_v17 = vpop.permute.xlu1 %4146  ;;  %v4018_v60 = vadd.f32 %v3986_v40, %v3761_v25  ;;  %v4890_v40 = vld [vmem:[%s6117_s2 + $0x290] sm:$0xff] }
 0x3f6   : > { %v4244_v33 = vmul.f32 %v4887_v22, %v4147_v17  ;;  %v4142_v47 = vpop.permute.xlu0 %4141 }
 0x3f7   : > { %3969 = vperm.xlu1 %5568, %v3490_v61   ;;  %v4243_v45 = vmul.f32 %v4886_v7, %v4142_v47  ;;  %v3573_v7 = vld [vmem:[%s6117_s2 + $0x90] sm:$0xff] }
 0x3f8   : > { %3964 = vperm.xlu0 %5567, %v3489_v58   ;;  %v4276_v20 = vadd.f32 %v4244_v33, %v4019_v49 }
 0x3f9   : > { %v4404_v52 = vpop.permute.xlu1 %4403  ;;  %v4275_v41 = vadd.f32 %v4243_v45, %v4018_v60 }
 0x3fa   : > { %v4501_v14 = vmul.f32 %v4919_v31, %v4404_v52  ;;  %v4399_v48 = vpop.permute.xlu0 %4398  ;;  %v4923_v31 = vld [vmem:[%s6117_s2 + $0x398] sm:$0xff] }
 0x3fb   : > { %4226 = vperm.xlu1 %5568, %v3522_v42   ;;  %v4500_v9 = vmul.f32 %v4918_v29, %v4399_v48  ;;  %v4922_v29 = vld [vmem:[%s6117_s2 + $0x390] sm:$0xff] }
 0x3fc   : > { %4221 = vperm.xlu0 %5567, %v3521_v46   ;;  %v4533_v44 = vadd.f32 %v4501_v14, %v4276_v20 }
 0x3fd   : > { %v4532_v1 = vadd.f32 %v4500_v9, %v4275_v41  ;;  %v3675_v32 = vpop.permute.xlu1 %3674 }
 0x3fe   : > { %4565 = vst [vmem:[%s7819_s30 + $0x78] sm:$0xff] %v4533_v44  ;;  %v3670_v15 = vpop.permute.xlu0 %3669  ;;  %v3764_v38 = vmul.f32 %v3675_v32, %v3572_v13  ;;  %v4892_v13 = vld [vmem:[%s6117_s2 + $0x2a0] sm:$0xff] }
 0x3ff   : > { %4483 = vperm.xlu1 %5568, %v3554_v59   ;;  %4564 = vst [vmem:[%s7819_s30 + $0x70] sm:$0xff] %v4532_v1  ;;  %v3763_v34 = vmul.f32 %v3670_v15, %v3571_v35  ;;  %v4861_v1 = vld [vmem:[%s6117_s2 + $0x1a8] sm:$0xff] }
 0x400   : > { %4478 = vperm.xlu0 %5567, %v3553_v23   ;;  %v4860_v23 = vld [vmem:[%s6117_s2 + $0x1a0] sm:$0xff] }
 0x401   : > { %v3900_v56 = vpop.permute.xlu1 %3899 }
 0x402   : > { %v3895_v51 = vpop.permute.xlu0 %3894  ;;  %v3989_v6 = vmul.f32 %v4857_v0, %v3900_v56  ;;  %v3576_v0 = vld [vmem:[%s6117_s2 + $0xa8] sm:$0xff] }
 0x403   : > { %v3988_v50 = vmul.f32 %v4856_v53, %v3895_v51  ;;  %v4893_v56 = vld [vmem:[%s6117_s2 + $0x2a8] sm:$0xff]  ;;  %v3575_v53 = vld [vmem:[%s6117_s2 + $0xa0] sm:$0xff] }
 0x404   : > { %v4021_v2 = vadd.f32 %v3989_v6, %v3764_v38 }
 0x405   : > { %v4157_v30 = vpop.permute.xlu1 %4156  ;;  %v4020_v63 = vadd.f32 %v3988_v50, %v3763_v34  ;;  %v4924_v34 = vld [vmem:[%s6117_s2 + $0x3a0] sm:$0xff] }
 0x406   : > { %v4246_v21 = vmul.f32 %v4889_v11, %v4157_v30  ;;  %v4152_v39 = vpop.permute.xlu0 %4151 }
 0x407   : > { %v4245_v27 = vmul.f32 %v4888_v10, %v4152_v39 }
 0x408   : > { %v4278_v5 = vadd.f32 %v4246_v21, %v4021_v2  ;;  %v4925_v21 = vld [vmem:[%s6117_s2 + $0x3a8] sm:$0xff] }
 0x409   : > { %v4414_v16 = vpop.permute.xlu1 %4413  ;;  %v4277_v24 = vadd.f32 %v4245_v27, %v4020_v63 }
 0x40a   : > { %v4503_v55 = vmul.f32 %v4921_v12, %v4414_v16  ;;  %v4409_v37 = vpop.permute.xlu0 %4408 }
 0x40b   : > { %v4502_v3 = vmul.f32 %v4920_v43, %v4409_v37 }
 0x40c   : > { %v4535_v18 = vadd.f32 %v4503_v55, %v4278_v5 }
 0x40d   : > { %v4534_v4 = vadd.f32 %v4502_v3, %v4277_v24  ;;  %v3685_v8 = vpop.permute.xlu1 %3684 }
 0x40e   : > { %4567 = vst [vmem:[%s7819_s30 + $0x88] sm:$0xff] %v4535_v18  ;;  %v3680_v19 = vpop.permute.xlu0 %3679  ;;  %v3766_v36 = vmul.f32 %v3685_v8, %v3574_v57  ;;  %v4863_v18 = vld [vmem:[%s6117_s2 + $0x1b8] sm:$0xff]  ;;  %v4862_v8 = vld [vmem:[%s6117_s2 + $0x1b0] sm:$0xff] }
 0x40f   : > { %4566 = vst [vmem:[%s7819_s30 + $0x80] sm:$0xff] %v4534_v4  ;;  %v3765_v25 = vmul.f32 %v3680_v19, %v3573_v7  ;;  %v4894_v57 = vld [vmem:[%s6117_s2 + $0x2b0] sm:$0xff] }
 0x412   : > { %v3910_v26 = vpop.permute.xlu1 %3909 }
 0x413   : > { %v3905_v22 = vpop.permute.xlu0 %3904  ;;  %v3991_v61 = vmul.f32 %v4859_v28, %v3910_v26  ;;  %v3578_v28 = vld [vmem:[%s6117_s2 + $0xb8] sm:$0xff] }
 0x414   : > { %v3990_v17 = vmul.f32 %v4858_v54, %v3905_v22  ;;  %v4895_v26 = vld [vmem:[%s6117_s2 + $0x2b8] sm:$0xff]  ;;  %v3577_v54 = vld [vmem:[%s6117_s2 + $0xb0] sm:$0xff] }
 0x415   : > { %v4023_v49 = vadd.f32 %v3991_v61, %v3766_v36 }
 0x416   : > { %v4167_v58 = vpop.permute.xlu1 %4166  ;;  %v4022_v42 = vadd.f32 %v3990_v17, %v3765_v25  ;;  %v4926_v25 = vld [vmem:[%s6117_s2 + $0x3b0] sm:$0xff] }
 0x417   : > { %v4248_v33 = vmul.f32 %v4891_v62, %v4167_v58  ;;  %v4162_v47 = vpop.permute.xlu0 %4161 }
 0x418   : > { %v4247_v45 = vmul.f32 %v4890_v40, %v4162_v47 }
 0x419   : > { %v4280_v52 = vadd.f32 %v4248_v33, %v4023_v49  ;;  %v4927_v33 = vld [vmem:[%s6117_s2 + $0x3b8] sm:$0xff] }
 0x41a   : > { %v4424_v60 = vpop.permute.xlu1 %4423  ;;  %v4279_v14 = vadd.f32 %v4247_v45, %v4022_v42 }
 0x41b   : > { %v4505_v46 = vmul.f32 %v4923_v31, %v4424_v60  ;;  %v4419_v20 = vpop.permute.xlu0 %4418 }
 0x41c   : > { %v4504_v48 = vmul.f32 %v4922_v29, %v4419_v20 }
 0x41d   : > { %v4537_v41 = vadd.f32 %v4505_v46, %v4280_v52 }
 0x41e   : > { %v4536_v9 = vadd.f32 %v4504_v48, %v4279_v14  ;;  %v3695_v44 = vpop.permute.xlu1 %3694 }
 0x41f   : > { %4569 = vst [vmem:[%s7819_s30 + $0x98] sm:$0xff] %v4537_v41  ;;  %v3690_v59 = vpop.permute.xlu0 %3689  ;;  %v3768_v6 = vmul.f32 %v3695_v44, %v3576_v0  ;;  %v4865_v41 = vld [vmem:[%s6117_s2 + $0x1c8] sm:$0xff]  ;;  %v4864_v44 = vld [vmem:[%s6117_s2 + $0x1c0] sm:$0xff] }
 0x420   : > { %4568 = vst [vmem:[%s7819_s30 + $0x90] sm:$0xff] %v4536_v9  ;;  %v3767_v30 = vmul.f32 %v3690_v59, %v3575_v53  ;;  %v4896_v0 = vld [vmem:[%s6117_s2 + $0x2c0] sm:$0xff] }
 0x422   : > { %v3920_v32 = vpop.permute.xlu1 %3919 }
 0x423   : > { %v3915_v15 = vpop.permute.xlu0 %3914  ;;  %v3993_v51 = vmul.f32 %v4861_v1, %v3920_v32  ;;  %v3580_v1 = vld [vmem:[%s6117_s2 + $0xc8] sm:$0xff] }
 0x424   : > { %v3992_v11 = vmul.f32 %v4860_v23, %v3915_v15  ;;  %v4897_v32 = vld [vmem:[%s6117_s2 + $0x2c8] sm:$0xff]  ;;  %v3579_v23 = vld [vmem:[%s6117_s2 + $0xc0] sm:$0xff] }
 0x425   : > { %v4025_v39 = vadd.f32 %v3993_v51, %v3768_v6 }
 0x426   : > { %v4177_v35 = vpop.permute.xlu1 %4176  ;;  %v4024_v27 = vadd.f32 %v3992_v11, %v3767_v30  ;;  %v4928_v30 = vld [vmem:[%s6117_s2 + $0x3c0] sm:$0xff] }
 0x427   : > { %v4250_v10 = vmul.f32 %v4893_v56, %v4177_v35  ;;  %v4172_v50 = vpop.permute.xlu0 %4171 }
 0x428   : > { %v4249_v38 = vmul.f32 %v4892_v13, %v4172_v50 }
 0x429   : > { %v4282_v2 = vadd.f32 %v4250_v10, %v4025_v39  ;;  %v4929_v10 = vld [vmem:[%s6117_s2 + $0x3c8] sm:$0xff] }
 0x42a   : > { %v4434_v12 = vpop.permute.xlu1 %4433  ;;  %v4281_v16 = vadd.f32 %v4249_v38, %v4024_v27 }
 0x42b   : > { %v4507_v43 = vmul.f32 %v4925_v21, %v4434_v12  ;;  %v4429_v63 = vpop.permute.xlu0 %4428 }
 0x42c   : > { %v4506_v5 = vmul.f32 %v4924_v34, %v4429_v63 }
 0x42d   : > { %v4539_v55 = vadd.f32 %v4507_v43, %v4282_v2 }
 0x42e   : > { %v4538_v37 = vadd.f32 %v4506_v5, %v4281_v16  ;;  %v3705_v24 = vpop.permute.xlu1 %3704 }
 0x42f   : > { %4571 = vst [vmem:[%s7819_s30 + $0xa8] sm:$0xff] %v4539_v55  ;;  %v3700_v3 = vpop.permute.xlu0 %3699  ;;  %v3770_v61 = vmul.f32 %v3705_v24, %v3578_v28  ;;  %v4867_v55 = vld [vmem:[%s6117_s2 + $0x1d8] sm:$0xff]  ;;  %v4866_v24 = vld [vmem:[%s6117_s2 + $0x1d0] sm:$0xff] }
 0x430   : > { %4570 = vst [vmem:[%s7819_s30 + $0xa0] sm:$0xff] %v4538_v37  ;;  %v3769_v58 = vmul.f32 %v3700_v3, %v3577_v54  ;;  %v4898_v28 = vld [vmem:[%s6117_s2 + $0x2d0] sm:$0xff] }
 0x432   : > { %v3930_v4 = vpop.permute.xlu1 %3929 }
 0x433   : > { %v3925_v19 = vpop.permute.xlu0 %3924  ;;  %v3995_v22 = vmul.f32 %v4863_v18, %v3930_v4  ;;  %v3582_v18 = vld [vmem:[%s6117_s2 + $0xd8] sm:$0xff] }
 0x434   : > { %v3994_v62 = vmul.f32 %v4862_v8, %v3925_v19  ;;  %v4899_v4 = vld [vmem:[%s6117_s2 + $0x2d8] sm:$0xff]  ;;  %v3581_v8 = vld [vmem:[%s6117_s2 + $0xd0] sm:$0xff] }
 0x435   : > { %v4027_v47 = vadd.f32 %v3995_v22, %v3770_v61 }
 0x436   : > { %v4187_v7 = vpop.permute.xlu1 %4186  ;;  %v4026_v45 = vadd.f32 %v3994_v62, %v3769_v58  ;;  %v4930_v58 = vld [vmem:[%s6117_s2 + $0x3d0] sm:$0xff] }
 0x437   : > { %v4252_v40 = vmul.f32 %v4895_v26, %v4187_v7  ;;  %v4182_v17 = vpop.permute.xlu0 %4181 }
 0x438   : > { %v4251_v36 = vmul.f32 %v4894_v57, %v4182_v17 }
 0x439   : > { %v4284_v49 = vadd.f32 %v4252_v40, %v4027_v47  ;;  %v4931_v40 = vld [vmem:[%s6117_s2 + $0x3d8] sm:$0xff] }
 0x43a   : > { %v4444_v31 = vpop.permute.xlu1 %4443  ;;  %v4283_v60 = vadd.f32 %v4251_v36, %v4026_v45 }
 0x43b   : > { %v4509_v29 = vmul.f32 %v4927_v33, %v4444_v31  ;;  %v4439_v42 = vpop.permute.xlu0 %4438 }
 0x43c   : > { %v4508_v52 = vmul.f32 %v4926_v25, %v4439_v42 }
 0x43d   : > { %v4541_v46 = vadd.f32 %v4509_v29, %v4284_v49 }
 0x43e   : > { %v4540_v20 = vadd.f32 %v4508_v52, %v4283_v60  ;;  %v3715_v14 = vpop.permute.xlu1 %3714 }
 0x43f   : > { %4573 = vst [vmem:[%s7819_s30 + $0xb8] sm:$0xff] %v4541_v46  ;;  %v3710_v48 = vpop.permute.xlu0 %3709  ;;  %v3772_v51 = vmul.f32 %v3715_v14, %v3580_v1  ;;  %v4869_v46 = vld [vmem:[%s6117_s2 + $0x1e8] sm:$0xff]  ;;  %v4868_v14 = vld [vmem:[%s6117_s2 + $0x1e0] sm:$0xff] }
 0x440   : > { %4572 = vst [vmem:[%s7819_s30 + $0xb0] sm:$0xff] %v4540_v20  ;;  %v3771_v35 = vmul.f32 %v3710_v48, %v3579_v23  ;;  %v4900_v1 = vld [vmem:[%s6117_s2 + $0x2e0] sm:$0xff] }
 0x442   : > { %v3940_v9 = vpop.permute.xlu1 %3939 }
 0x443   : > { %v3935_v59 = vpop.permute.xlu0 %3934  ;;  %v3997_v15 = vmul.f32 %v4865_v41, %v3940_v9  ;;  %v3584_v41 = vld [vmem:[%s6117_s2 + $0xe8] sm:$0xff] }
 0x444   : > { %v3996_v56 = vmul.f32 %v4864_v44, %v3935_v59  ;;  %v4901_v9 = vld [vmem:[%s6117_s2 + $0x2e8] sm:$0xff]  ;;  %v3583_v44 = vld [vmem:[%s6117_s2 + $0xe0] sm:$0xff] }
 0x445   : > { %v4029_v50 = vadd.f32 %v3997_v15, %v3772_v51 }
 0x446   : > { %v4197_v53 = vpop.permute.xlu1 %4196  ;;  %v4028_v38 = vadd.f32 %v3996_v56, %v3771_v35  ;;  %v4932_v35 = vld [vmem:[%s6117_s2 + $0x3e0] sm:$0xff] }
 0x447   : > { %v4254_v13 = vmul.f32 %v4897_v32, %v4197_v53  ;;  %v4192_v11 = vpop.permute.xlu0 %4191 }
 0x448   : > { %v4253_v6 = vmul.f32 %v4896_v0, %v4192_v11 }
 0x449   : > { %v4286_v39 = vadd.f32 %v4254_v13, %v4029_v50  ;;  %v4933_v13 = vld [vmem:[%s6117_s2 + $0x3e8] sm:$0xff] }
 0x44a   : > { %v4454_v21 = vpop.permute.xlu1 %4453  ;;  %v4285_v12 = vadd.f32 %v4253_v6, %v4028_v38 }
 0x44b   : > { %v4511_v34 = vmul.f32 %v4929_v10, %v4454_v21  ;;  %v4449_v27 = vpop.permute.xlu0 %4448 }
 0x44c   : > { %v4510_v2 = vmul.f32 %v4928_v30, %v4449_v27 }
 0x44d   : > { %v4543_v43 = vadd.f32 %v4511_v34, %v4286_v39 }
 0x44e   : > { %v4542_v63 = vadd.f32 %v4510_v2, %v4285_v12  ;;  %v3725_v16 = vpop.permute.xlu1 %3724 }
 0x44f   : > { %4575 = vst [vmem:[%s7819_s30 + $0xc8] sm:$0xff] %v4543_v43  ;;  %v3720_v5 = vpop.permute.xlu0 %3719  ;;  %v3774_v22 = vmul.f32 %v3725_v16, %v3582_v18  ;;  %v4871_v43 = vld [vmem:[%s6117_s2 + $0x1f8] sm:$0xff]  ;;  %v4870_v16 = vld [vmem:[%s6117_s2 + $0x1f0] sm:$0xff] }
 0x450   : > { %4574 = vst [vmem:[%s7819_s30 + $0xc0] sm:$0xff] %v4542_v63  ;;  %v3773_v7 = vmul.f32 %v3720_v5, %v3581_v8  ;;  %v4902_v18 = vld [vmem:[%s6117_s2 + $0x2f0] sm:$0xff] }
 0x452   : > { %v3950_v37 = vpop.permute.xlu1 %3949 }
 0x453   : > { %v3945_v3 = vpop.permute.xlu0 %3944  ;;  %v3999_v19 = vmul.f32 %v4867_v55, %v3950_v37  ;;  %v3586_v55 = vld [vmem:[%s6117_s2 + $0xf8] sm:$0xff] }
 0x454   : > { %v3998_v26 = vmul.f32 %v4866_v24, %v3945_v3  ;;  %v4903_v37 = vld [vmem:[%s6117_s2 + $0x2f8] sm:$0xff]  ;;  %v3585_v24 = vld [vmem:[%s6117_s2 + $0xf0] sm:$0xff] }
 0x455   : > { %v4031_v17 = vadd.f32 %v3999_v19, %v3774_v22 }
 0x456   : > { %v4207_v54 = vpop.permute.xlu1 %4206  ;;  %v4030_v36 = vadd.f32 %v3998_v26, %v3773_v7  ;;  %v4934_v7 = vld [vmem:[%s6117_s2 + $0x3f0] sm:$0xff] }
 0x457   : > { %v4256_v57 = vmul.f32 %v4899_v4, %v4207_v54  ;;  %v4202_v62 = vpop.permute.xlu0 %4201 }
 0x458   : > { %v4255_v61 = vmul.f32 %v4898_v28, %v4202_v62 }
 0x459   : > { %v4288_v47 = vadd.f32 %v4256_v57, %v4031_v17  ;;  %v4935_v57 = vld [vmem:[%s6117_s2 + $0x3f8] sm:$0xff] }
 0x45a   : > { %v4464_v33 = vpop.permute.xlu1 %4463  ;;  %v4287_v31 = vadd.f32 %v4255_v61, %v4030_v36 }
 0x45b   : > { %v4513_v25 = vmul.f32 %v4931_v40, %v4464_v33  ;;  %v4459_v45 = vpop.permute.xlu0 %4458 }
 0x45c   : > { %v4512_v49 = vmul.f32 %v4930_v58, %v4459_v45 }
 0x45d   : > { %v4545_v29 = vadd.f32 %v4513_v25, %v4288_v47 }
 0x45e   : > { %v4544_v42 = vadd.f32 %v4512_v49, %v4287_v31  ;;  %v3735_v60 = vpop.permute.xlu1 %3734 }
 0x45f   : > { %4577 = vst [vmem:[%s7819_s30 + $0xd8] sm:$0xff] %v4545_v29  ;;  %v3730_v52 = vpop.permute.xlu0 %3729  ;;  %v3776_v15 = vmul.f32 %v3735_v60, %v3584_v41 }
 0x460   : > { %4576 = vst [vmem:[%s7819_s30 + $0xd0] sm:$0xff] %v4544_v42  ;;  %v3775_v53 = vmul.f32 %v3730_v52, %v3583_v44 }
 0x462   : > { %v3960_v20 = vpop.permute.xlu1 %3959 }
 0x463   : > { %v3955_v48 = vpop.permute.xlu0 %3954  ;;  %v4001_v59 = vmul.f32 %v4869_v46, %v3960_v20 }
 0x464   : > { %v4000_v32 = vmul.f32 %v4868_v14, %v3955_v48 }
 0x465   : > { %v4033_v11 = vadd.f32 %v4001_v59, %v3776_v15 }
 0x466   : > { %v4217_v23 = vpop.permute.xlu1 %4216  ;;  %v4032_v6 = vadd.f32 %v4000_v32, %v3775_v53 }
 0x467   : > { %v4258_v0 = vmul.f32 %v4901_v9, %v4217_v23  ;;  %v4212_v56 = vpop.permute.xlu0 %4211 }
 0x468   : > { %v4257_v51 = vmul.f32 %v4900_v1, %v4212_v56 }
 0x469   : > { %v4290_v50 = vadd.f32 %v4258_v0, %v4033_v11 }
 0x46a   : > { %v4474_v10 = vpop.permute.xlu1 %4473  ;;  %v4289_v21 = vadd.f32 %v4257_v51, %v4032_v6 }
 0x46b   : > { %v4515_v30 = vmul.f32 %v4933_v13, %v4474_v10  ;;  %v4469_v38 = vpop.permute.xlu0 %4468 }
 0x46c   : > { %v4514_v39 = vmul.f32 %v4932_v35, %v4469_v38 }
 0x46d   : > { %v4547_v34 = vadd.f32 %v4515_v30, %v4290_v50 }
 0x46e   : > { %v4546_v27 = vadd.f32 %v4514_v39, %v4289_v21  ;;  %v3745_v12 = vpop.permute.xlu1 %3744 }
 0x46f   : > { %4579 = vst [vmem:[%s7819_s30 + $0xe8] sm:$0xff] %v4547_v34  ;;  %v3740_v2 = vpop.permute.xlu0 %3739  ;;  %v3778_v19 = vmul.f32 %v3745_v12, %v3586_v55 }
 0x470   : > { %4578 = vst [vmem:[%s7819_s30 + $0xe0] sm:$0xff] %v4546_v27  ;;  %v3777_v54 = vmul.f32 %v3740_v2, %v3585_v24 }
 0x472   : > { %v3970_v63 = vpop.permute.xlu1 %3969 }
 0x473   : > { %v3965_v5 = vpop.permute.xlu0 %3964  ;;  %v4003_v3 = vmul.f32 %v4871_v43, %v3970_v63 }
 0x474   : > { %v4002_v4 = vmul.f32 %v4870_v16, %v3965_v5 }
 0x475   : > { %v4035_v62 = vadd.f32 %v4003_v3, %v3778_v19 }
 0x476   : > { %v4227_v8 = vpop.permute.xlu1 %4226  ;;  %v4034_v61 = vadd.f32 %v4002_v4, %v3777_v54 }
 0x477   : > { %v4260_v28 = vmul.f32 %v4903_v37, %v4227_v8  ;;  %v4222_v26 = vpop.permute.xlu0 %4221 }
 0x478   : > { %v4259_v22 = vmul.f32 %v4902_v18, %v4222_v26 }
 0x479   : > { %v4292_v17 = vadd.f32 %v4260_v28, %v4035_v62 }
 0x47a   : > { %v4484_v40 = vpop.permute.xlu1 %4483  ;;  %v4291_v33 = vadd.f32 %v4259_v22, %v4034_v61 }
 0x47b   : > { %v4517_v58 = vmul.f32 %v4935_v57, %v4484_v40  ;;  %v4479_v36 = vpop.permute.xlu0 %4478 }
 0x47c   : > { %v4516_v47 = vmul.f32 %v4934_v7, %v4479_v36  ;;  %4589 = sbr.rel (!%p8921_p4) target bundleno = 1180 (0x49c), region = 48 }
 0x47d   : > { %v4549_v25 = vadd.f32 %v4517_v58, %v4292_v17 }
 0x47e   : > { %v4548_v45 = vadd.f32 %v4516_v47, %v4291_v33 }
 0x47f   : > { %4581 = vst [vmem:[%s7819_s30 + $0xf8] sm:$0xff] %v4549_v25 }
 0x480   : > { %4580 = vst [vmem:[%s7819_s30 + $0xf0] sm:$0xff] %v4548_v45 }
 0x481   : > { %s8931_s14 = smov (!%p4592_p6, %s4591_s14), 32 }
 0x482   : > { %s8537_s2 = sshll.u32 %s8931_s14, 7 }
 0x483   : > { %s4596_s22 = ssub.s32 4096, %s8537_s2 }
 0x484   : > { %4597 = vsyncadd %s4583_s24, %s4596_s22  ;;  %p4939_p13 = scmp.ne.s32.totalorder %s8537_s2, 0  ;;  %s4948_s27 = sshll.u32 %s6050_s19, 12 }
 0x485   : > { %s8547_s6 = scalar_lea.hbm %s8598_s4, %s4948_s27  ;;  %s4602_s25 = sshll.u32 %s7819_s30, 4  ;;  %s8550_s25 = int_to_ptr.vmem [resolvable:$true] %s4602_s25 }
 0x486   : > { %s5924_s7 = scalar_lea.vmem %s8550_s25, %s8537_s2  ;;  %s6001_s8 = smov [#allocation7]  }
 0x487   : > { %p5925_p1 = scmp.ne.s32.totalorder %s8550_s25, %s5924_s7  ;;  %s5928_s9 = sshll.u32 %s6001_s8, 4  ;;  %s5929_s9 = int_to_ptr.vmem [resolvable:$false] %s5928_s9 }
 0x488   : > { %s5930_s19 = scalar_lea.vmem %s5929_s9, 8192  ;;  %p5931_p7 = scmp.lt.s32.totalorder %s8550_s25, %s5929_s9 }
 0x489   : > { %p5926_p2 = pnand %p5925_p1, %p4939_p13  ;;  %p5932_p3 = scmp.lt.s32.totalorder %s5930_s19, %s5924_s7 }
 0x48b   : > { %p5927_p0 = pneg %p5926_p2  ;;  %p5933_p8 = por %p5932_p3, %p5931_p7 }
 0x48d   : > { %p5934_p9 = pnand %p5933_p8, %p5927_p0 }
 0x48f   : > { %5937 = shalt.err (!%p5934_p9)
}
 0x490   : > { %s5938_s11 = scalar_lea.hbm %s8547_s6, %s8537_s2  ;;  %s5942_s20 = scalar_lea.hbm %s8598_s4, 16000 }
 0x491   : > { %p5939_p10 = scmp.ne.s32.totalorder %s8547_s6, %s5938_s11  ;;  %p5943_p5 = scmp.lt.s32.totalorder %s8547_s6, %s8598_s4 }
 0x492   : > { %p5944_p4 = scmp.lt.s32.totalorder %s5942_s20, %s5938_s11 }
 0x493   : > { %p5940_p11 = pnand %p5939_p10, %p4939_p13 }
 0x494   : > { %p5945_p6 = por %p5944_p4, %p5943_p5 }
 0x495   : > { %p5941_p12 = pneg %p5940_p11 }
 0x497   : > { %p5946_p1 = pnand %p5945_p6, %p5941_p12 }
 0x499   : > { %5949 = shalt.err (!%p5946_p1)
}
 0x49a   : > { %s6002_s29 = smov 128   ;;  %s6003_s14 = smov 8  }
 0x49b   : > { %4608 = dma.vmem_to_hbm [thread:$0]  (%p4939_p13), %s8550_s25, %s8537_s2, %s8547_s6, %s4583_s24, %s6002_s29, %s6002_s29, %s6003_s14  }
 0x49c PF: > { %p5525_p2 = scmp.ge.s32.totalorder %s5992_s18, 2  ;;  %s4617_s22 = sand.u32 1, %s5980_s15  }
 0x49d   : > { %p8922_p0 = scmp.ne.s32.totalorder %s8693_s28, 0  ;;  %s4618_s27 = scalar_lea.sflag [#allocation4], %s4617_s22 }
 0x49f   : > { %p5520_p7 = pnand %p5525_p2, %p8922_p0 }
 0x4a1   : > { %p5521_p3 = pneg %p5520_p7 }
 0x4a3   : > { %5975 = dma.done.wait (%p5521_p3), %s4618_s27, 4096  }
 0x4a4   : > { %5977 = vsyncadd (%p5521_p3), %s4618_s27, 4294963200  ;;  %s8923_s26 = sld [smem:[#allocation13_spill]]  ;;  %p18_p8 = scmp.ge.s32.totalorder %s6054_s21, 6  }
 0x4a5   : > { %s8924_s15 = smov %s5984_s16  ;;  %s8925_s16 = smov %s5988_s17 }
 0x4a6   : > { %s8927_s18 = smov %s6054_s21  ;;  %20 = sbr.rel (!%p18_p8) target bundleno = 8 (0x8), region = 93 }
 0x4aa   : > { %s8926_s17 = smov %s8923_s26 }
 0x4ab   :  { %4623 = vsyncpa [#allocation3], 1 }
 0x4ac   :  { %4625 = vsyncpa [#allocation3 + $0x1], 1 }
 0x4ad   :  { %4626 = vsyncpa [#allocation6], 1 }
 0x4ae   :  { %4627 = vsyncpa [#allocation4], 1 }
 0x4af   :  { %4629 = vsyncpa [#allocation4 + $0x1], 1 }

</bundles_post_ra>
